<compile_context>
chip_gen: v7x
topology: tpu7x:2x2x1
jax: 0.10.0
libtpu: 0.0.40
codegen_flags: <defaults>
</compile_context>

<pallas_src>
import jax
import jax.numpy as jnp
from jax.experimental import pallas as pl
from jax.experimental.pallas import tpu as pltpu


def embedding_mlp_kernel(xt_ref, w1t_ref, b1_ref, w2t_ref, b2_ref,
                         w3t_ref, b3_ref, w4_ref, b4_ref, o_ref):
    # Shapes (batch lane-dense on the last axis; hidden on sublanes):
    #   xt_ref:  (L, BM)        x^T tile
    #   w1t_ref: (H1, L)  f32   embedding already folded into layer-1 weight
    #   b1_ref:  (H1, 1)  f32
    #   w2t_ref: (H2, H1) bf16, b2_ref: (H2, 1) f32
    #   w3t_ref: (H3, H2) bf16, b3_ref: (H3, 1) f32
    #   w4_ref:  (H3, 1)  f32,  b4_ref: (1, 1) f32
    #   o_ref:   (1, BM)  f32   lane-dense output row
    L = w1t_ref.shape[1]

    # Layer 1 (K = L = 4): rank-1 broadcast MACs on the VPU instead of an MXU matmul.
    h1 = b1_ref[...] + w1t_ref[:, 0:1] * xt_ref[0:1, :]
    for l in range(1, L):
        h1 = h1 + w1t_ref[:, l:l + 1] * xt_ref[l:l + 1, :]
    h1 = jnp.maximum(h1, 0.0)                                           # (H1, BM) f32

    # Layers 2/3: single-pass bf16 MXU matmuls, f32 accumulation.
    h2 = jnp.dot(w2t_ref[...], h1.astype(jnp.bfloat16),
                 preferred_element_type=jnp.float32) + b2_ref[...]
    h2 = jnp.maximum(h2, 0.0)                                           # (H2, BM) f32
    h3 = jnp.dot(w3t_ref[...], h2.astype(jnp.bfloat16),
                 preferred_element_type=jnp.float32) + b3_ref[...]
    h3 = jnp.maximum(h3, 0.0)                                           # (H3, BM) f32

    # Layer 4 (256 -> 1): VPU multiply + sublane reduce, skip the N=1 MXU tail.
    o_ref[...] = jnp.sum(h3 * w4_ref[...], axis=0, keepdims=True) + b4_ref[...]


def _round_up(x, m):
    return -(-x // m) * m


def _choose_bm(B, target=1024):
    """Batch tile: full lane tile minimum, multiple of 256 for large B, and at
    least 2 grid steps when B is large so both v7x TensorCores get work."""
    if B <= 128:
        return 128
    if B <= 256:
        return 256
    bp = _round_up(B, 256)
    return min(target, max(256, (bp // 2) // 256 * 256))


def embedding_mlp_forward(x, emb_table, w1, b1, w2, b2, w3, b3, w4, b4, *,
                          block_b=1024):
    """x: (B, L) float32. Weights in (in, out) layout. Returns (B, 1, 1) float32."""
    B, L = x.shape
    E = emb_table.shape[1]
    H1, H2, H3 = w1.shape[1], w2.shape[1], w3.shape[1]

    x = x.astype(jnp.float32)

    # Fold embedding into the first linear layer (exact algebraic reassociation):
    #   W1_eff[l, h] = sum_e emb[l, e] * w1[l*E + e, h]
    w1_eff = (emb_table.astype(jnp.float32)[:, :, None]
              * w1.astype(jnp.float32).reshape(L, E, H1)).sum(axis=1)    # (L, H1)

    BM = _choose_bm(B, target=block_b)
    n_blocks = -(-B // BM)
    Bp = n_blocks * BM
    if Bp != B:
        x = jnp.pad(x, ((0, Bp - B), (0, 0)))

    # Transposed orientation: batch on the lane axis.
    xt = x.T                                                             # (L, Bp)
    w1t = w1_eff.T                                                       # (H1, L) f32
    b1c = b1.reshape(H1, 1).astype(jnp.float32)
    w2t = w2.T.astype(jnp.bfloat16)                                      # (H2, H1)
    b2c = b2.reshape(H2, 1).astype(jnp.float32)
    w3t = w3.T.astype(jnp.bfloat16)                                      # (H3, H2)
    b3c = b3.reshape(H3, 1).astype(jnp.float32)
    w4c = w4.reshape(H3, 1).astype(jnp.float32)                          # (H3, 1)
    b4c = b4.reshape(1, 1).astype(jnp.float32)

    # Constant index maps: weights/biases stay VMEM-resident across grid steps.
    const = lambda i: (0, 0)
    out = pl.pallas_call(
        embedding_mlp_kernel,
        out_shape=jax.ShapeDtypeStruct((1, Bp), jnp.float32),
        grid_spec=pltpu.PrefetchScalarGridSpec(
            num_scalar_prefetch=0,
            grid=(n_blocks,),
            in_specs=[
                pl.BlockSpec((L, BM), lambda i: (0, i)),   # x^T tile (lane-dense batch)
                pl.BlockSpec((H1, L), const),
                pl.BlockSpec((H1, 1), const),
                pl.BlockSpec((H2, H1), const),
                pl.BlockSpec((H2, 1), const),
                pl.BlockSpec((H3, H2), const),
                pl.BlockSpec((H3, 1), const),
                pl.BlockSpec((H3, 1), const),
                pl.BlockSpec((1, 1), const),
            ],
            out_specs=pl.BlockSpec((1, BM), lambda i: (0, i)),
        ),
        compiler_params=pltpu.CompilerParams(
            dimension_semantics=("parallel",),   # shards batch blocks across v7x TCs
            vmem_limit_bytes=32 * 1024 * 1024,   # ~6 MiB actually used at BM=1024
        ),
    )(xt, w1t, b1c, w2t, b2c, w3t, b3c, w4c, b4c)

    # Padded batch lanes carry relu(bias)-propagated garbage; slice them off here.
    return out[0, :B].reshape(B, 1, 1)


def reference_forward(x, emb_table, w1, b1, w2, b2, w3, b3, w4, b4):
    """Pure-JAX f32 reference mirroring the PyTorch embedding_mlp module."""
    B, L = x.shape
    E = emb_table.shape[1]
    feat = (x[:, :, None] * emb_table[None, :, :]).reshape(B, 1, L * E)
    h = jnp.maximum(feat @ w1 + b1, 0.0)
    h = jnp.maximum(h @ w2 + b2, 0.0)
    h = jnp.maximum(h @ w3 + b3, 0.0)
    return h @ w4 + b4                                                    # (B, 1, 1)


def _make_params(key, L, E, H1, H2, H3):
    ks = jax.random.split(key, 9)
    emb_table = jax.random.normal(ks[0], (L, E), dtype=jnp.float32)        # nn.Embedding weight
    w1 = jax.random.normal(ks[1], (L * E, H1), dtype=jnp.float32) * 0.05   # Linear(L*E, 256)
    b1 = jax.random.normal(ks[2], (H1,), dtype=jnp.float32) * 0.05
    w2 = jax.random.normal(ks[3], (H1, H2), dtype=jnp.float32) * 0.05      # Linear(256, 512)
    b2 = jax.random.normal(ks[4], (H2,), dtype=jnp.float32) * 0.05
    w3 = jax.random.normal(ks[5], (H2, H3), dtype=jnp.float32) * 0.05      # Linear(512, 256)
    b3 = jax.random.normal(ks[6], (H3,), dtype=jnp.float32) * 0.05
    w4 = jax.random.normal(ks[7], (H3, 1), dtype=jnp.float32) * 0.05       # Linear(256, 1)
    b4 = jax.random.normal(ks[8], (1,), dtype=jnp.float32) * 0.05
    return emb_table, w1, b1, w2, b2, w3, b3, w4, b4


if __name__ == "__main__":
    L, E = 4, 8                       # n_elements, embedding_size
    H1, H2, H3 = 256, 512, 256        # hidden sizes from the module spec
    key = jax.random.PRNGKey(0)
    kp, kx1, kx2 = jax.random.split(key, 3)
    params = _make_params(kp, L, E, H1, H2, H3)

    # Test 1: small batch (pads up to one 128-lane tile, single grid step).
    x_small = jax.random.normal(kx1, (2, L), dtype=jnp.float32)
    out_small = jax.block_until_ready(embedding_mlp_forward(x_small, *params))
    ref_small = reference_forward(x_small, *params)
    assert out_small.shape == (2, 1, 1), out_small.shape
    assert jnp.allclose(out_small, ref_small, atol=3e-2, rtol=3e-2), (out_small, ref_small)

    # Test 2: multi-block path (B=384 -> BM=256, 2 "parallel" grid steps + padding).
    x_big = jax.random.normal(kx2, (384, L), dtype=jnp.float32)
    out_big = jax.block_until_ready(embedding_mlp_forward(x_big, *params))
    ref_big = reference_forward(x_big, *params)
    assert out_big.shape == (384, 1, 1), out_big.shape
    assert jnp.allclose(out_big, ref_big, atol=3e-2, rtol=3e-2)

    print("KERNEL_OK")
</pallas_src>

<mosaic_0001>
module attributes {stable_mosaic.version = 11 : i64} {
  func.func @embedding_mlp_kernel(%arg0: i32, %arg1: memref<4x128xf32, #tpu.memory_space<vmem>>, %arg2: memref<256x4xf32, #tpu.memory_space<vmem>>, %arg3: memref<256x1xf32, #tpu.memory_space<vmem>>, %arg4: memref<512x256xbf16, #tpu.memory_space<vmem>>, %arg5: memref<512x1xf32, #tpu.memory_space<vmem>>, %arg6: memref<256x512xbf16, #tpu.memory_space<vmem>>, %arg7: memref<256x1xf32, #tpu.memory_space<vmem>>, %arg8: memref<256x1xf32, #tpu.memory_space<vmem>>, %arg9: memref<1x1xf32, #tpu.memory_space<vmem>>, %arg10: memref<1x128xf32, #tpu.memory_space<vmem>>) attributes {dimension_semantics = [#tpu.dimension_semantics<parallel>], iteration_bounds = array<i64: 1>, scalar_prefetch = 0 : i64, scratch_operands = 0 : i64, tpu.core_type = #tpu.core_type<tc>, window_params = [{transform_indices = @transform_0, window_bounds = array<i64: 4, 128>}, {pipeline_mode = #tpu.pipeline_mode<synchronous>, transform_indices = @transform_1, window_bounds = array<i64: 256, 4>}, {pipeline_mode = #tpu.pipeline_mode<synchronous>, transform_indices = @transform_2, window_bounds = array<i64: 256, 1>}, {pipeline_mode = #tpu.pipeline_mode<synchronous>, transform_indices = @transform_3, window_bounds = array<i64: 512, 256>}, {pipeline_mode = #tpu.pipeline_mode<synchronous>, transform_indices = @transform_4, window_bounds = array<i64: 512, 1>}, {pipeline_mode = #tpu.pipeline_mode<synchronous>, transform_indices = @transform_5, window_bounds = array<i64: 256, 512>}, {pipeline_mode = #tpu.pipeline_mode<synchronous>, transform_indices = @transform_6, window_bounds = array<i64: 256, 1>}, {pipeline_mode = #tpu.pipeline_mode<synchronous>, transform_indices = @transform_7, window_bounds = array<i64: 256, 1>}, {pipeline_mode = #tpu.pipeline_mode<synchronous>, transform_indices = @transform_8, window_bounds = array<i64: 1, 1>}, {transform_indices = @transform_9, window_bounds = array<i64: 1, 128>}]} {
    %c0 = arith.constant 0 : index
    %c0_0 = arith.constant 0 : index
    %0 = vector.load %arg3[%c0, %c0_0] : memref<256x1xf32, #tpu.memory_space<vmem>>, vector<256x1xf32>
    %c0_1 = arith.constant 0 : index
    %c0_2 = arith.constant 0 : index
    %1 = vector.load %arg2[%c0_1, %c0_2] : memref<256x4xf32, #tpu.memory_space<vmem>>, vector<256x1xf32>
    %c0_3 = arith.constant 0 : index
    %c0_4 = arith.constant 0 : index
    %2 = vector.load %arg1[%c0_3, %c0_4] : memref<4x128xf32, #tpu.memory_space<vmem>>, vector<1x128xf32>
    %3 = vector.broadcast %1 : vector<256x1xf32> to vector<256x128xf32>
    %4 = vector.broadcast %2 : vector<1x128xf32> to vector<256x128xf32>
    %5 = arith.mulf %3, %4 : vector<256x128xf32>
    %6 = vector.broadcast %0 : vector<256x1xf32> to vector<256x128xf32>
    %7 = arith.addf %6, %5 : vector<256x128xf32>
    %c0_5 = arith.constant 0 : index
    %c1 = arith.constant 1 : index
    %8 = vector.load %arg2[%c0_5, %c1] : memref<256x4xf32, #tpu.memory_space<vmem>>, vector<256x1xf32>
    %c1_6 = arith.constant 1 : index
    %c0_7 = arith.constant 0 : index
    %9 = vector.load %arg1[%c1_6, %c0_7] : memref<4x128xf32, #tpu.memory_space<vmem>>, vector<1x128xf32>
    %10 = vector.broadcast %8 : vector<256x1xf32> to vector<256x128xf32>
    %11 = vector.broadcast %9 : vector<1x128xf32> to vector<256x128xf32>
    %12 = arith.mulf %10, %11 : vector<256x128xf32>
    %13 = arith.addf %7, %12 : vector<256x128xf32>
    %c0_8 = arith.constant 0 : index
    %c2 = arith.constant 2 : index
    %14 = vector.load %arg2[%c0_8, %c2] : memref<256x4xf32, #tpu.memory_space<vmem>>, vector<256x1xf32>
    %c2_9 = arith.constant 2 : index
    %c0_10 = arith.constant 0 : index
    %15 = vector.load %arg1[%c2_9, %c0_10] : memref<4x128xf32, #tpu.memory_space<vmem>>, vector<1x128xf32>
    %16 = vector.broadcast %14 : vector<256x1xf32> to vector<256x128xf32>
    %17 = vector.broadcast %15 : vector<1x128xf32> to vector<256x128xf32>
    %18 = arith.mulf %16, %17 : vector<256x128xf32>
    %19 = arith.addf %13, %18 : vector<256x128xf32>
    %c0_11 = arith.constant 0 : index
    %c3 = arith.constant 3 : index
    %20 = vector.load %arg2[%c0_11, %c3] : memref<256x4xf32, #tpu.memory_space<vmem>>, vector<256x1xf32>
    %c3_12 = arith.constant 3 : index
    %c0_13 = arith.constant 0 : index
    %21 = vector.load %arg1[%c3_12, %c0_13] : memref<4x128xf32, #tpu.memory_space<vmem>>, vector<1x128xf32>
    %22 = vector.broadcast %20 : vector<256x1xf32> to vector<256x128xf32>
    %23 = vector.broadcast %21 : vector<1x128xf32> to vector<256x128xf32>
    %24 = arith.mulf %22, %23 : vector<256x128xf32>
    %25 = arith.addf %19, %24 : vector<256x128xf32>
    %cst = arith.constant 0.000000e+00 : f32
    %26 = vector.broadcast %cst : f32 to vector<256x128xf32>
    %27 = arith.maximumf %25, %26 : vector<256x128xf32>
    %c0_14 = arith.constant 0 : index
    %c0_15 = arith.constant 0 : index
    %28 = vector.load %arg4[%c0_14, %c0_15] : memref<512x256xbf16, #tpu.memory_space<vmem>>, vector<512x256xbf16>
    %29 = arith.truncf %27 : vector<256x128xf32> to vector<256x128xbf16>
    %cst_16 = arith.constant dense<0.000000e+00> : vector<512x128xf32>
    %30 = tpu.matmul %28, %29, %cst_16 {dimension_numbers = #tpu.dot_dimension_numbers<[1], [0], [0], [1], [0, 0, 1, 1], [], []>} : vector<512x256xbf16>, vector<256x128xbf16>, vector<512x128xf32> -> vector<512x128xf32>
    %c0_17 = arith.constant 0 : index
    %c0_18 = arith.constant 0 : index
    %31 = vector.load %arg5[%c0_17, %c0_18] : memref<512x1xf32, #tpu.memory_space<vmem>>, vector<512x1xf32>
    %32 = vector.broadcast %31 : vector<512x1xf32> to vector<512x128xf32>
    %33 = arith.addf %30, %32 : vector<512x128xf32>
    %cst_19 = arith.constant 0.000000e+00 : f32
    %34 = vector.broadcast %cst_19 : f32 to vector<512x128xf32>
    %35 = arith.maximumf %33, %34 : vector<512x128xf32>
    %c0_20 = arith.constant 0 : index
    %c0_21 = arith.constant 0 : index
    %36 = vector.load %arg6[%c0_20, %c0_21] : memref<256x512xbf16, #tpu.memory_space<vmem>>, vector<256x512xbf16>
    %37 = arith.truncf %35 : vector<512x128xf32> to vector<512x128xbf16>
    %cst_22 = arith.constant dense<0.000000e+00> : vector<256x128xf32>
    %38 = tpu.matmul %36, %37, %cst_22 {dimension_numbers = #tpu.dot_dimension_numbers<[1], [0], [0], [1], [0, 0, 1, 1], [], []>} : vector<256x512xbf16>, vector<512x128xbf16>, vector<256x128xf32> -> vector<256x128xf32>
    %c0_23 = arith.constant 0 : index
    %c0_24 = arith.constant 0 : index
    %39 = vector.load %arg7[%c0_23, %c0_24] : memref<256x1xf32, #tpu.memory_space<vmem>>, vector<256x1xf32>
    %40 = vector.broadcast %39 : vector<256x1xf32> to vector<256x128xf32>
    %41 = arith.addf %38, %40 : vector<256x128xf32>
    %cst_25 = arith.constant 0.000000e+00 : f32
    %42 = vector.broadcast %cst_25 : f32 to vector<256x128xf32>
    %43 = arith.maximumf %41, %42 : vector<256x128xf32>
    %c0_26 = arith.constant 0 : index
    %c0_27 = arith.constant 0 : index
    %44 = vector.load %arg8[%c0_26, %c0_27] : memref<256x1xf32, #tpu.memory_space<vmem>>, vector<256x1xf32>
    %45 = vector.broadcast %44 : vector<256x1xf32> to vector<256x128xf32>
    %46 = arith.mulf %43, %45 : vector<256x128xf32>
    %cst_28 = arith.constant dense<0.000000e+00> : vector<128xf32>
    %47 = vector.multi_reduction <add>, %46, %cst_28 [0] : vector<256x128xf32> to vector<128xf32>
    %48 = vector.shape_cast %47 : vector<128xf32> to vector<1x128xf32>
    %c0_29 = arith.constant 0 : index
    %c0_30 = arith.constant 0 : index
    %49 = vector.load %arg9[%c0_29, %c0_30] : memref<1x1xf32, #tpu.memory_space<vmem>>, vector<1x1xf32>
    %50 = vector.broadcast %49 : vector<1x1xf32> to vector<1x128xf32>
    %51 = arith.addf %48, %50 : vector<1x128xf32>
    %c0_31 = arith.constant 0 : index
    %c0_32 = arith.constant 0 : index
    %52 = vector.load %arg10[%c0_31, %c0_32] : memref<1x128xf32, #tpu.memory_space<vmem>>, vector<1x128xf32>
    tpu.vector_store %arg10[%c0_31, %c0_32], %51 {strides = array<i32>} : memref<1x128xf32, #tpu.memory_space<vmem>>, vector<1x128xf32>,
    return
  }
  func.func @transform_0(%arg0: i32) -> (i32, i32) {
    %c0_i32 = arith.constant 0 : i32
    %c0_i32_0 = arith.constant 0 : i32
    return %c0_i32, %arg0 : i32, i32
  }
  func.func @transform_1(%arg0: i32) -> (i32, i32) {
    %c0_i32 = arith.constant 0 : i32
    %c0_i32_0 = arith.constant 0 : i32
    %c0_i32_1 = arith.constant 0 : i32
    return %c0_i32, %c0_i32_0 : i32, i32
  }
  func.func @transform_2(%arg0: i32) -> (i32, i32) {
    %c0_i32 = arith.constant 0 : i32
    %c0_i32_0 = arith.constant 0 : i32
    %c0_i32_1 = arith.constant 0 : i32
    return %c0_i32, %c0_i32_0 : i32, i32
  }
  func.func @transform_3(%arg0: i32) -> (i32, i32) {
    %c0_i32 = arith.constant 0 : i32
    %c0_i32_0 = arith.constant 0 : i32
    %c0_i32_1 = arith.constant 0 : i32
    return %c0_i32, %c0_i32_0 : i32, i32
  }
  func.func @transform_4(%arg0: i32) -> (i32, i32) {
    %c0_i32 = arith.constant 0 : i32
    %c0_i32_0 = arith.constant 0 : i32
    %c0_i32_1 = arith.constant 0 : i32
    return %c0_i32, %c0_i32_0 : i32, i32
  }
  func.func @transform_5(%arg0: i32) -> (i32, i32) {
    %c0_i32 = arith.constant 0 : i32
    %c0_i32_0 = arith.constant 0 : i32
    %c0_i32_1 = arith.constant 0 : i32
    return %c0_i32, %c0_i32_0 : i32, i32
  }
  func.func @transform_6(%arg0: i32) -> (i32, i32) {
    %c0_i32 = arith.constant 0 : i32
    %c0_i32_0 = arith.constant 0 : i32
    %c0_i32_1 = arith.constant 0 : i32
    return %c0_i32, %c0_i32_0 : i32, i32
  }
  func.func @transform_7(%arg0: i32) -> (i32, i32) {
    %c0_i32 = arith.constant 0 : i32
    %c0_i32_0 = arith.constant 0 : i32
    %c0_i32_1 = arith.constant 0 : i32
    return %c0_i32, %c0_i32_0 : i32, i32
  }
  func.func @transform_8(%arg0: i32) -> (i32, i32) {
    %c0_i32 = arith.constant 0 : i32
    %c0_i32_0 = arith.constant 0 : i32
    %c0_i32_1 = arith.constant 0 : i32
    return %c0_i32, %c0_i32_0 : i32, i32
  }
  func.func @transform_9(%arg0: i32) -> (i32, i32) {
    %c0_i32 = arith.constant 0 : i32
    %c0_i32_0 = arith.constant 0 : i32
    return %c0_i32, %arg0 : i32, i32
  }
}

</mosaic_0001>

<bundles_post_ra>
// kernel: tpu_custom_call.1
= control target key start
LH: loop header
LB: loop body
LE: loop exit
PB: predicated region body
PF: predicated region fallthrough
CT: control target
= control target key end

     0   :  { %s6285_s0 = inlined_call_operand.vmem [shape: f32[4,128], index: 0, kind: input, shape index: {}]   ;;  %s6286_s1 = inlined_call_operand.vmem [shape: f32[256,4], index: 1, kind: input, shape index: {}]   ;;  %s6287_s2 = inlined_call_operand.vmem [shape: f32[256,1], index: 2, kind: input, shape index: {}]   ;;  %s6288_s3 = inlined_call_operand.vmem [shape: bf16[512,256], index: 3, kind: input, shape index: {}]   ;;  %s6289_s4 = inlined_call_operand.vmem [shape: f32[512,1], index: 4, kind: input, shape index: {}]   ;;  %s6290_s5 = inlined_call_operand.vmem [shape: bf16[256,512], index: 5, kind: input, shape index: {}]   ;;  %s6291_s6 = inlined_call_operand.vmem [shape: f32[256,1], index: 6, kind: input, shape index: {}]   ;;  %s6292_s7 = inlined_call_operand.vmem [shape: f32[256,1], index: 7, kind: input, shape index: {}]   ;;  %s6293_s8 = inlined_call_operand.<no memory space> [shape: f32[1,1], index: 8, kind: input, shape index: {}]   ;;  %s6294_s9 = inlined_call_operand.hbm [shape: f32[1,128], index: 9, kind: output, shape index: {}]  }
   0x1   :  { %v14_v0 = vstv %s6293_s8 }
   0x2   :  { %15 = vst [vmem:[#allocation2] sm:$0x1] %v14_v0 }
   0x3   :  { %v4211_v1 = vld [vmem:[%s6286_s1 + $0x10] sm:$0xff]  ;;  %v4216_v2 = vld [vmem:[%s6286_s1] sm:$0xff]  ;;  %v6301_v3 = vmov 3   ;;  %v6297_v4 = vmov 0   ;;  %v4225_v5 = vld [vmem:[%s6286_s1 + $0x18] sm:$0xff]  ;;  %v6299_v17 = vmov 2  }
   0x4   :  { %3863 = vset.pattern.permute.xlu0 %v6301_v3  ;;  %3859 = vset.pattern.permute.xlu1 %v6297_v4  ;;  %v4233_v6 = vld [vmem:[%s6286_s1 + $0x28] sm:$0xff]  ;;  %v4238_v7 = vld [vmem:[%s6286_s1 + $0x20] sm:$0xff]  ;;  %v4245_v8 = vld [vmem:[%s6286_s1 + $0x38] sm:$0xff] }
   0x5   :  { %113 = vperm.xlu1 %3859, %v4211_v1   ;;  %885 = vperm.xlu0 %3863, %v4216_v2   ;;  %v4250_v9 = vld [vmem:[%s6286_s1 + $0x30] sm:$0xff]  ;;  %v4255_v10 = vld [vmem:[%s6286_s1 + $0x48] sm:$0xff]  ;;  %v4260_v11 = vld [vmem:[%s6286_s1 + $0x40] sm:$0xff] }
   0x6   :  { %1896 = vmatprep.subr.bf16.mxu0 %v6297_v4  ;;  %v4267_v12 = vld [vmem:[%s6286_s1 + $0x58] sm:$0xff]  ;;  %v4272_v13 = vld [vmem:[%s6286_s1 + $0x50] sm:$0xff]  ;;  %v4279_v14 = vld [vmem:[%s6286_s1 + $0x68] sm:$0xff] }
   0x7   :  { %v4286_v15 = vld [vmem:[%s6286_s1 + $0x78] sm:$0xff]  ;;  %v4293_v16 = vld [vmem:[%s6286_s1 + $0x8] sm:$0xff]  ;;  %v4343_v25 = vld [vmem:[%s6286_s1 + $0x80] sm:$0xff] }
   0x8   :  { %v4300_v18 = vld [vmem:[%s6286_s1 + $0x88] sm:$0xff]  ;;  %v4306_v19 = vld [vmem:[%s6286_s1 + $0x98] sm:$0xff] }
   0x9   :  { %118 = vperm.xlu1 %3859, %v4225_v5   ;;  %893 = vperm.xlu0 %3863, %v4211_v1   ;;  %v4313_v20 = vld [vmem:[%s6286_s1 + $0xa8] sm:$0xff]  ;;  %v4320_v21 = vld [vmem:[%s6286_s1 + $0xb8] sm:$0xff] }
   0xa   :  { %6311 = vst [vmem:[#allocation6_spill] sm:$0xff] %v4320_v21  ;;  %v4327_v22 = vld [vmem:[%s6286_s1 + $0xc8] sm:$0xff]  ;;  %v95_v23 = vld [vmem:[%s6286_s1 + $0xd8] sm:$0xff] }
   0xb   :  { %6312 = vst [vmem:[#allocation7_spill] sm:$0xff] %v4327_v22  ;;  %v97_v24 = vld [vmem:[%s6286_s1 + $0xe8] sm:$0xff] }
   0xd   :  { %128 = vperm.xlu1 %3859, %v4233_v6   ;;  %901 = vperm.xlu0 %3863, %v4238_v7  }
  0x11   :  { %138 = vperm.xlu1 %3859, %v4245_v8   ;;  %909 = vperm.xlu0 %3863, %v4250_v9  }
  0x15   :  { %148 = vperm.xlu1 %3859, %v4255_v10   ;;  %917 = vperm.xlu0 %3863, %v4260_v11  }
  0x19   :  { %158 = vperm.xlu1 %3859, %v4267_v12   ;;  %925 = vperm.xlu0 %3863, %v4272_v13  }
  0x1d   :  { %168 = vperm.xlu1 %3859, %v4279_v14   ;;  %937 = vperm.xlu0 %3863, %v4279_v14  }
  0x21   :  { %178 = vperm.xlu1 %3859, %v4286_v15   ;;  %3884 = vset.pattern.permute.xlu0 %v6299_v17 }
  0x22   :  { %692 = vperm.xlu0 %3884, %v4293_v16  }
  0x25   :  { %188 = vperm.xlu1 %3859, %v4300_v18  }
  0x26   :  { %700 = vperm.xlu0 %3884, %v4225_v5  }
  0x29   :  { %198 = vperm.xlu1 %3859, %v4306_v19  }
  0x2a   :  { %708 = vperm.xlu0 %3884, %v4233_v6  }
  0x2d   :  { %208 = vperm.xlu1 %3859, %v4313_v20  }
  0x2e   :  { %716 = vperm.xlu0 %3884, %v4245_v8  }
  0x31   :  { %218 = vperm.xlu1 %3859, %v4320_v21  }
  0x32   :  { %724 = vperm.xlu0 %3884, %v4255_v10  }
  0x35   :  { %228 = vperm.xlu1 %3859, %v4327_v22  }
  0x36   :  { %732 = vperm.xlu0 %3884, %v4267_v12  }
  0x39   :  { %238 = vperm.xlu1 %3859, %v95_v23  }
  0x3a   :  { %740 = vperm.xlu0 %3884, %v4279_v14  }
  0x3d   :  { %248 = vperm.xlu1 %3859, %v97_v24  }
  0x3e   :  { %16 = vsyncpa [#allocation4], 0  ;;  %752 = vperm.xlu0 %3884, %v4343_v25   ;;  %v4349_v26 = vld [vmem:[%s6286_s1 + $0xf8] sm:$0xff]  ;;  %v37_v27 = vld [vmem:[%s6287_s2 + $0x8] sm:$0xff]  ;;  %v6295_v31 = vmov 1  }
  0x3f   :  { %v4359_v28 = vld [vmem:[%s6286_s1 + $0xb0] sm:$0xff]  ;;  %v39_v29 = vld [vmem:[%s6287_s2 + $0x18] sm:$0xff]  ;;  %v41_v30 = vld [vmem:[%s6287_s2 + $0x28] sm:$0xff] }
  0x40   :  { %v43_v32 = vld [vmem:[%s6287_s2 + $0x38] sm:$0xff]  ;;  %v4377_v33 = vld [vmem:[%s6286_s1 + $0x70] sm:$0xff]  ;;  %v45_v34 = vld [vmem:[%s6287_s2 + $0x48] sm:$0xff] }
  0x41   :  { %258 = vperm.xlu1 %3859, %v4349_v26   ;;  %v47_v35 = vld [vmem:[%s6287_s2 + $0x58] sm:$0xff]  ;;  %v4390_v36 = vld [vmem:[%s6286_s1 + $0xa0] sm:$0xff]  ;;  %v49_v37 = vld [vmem:[%s6287_s2 + $0x68] sm:$0xff] }
  0x42   :  { %764 = vperm.xlu0 %3884, %v4306_v19   ;;  %v4400_v38 = vld [vmem:[%s6286_s1 + $0xd0] sm:$0xff]  ;;  %v4426_v39 = vld [vmem:[%s6286_s1 + $0x60] sm:$0xff] }
  0x43   :  { %6313 = vst [vmem:[#allocation8_spill] sm:$0xff] %v4400_v38  ;;  %v4451_v46 = vld [vmem:[%s6286_s1 + $0x90] sm:$0xff]  ;;  %v4474_v53 = vld [vmem:[%s6286_s1 + $0xc0] sm:$0xff] }
  0x44   :  { %6315 = vst [vmem:[#allocation10_spill] sm:$0xff] %v4474_v53  ;;  %v4493_v58 = vld [vmem:[%s6286_s1 + $0xe0] sm:$0xff]  ;;  %v4505_v61 = vld [vmem:[%s6286_s1 + $0xf0] sm:$0xff] }
  0x45   :  { %304 = vperm.xlu1 %3859, %v37_v27   ;;  %6319 = vst [vmem:[#allocation14_spill] sm:$0xff] %v4493_v58  ;;  %6321 = vst [vmem:[#allocation16_spill] sm:$0xff] %v4505_v61  ;;  %v36_v0 = vld [vmem:[%s6287_s2] sm:$0xff] }
  0x46   :  { %776 = vperm.xlu0 %3884, %v4359_v28  }
  0x49   :  { %314 = vperm.xlu1 %3859, %v39_v29  }
  0x4a   :  { %788 = vperm.xlu0 %3884, %v4327_v22  }
  0x4d   :  { %324 = vperm.xlu1 %3859, %v41_v30  }
  0x4e   :  { %3906 = vset.pattern.permute.xlu0 %v6295_v31 }
  0x4f   :  { %491 = vperm.xlu0 %3906, %v4216_v2  }
  0x51   :  { %334 = vperm.xlu1 %3859, %v43_v32   ;;  %v46_v32 = vld [vmem:[%s6287_s2 + $0x50] sm:$0xff] }
  0x53   :  { %547 = vperm.xlu0 %3906, %v4377_v33  }
  0x55   :  { %344 = vperm.xlu1 %3859, %v45_v34  }
  0x57   :  { %559 = vperm.xlu0 %3906, %v4300_v18  }
  0x59   :  { %354 = vperm.xlu1 %3859, %v47_v35  }
  0x5b   :  { %571 = vperm.xlu0 %3906, %v4390_v36  }
  0x5d   :  { %364 = vperm.xlu1 %3859, %v49_v37   ;;  %v48_v37 = vld [vmem:[%s6287_s2 + $0x60] sm:$0xff] }
  0x5f   :  { %583 = vperm.xlu0 %3906, %v4320_v21  }
  0x61   :  { %3860 = vset.pattern.permute.xlu1 %v6295_v31 }
  0x62   :  { %495 = vperm.xlu1 %3860, %v4293_v16  }
  0x63   :  { %595 = vperm.xlu0 %3906, %v4400_v38  }
  0x66   :  { %3861 = vset.pattern.permute.xlu1 %v6299_v17 }
  0x67   :  { %607 = vperm.xlu0 %3906, %v97_v24   ;;  %688 = vperm.xlu1 %3861, %v4216_v2  }
  0x6b   :  { %3913 = vset.pattern.permute.xlu0 %v6297_v4  ;;  %3862 = vset.pattern.permute.xlu1 %v6295_v31 }
  0x6c   :  { %103 = vperm.xlu0 %3913, %v4216_v2   ;;  %499 = vperm.xlu1 %3862, %v4211_v1  }
  0x70   :  { %108 = vperm.xlu0 %3913, %v4293_v16   ;;  %503 = vperm.xlu1 %3862, %v4225_v5  }
  0x74   :  { %123 = vperm.xlu0 %3913, %v4238_v7   ;;  %3864 = vset.pattern.permute.xlu1 %v6301_v3 }
  0x75   :  { %889 = vperm.xlu1 %3864, %v4293_v16  }
  0x78   :  { %133 = vperm.xlu0 %3913, %v4250_v9  }
  0x79   :  { %3865 = vset.pattern.permute.xlu1 %v6299_v17 }
  0x7a   :  { %696 = vperm.xlu1 %3865, %v4211_v1  }
  0x7c   :  { %143 = vperm.xlu0 %3913, %v4260_v11  }
  0x7e   :  { %3866 = vset.pattern.permute.xlu1 %v6295_v31 }
  0x7f   :  { %507 = vperm.xlu1 %3866, %v4238_v7  }
  0x80   :  { %153 = vperm.xlu0 %3913, %v4272_v13  }
  0x83   :  { %511 = vperm.xlu1 %3866, %v4233_v6  }
  0x84   :  { %v4429_v40 = vpop.permute.xlu1 %113  ;;  %163 = vperm.xlu0 %3913, %v4426_v39   ;;  %v4432_v41 = vpop.permute.xlu0 %885 }
  0x87   :  { %3867 = vset.pattern.permute.xlu1 %v6301_v3 }
  0x88   :  { %v4435_v42 = vpop.permute.xlu1 %118  ;;  %173 = vperm.xlu0 %3913, %v4377_v33   ;;  %897 = vperm.xlu1 %3867, %v4225_v5   ;;  %v4439_v43 = vpop.permute.xlu0 %893  ;;  %v38_v5 = vld [vmem:[%s6287_s2 + $0x10] sm:$0xff] }
  0x8c   :  { %v4441_v44 = vpop.permute.xlu1 %128  ;;  %183 = vperm.xlu0 %3913, %v4343_v25   ;;  %3868 = vset.pattern.permute.xlu1 %v6299_v17  ;;  %v4445_v45 = vpop.permute.xlu0 %901 }
  0x8d   :  { %704 = vperm.xlu1 %3868, %v4238_v7  }
  0x90   :  { %v4453_v47 = vpop.permute.xlu1 %138  ;;  %193 = vperm.xlu0 %3913, %v4451_v46   ;;  %v4456_v48 = vpop.permute.xlu0 %909 }
  0x91   :  { %3869 = vset.pattern.permute.xlu1 %v6295_v31 }
  0x92   :  { %515 = vperm.xlu1 %3869, %v4250_v9  }
  0x94   :  { %v4460_v49 = vpop.permute.xlu1 %148  ;;  %203 = vperm.xlu0 %3913, %v4390_v36   ;;  %v4463_v50 = vpop.permute.xlu0 %917 }
  0x96   :  { %519 = vperm.xlu1 %3869, %v4245_v8  }
  0x98   :  { %v4466_v51 = vpop.permute.xlu1 %158  ;;  %213 = vperm.xlu0 %3913, %v4359_v28   ;;  %v4469_v52 = vpop.permute.xlu0 %925 }
  0x99   :  { %6314 = vst [vmem:[#allocation9_spill] sm:$0xff] %v4469_v52 }
  0x9a   :  { %3870 = vset.pattern.permute.xlu1 %v6301_v3 }
  0x9b   :  { %905 = vperm.xlu1 %3870, %v4233_v6  }
  0x9c   :  { %v4478_v54 = vpop.permute.xlu1 %168  ;;  %223 = vperm.xlu0 %3913, %v4474_v53   ;;  %v4481_v55 = vpop.permute.xlu0 %937 }
  0x9d   :  { %6316 = vst [vmem:[#allocation11_spill] sm:$0xff] %v4478_v54  ;;  %6317 = vst [vmem:[#allocation12_spill] sm:$0xff] %v4481_v55 }
  0x9f   :  { %3871 = vset.pattern.permute.xlu1 %v6299_v17 }
  0xa0   :  { %v4484_v56 = vpop.permute.xlu1 %178  ;;  %233 = vperm.xlu0 %3913, %v4400_v38   ;;  %712 = vperm.xlu1 %3871, %v4250_v9   ;;  %v40_v9 = vld [vmem:[%s6287_s2 + $0x20] sm:$0xff] }
  0xa1   :  { %6318 = vst [vmem:[#allocation13_spill] sm:$0xff] %v4484_v56  ;;  %v4488_v57 = vpop.permute.xlu0 %692 }
  0xa4   :  { %v4495_v59 = vpop.permute.xlu1 %188  ;;  %243 = vperm.xlu0 %3913, %v4493_v58   ;;  %3872 = vset.pattern.permute.xlu1 %v6295_v31 }
  0xa5   :  { %6320 = vst [vmem:[#allocation15_spill] sm:$0xff] %v4495_v59  ;;  %523 = vperm.xlu1 %3872, %v4260_v11   ;;  %v4500_v60 = vpop.permute.xlu0 %700 }
  0xa8   :  { %v4507_v62 = vpop.permute.xlu1 %198  ;;  %253 = vperm.xlu0 %3913, %v4505_v61   ;;  %v53_v61 = vld [vmem:[%s6287_s2 + $0x88] sm:$0xff] }
  0xa9   :  { %6322 = vst [vmem:[#allocation17_spill] sm:$0xff] %v4507_v62  ;;  %527 = vperm.xlu1 %3872, %v4255_v10   ;;  %v4511_v63 = vpop.permute.xlu0 %708 }
  0xac   :  { %v4516_v1 = vpop.permute.xlu1 %208  ;;  %299 = vperm.xlu0 %3913, %v36_v0  }
  0xad   :  { %6323 = vst [vmem:[#allocation18_spill] sm:$0xff] %v4516_v1  ;;  %3873 = vset.pattern.permute.xlu1 %v6301_v3  ;;  %v4519_v2 = vpop.permute.xlu0 %716 }
  0xae   :  { %913 = vperm.xlu1 %3873, %v4245_v8   ;;  %v42_v8 = vld [vmem:[%s6287_s2 + $0x30] sm:$0xff] }
  0xb0   :  { %v4525_v6 = vpop.permute.xlu1 %218  ;;  %309 = vperm.xlu0 %3913, %v38_v5  }
  0xb1   :  { %6324 = vst [vmem:[#allocation19_spill] sm:$0xff] %v4525_v6  ;;  %v4527_v7 = vpop.permute.xlu0 %724 }
  0xb2   :  { %3874 = vset.pattern.permute.xlu1 %v6299_v17 }
  0xb3   :  { %720 = vperm.xlu1 %3874, %v4260_v11   ;;  %v44_v11 = vld [vmem:[%s6287_s2 + $0x40] sm:$0xff] }
  0xb4   :  { %v4534_v16 = vpop.permute.xlu1 %228  ;;  %319 = vperm.xlu0 %3913, %v40_v9   ;;  %v52_v9 = vld [vmem:[%s6287_s2 + $0x80] sm:$0xff] }
  0xb5   :  { %6325 = vst [vmem:[#allocation20_spill] sm:$0xff] %v4534_v16  ;;  %v4536_v23 = vpop.permute.xlu0 %732  ;;  %v6343_v16 = vmov 3  }
  0xb6   :  { %6326 = vst [vmem:[#allocation21_spill] sm:$0xff] %v4536_v23 }
  0xb7   :  { %3875 = vset.pattern.permute.xlu1 %v6295_v31 }
  0xb8   :  { %v4542_v24 = vpop.permute.xlu1 %238  ;;  %531 = vperm.xlu1 %3875, %v4272_v13   ;;  %329 = vperm.xlu0 %3913, %v42_v8  }
  0xb9   :  { %6327 = vst [vmem:[#allocation22_spill] sm:$0xff] %v4542_v24  ;;  %v4545_v27 = vpop.permute.xlu0 %740  ;;  %v6341_v24 = vmov 0  }
  0xba   :  { %6328 = vst [vmem:[#allocation23_spill] sm:$0xff] %v4545_v27  ;;  %v4717_v27 = vld [vmem:[%s6285_s0] ss:$0 sm:$0xff] }
  0xbc   :  { %v4550_v29 = vpop.permute.xlu1 %248  ;;  %535 = vperm.xlu1 %3875, %v4267_v12   ;;  %339 = vperm.xlu0 %3913, %v44_v11   ;;  %v55_v11 = vld [vmem:[%s6287_s2 + $0x98] sm:$0xff] }
  0xbd   :  { %6329 = vst [vmem:[#allocation24_spill] sm:$0xff] %v4550_v29  ;;  %v4553_v30 = vpop.permute.xlu0 %752 }
  0xbe   :  { %6330 = vst [vmem:[#allocation25_spill] sm:$0xff] %v4553_v30 }
  0xc0   :  { %v4558_v34 = vpop.permute.xlu1 %258  ;;  %3876 = vset.pattern.permute.xlu1 %v6301_v3  ;;  %349 = vperm.xlu0 %3913, %v46_v32  }
  0xc1   :  { %6331 = vst [vmem:[#allocation26_spill] sm:$0xff] %v4558_v34  ;;  %921 = vperm.xlu1 %3876, %v4255_v10   ;;  %v4562_v35 = vpop.permute.xlu0 %764 }
  0xc2   :  { %6332 = vst [vmem:[#allocation27_spill] sm:$0xff] %v4562_v35 }
  0xc4   :  { %v4567_v0 = vpop.permute.xlu1 %304  ;;  %359 = vperm.xlu0 %3913, %v48_v37  }
  0xc5   :  { %3877 = vset.pattern.permute.xlu1 %v6299_v17  ;;  %v4570_v5 = vpop.permute.xlu0 %776 }
  0xc6   :  { %6333 = vst [vmem:[#allocation28_spill] sm:$0xff] %v4570_v5  ;;  %728 = vperm.xlu1 %3877, %v4272_v13   ;;  %v58_v13 = vld [vmem:[%s6287_s2 + $0xb0] sm:$0xff] }
  0xc8   :  { %v4576_v10 = vpop.permute.xlu1 %314  ;;  %379 = vperm.xlu0 %3913, %v52_v9  }
  0xc9   :  { %v4578_v8 = vpop.permute.xlu0 %788 }
  0xca   :  { %6334 = vst [vmem:[#allocation29_spill] sm:$0xff] %v4578_v8  ;;  %3878 = vset.pattern.permute.xlu1 %v6295_v31  ;;  %v61_v31 = vld [vmem:[%s6287_s2 + $0xc8] sm:$0xff] }
  0xcb   :  { %539 = vperm.xlu1 %3878, %v4426_v39  }
  0xcc   :  { %v4585_v32 = vpop.permute.xlu1 %324  ;;  %394 = vperm.xlu0 %3913, %v55_v11  }
  0xce   :  { %v4590_v37 = vpop.permute.xlu0 %491 }
  0xcf   :  { %543 = vperm.xlu1 %3878, %v4279_v14   ;;  %v64_v14 = vld [vmem:[%s6287_s2 + $0xe0] sm:$0xff] }
  0xd0   :  { %v4593_v9 = vpop.permute.xlu1 %334  ;;  %409 = vperm.xlu0 %3913, %v58_v13   ;;  %v6337_v13 = vmov 2  }
  0xd2   :  { %v4598_v4 = vpop.permute.xlu0 %547 }
  0xd3   :  { %6335 = vst [vmem:[#allocation30_spill] sm:$0xff] %v4598_v4  ;;  %3879 = vset.pattern.permute.xlu1 %v6301_v3 }
  0xd4   :  { %929 = vperm.xlu1 %3879, %v4267_v12   ;;  %v4602_v11 = vpop.permute.xlu1 %344  ;;  %424 = vperm.xlu0 %3913, %v61_v31   ;;  %v67_v12 = vld [vmem:[%s6287_s2 + $0xf8] sm:$0xff]  ;;  %v50_v31 = vld [vmem:[%s6287_s2 + $0x70] sm:$0xff] }
  0xd6   :  { %v4607_v17 = vpop.permute.xlu0 %559 }
  0xd7   :  { %6336 = vst [vmem:[#allocation31_spill] sm:$0xff] %v4607_v17 }
  0xd8   :  { %3880 = vset.pattern.permute.xlu1 %v6337_v13  ;;  %v4610_v34 = vpop.permute.xlu1 %354  ;;  %439 = vperm.xlu0 %3913, %v64_v14   ;;  %v51_v14 = vld [vmem:[%s6287_s2 + $0x78] sm:$0xff] }
  0xd9   :  { %6338 = vst [vmem:[#allocation32_spill] sm:$0xff] %v4610_v34  ;;  %736 = vperm.xlu1 %3880, %v4426_v39   ;;  %v270_v34 = vmul.f32 %v4717_v27, %v4441_v44  ;;  %v272_v44 = vmul.f32 %v4717_v27, %v4453_v47 }
  0xda   :  { %v4616_v3 = vpop.permute.xlu0 %571 }
  0xdb   :  { %6339 = vst [vmem:[#allocation33_spill] sm:$0xff] %v4616_v3 }
  0xdc   :  { %v4621_v29 = vpop.permute.xlu1 %364  ;;  %454 = vperm.xlu0 %3913, %v67_v12   ;;  %v6345_v12 = vmov 1  }
  0xdd   :  { %6340 = vst [vmem:[#allocation34_spill] sm:$0xff] %v4621_v29  ;;  %3881 = vset.pattern.permute.xlu1 %v6341_v24 }
  0xde   :  { %369 = vperm.xlu1 %3881, %v50_v31   ;;  %v4624_v8 = vpop.permute.xlu0 %583 }
  0xdf   :  { %6342 = vst [vmem:[#allocation35_spill] sm:$0xff] %v4624_v8 }
  0xe0   :  { %3917 = vset.pattern.permute.xlu0 %v6343_v16 }
  0xe1   :  { %v4630_v5 = vpop.permute.xlu1 %495  ;;  %949 = vperm.xlu0 %3917, %v4343_v25  }
  0xe2   :  { %374 = vperm.xlu1 %3881, %v51_v14   ;;  %v4633_v6 = vpop.permute.xlu0 %595 }
  0xe3   :  { %6344 = vst [vmem:[#allocation36_spill] sm:$0xff] %v4633_v6 }
  0xe5   :  { %961 = vperm.xlu0 %3917, %v4306_v19  }
  0xe6   :  { %3882 = vset.pattern.permute.xlu1 %v6345_v12  ;;  %v4637_v31 = vpop.permute.xlu1 %688  ;;  %v4639_v8 = vpop.permute.xlu0 %607 }
  0xe7   :  { %6346 = vst [vmem:[#allocation37_spill] sm:$0xff] %v4639_v8  ;;  %551 = vperm.xlu1 %3882, %v4286_v15  }
  0xe9   :  { %973 = vperm.xlu0 %3917, %v4359_v28  }
  0xeb   :  { %v4643_v1 = vpop.permute.xlu0 %103  ;;  %3883 = vset.pattern.permute.xlu1 %v6343_v16  ;;  %v4646_v3 = vpop.permute.xlu1 %499 }
  0xec   :  { %933 = vperm.xlu1 %3883, %v4426_v39   ;;  %v265_v29 = vmul.f32 %v4717_v27, %v4643_v1 }
  0xed   :  { %985 = vperm.xlu0 %3917, %v4327_v22  }
  0xef   :  { %v109_v14 = vpop.permute.xlu0 %108  ;;  %v4650_v6 = vpop.permute.xlu1 %503 }
  0xf0   :  { %3885 = vset.pattern.permute.xlu1 %v6337_v13 }
  0xf1   :  { %744 = vperm.xlu1 %3885, %v4377_v33   ;;  %997 = vperm.xlu0 %3917, %v4493_v58  }
  0xf3   :  { %v4655_v8 = vpop.permute.xlu0 %123 }
  0xf4   :  { %v4657_v35 = vpop.permute.xlu1 %889 }
  0xf5   :  { %748 = vperm.xlu1 %3885, %v4286_v15   ;;  %3919 = vset.pattern.permute.xlu0 %v6337_v13 }
  0xf6   :  { %800 = vperm.xlu0 %3919, %v4493_v58  }
  0xf7   :  { %v4662_v39 = vpop.permute.xlu0 %133 }
  0xf9   :  { %3886 = vset.pattern.permute.xlu1 %v6341_v24  ;;  %v4668_v62 = vpop.permute.xlu1 %696 }
  0xfa   :  { %384 = vperm.xlu1 %3886, %v53_v61   ;;  %812 = vperm.xlu0 %3919, %v4349_v26  }
  0xfb   :  { %v4671_v17 = vpop.permute.xlu0 %143 }
  0xfe   :  { %3887 = vset.pattern.permute.xlu1 %v6345_v12  ;;  %v4674_v30 = vpop.permute.xlu1 %507  ;;  %3923 = vset.pattern.permute.xlu0 %v6341_v24 }
  0xff   :  { %v4677_v59 = vpop.permute.xlu0 %153  ;;  %555 = vperm.xlu1 %3887, %v4343_v25  }
 0x102   :  { %v512_v58 = vpop.permute.xlu1 %511 }
 0x103   :  { %v4680_v38 = vpop.permute.xlu0 %163  ;;  %3888 = vset.pattern.permute.xlu1 %v6343_v16 }
 0x104   :  { %6347 = vst [vmem:[#allocation38_spill] sm:$0xff] %v4680_v38  ;;  %941 = vperm.xlu1 %3888, %v4377_v33   ;;  %v54_v33 = vld [vmem:[%s6287_s2 + $0x90] sm:$0xff] }
 0x107   :  { %v4684_v26 = vpop.permute.xlu0 %173  ;;  %v4686_v61 = vpop.permute.xlu1 %897 }
 0x108   :  { %6348 = vst [vmem:[#allocation39_spill] sm:$0xff] %v4684_v26  ;;  %945 = vperm.xlu1 %3888, %v4286_v15  }
 0x10b   :  { %v4689_v56 = vpop.permute.xlu0 %183 }
 0x10c   :  { %6349 = vst [vmem:[#allocation40_spill] sm:$0xff] %v4689_v56  ;;  %3889 = vset.pattern.permute.xlu1 %v6337_v13  ;;  %v4692_v4 = vpop.permute.xlu1 %704 }
 0x10d   :  { %756 = vperm.xlu1 %3889, %v4300_v18  }
 0x10f   :  { %v4695_v25 = vpop.permute.xlu0 %193 }
 0x110   :  { %6350 = vst [vmem:[#allocation41_spill] sm:$0xff] %v4695_v25 }
 0x111   :  { %3890 = vset.pattern.permute.xlu1 %v6341_v24  ;;  %v4701_v26 = vpop.permute.xlu1 %515 }
 0x112   :  { %389 = vperm.xlu1 %3890, %v54_v33   ;;  %v266_v33 = vmul.f32 %v4717_v27, %v109_v14 }
 0x113   :  { %v4703_v15 = vpop.permute.xlu0 %203 }
 0x114   :  { %6351 = vst [vmem:[#allocation42_spill] sm:$0xff] %v4703_v15 }
 0x115   :  { %v520_v56 = vpop.permute.xlu1 %519 }
 0x116   :  { %3891 = vset.pattern.permute.xlu1 %v6345_v12 }
 0x117   :  { %v4706_v55 = vpop.permute.xlu0 %213  ;;  %563 = vperm.xlu1 %3891, %v4451_v46  }
 0x118   :  { %6352 = vst [vmem:[#allocation43_spill] sm:$0xff] %v4706_v55 }
 0x11a   :  { %v4709_v22 = vpop.permute.xlu1 %905 }
 0x11b   :  { %v4711_v25 = vpop.permute.xlu0 %223  ;;  %567 = vperm.xlu1 %3891, %v4306_v19   ;;  %v458_v19 = vadd.f32 %v4567_v0, %v266_v33 }
 0x11c   :  { %6353 = vst [vmem:[#allocation44_spill] sm:$0xff] %v4711_v25  ;;  %v4729_v25 = vld [vmem:[%s6285_s0 + $0x1] ss:$0 sm:$0xff] }
 0x11f   :  { %v4720_v15 = vpop.permute.xlu0 %233  ;;  %3892 = vset.pattern.permute.xlu1 %v6343_v16  ;;  %v4723_v55 = vpop.permute.xlu1 %712 }
 0x120   :  { %6354 = vst [vmem:[#allocation45_spill] sm:$0xff] %v4720_v15  ;;  %953 = vperm.xlu1 %3892, %v4300_v18   ;;  %v623_v15 = vmul.f32 %v4729_v25, %v4630_v5  ;;  %v4743_v18 = vld [vmem:[%s6285_s0 + $0x2] ss:$0 sm:$0xff]  ;;  %v4755_v5 = vld [vmem:[%s6285_s0 + $0x3] ss:$0 sm:$0xff] }
 0x121   :  { %v820_v38 = vmul.f32 %v4743_v18, %v4488_v57  ;;  %v268_v57 = vmul.f32 %v4717_v27, %v4435_v42  ;;  %v1017_v1 = vmul.f32 %v4755_v5, %v4657_v35  ;;  %v57_v42 = vld [vmem:[%s6287_s2 + $0xa8] sm:$0xff]  ;;  %v1016_v35 = vmul.f32 %v4755_v5, %v4432_v41 }
 0x122   :  { %v655_v0 = vadd.f32 %v623_v15, %v458_v19  ;;  %v625_v15 = vmul.f32 %v4729_v25, %v4650_v6  ;;  %v622_v19 = vmul.f32 %v4729_v25, %v4590_v37  ;;  %v267_v6 = vmul.f32 %v4717_v27, %v4429_v40 }
 0x123   :  { %v4732_v53 = vpop.permute.xlu0 %243  ;;  %v819_v40 = vmul.f32 %v4743_v18, %v4637_v31  ;;  %v624_v41 = vmul.f32 %v4729_v25, %v4646_v3 }
 0x124   :  { %6355 = vst [vmem:[#allocation46_spill] sm:$0xff] %v4732_v53  ;;  %3893 = vset.pattern.permute.xlu1 %v6337_v13  ;;  %v4735_v14 = vpop.permute.xlu1 %523  ;;  %v56_v53 = vld [vmem:[%s6287_s2 + $0xa0] sm:$0xff]  ;;  %v852_v21 = vadd.f32 %v820_v38, %v655_v0  ;;  %v627_v38 = vmul.f32 %v4729_v25, %v512_v58  ;;  %v1018_v0 = vmul.f32 %v4755_v5, %v4439_v43 }
 0x125   :  { %760 = vperm.xlu1 %3893, %v4451_v46   ;;  %v1019_v58 = vmul.f32 %v4755_v5, %v4686_v61  ;;  %v269_v43 = vmul.f32 %v4717_v27, %v4655_v8  ;;  %v271_v8 = vmul.f32 %v4717_v27, %v4662_v39  ;;  %v826_v39 = vmul.f32 %v4743_v18, %v4519_v2 }
 0x127   :  { %v4747_v33 = vpop.permute.xlu0 %253 }
 0x128   :  { %6356 = vst [vmem:[#allocation47_spill] sm:$0xff] %v4747_v33  ;;  %v4759_v54 = vpop.permute.xlu1 %527  ;;  %v460_v33 = vadd.f32 %v4576_v10, %v268_v57 }
 0x129   :  { %3894 = vset.pattern.permute.xlu1 %v6341_v24 }
 0x12a   :  { %399 = vperm.xlu1 %3894, %v56_v53   ;;  %v822_v53 = vmul.f32 %v4743_v18, %v4500_v60  ;;  %v657_v10 = vadd.f32 %v625_v15, %v460_v33  ;;  %v462_v60 = vadd.f32 %v4585_v32, %v270_v34  ;;  %v629_v34 = vmul.f32 %v4729_v25, %v520_v56 }
 0x12b   :  { %v300_v23 = vpop.permute.xlu0 %299  ;;  %v821_v32 = vmul.f32 %v4743_v18, %v4668_v62 }
 0x12c   :  { %v457_v52 = vadd.f32 %v300_v23, %v265_v29  ;;  %v1049_v29 = vadd.f32 %v1017_v1, %v852_v21  ;;  %v659_v15 = vadd.f32 %v627_v38, %v462_v60  ;;  %v854_v47 = vadd.f32 %v822_v53, %v657_v10 }
 0x12d   :  { %v914_v37 = vpop.permute.xlu1 %913  ;;  %v464_v21 = vadd.f32 %v4593_v9, %v272_v44  ;;  %v626_v9 = vmul.f32 %v4729_v25, %v4674_v30  ;;  %v1020_v10 = vmul.f32 %v4755_v5, %v4445_v45  ;;  %v273_v30 = vmul.f32 %v4717_v27, %v4671_v17 }
 0x12e   :  { %v654_v23 = vadd.f32 %v622_v19, %v457_v52  ;;  %404 = vperm.xlu1 %3894, %v57_v42   ;;  %v824_v52 = vmul.f32 %v4743_v18, %v4511_v63  ;;  %v1051_v1 = vadd.f32 %v1019_v58, %v854_v47  ;;  %v1021_v63 = vmul.f32 %v4755_v5, %v4709_v22 }
 0x12f   :  { %v310_v33 = vpop.permute.xlu0 %309  ;;  %v1081_v42 = vmax.f32 %v1049_v29, 0.0  ;;  %v661_v38 = vadd.f32 %v629_v34, %v464_v21  ;;  %v823_v22 = vmul.f32 %v4743_v18, %v4692_v4  ;;  %v628_v29 = vmul.f32 %v4729_v25, %v4701_v26 }
 0x130   :  { %v851_v57 = vadd.f32 %v819_v40, %v654_v23  ;;  %v459_v31 = vadd.f32 %v310_v33, %v267_v6  ;;  %v1083_v60 = vmax.f32 %v1051_v1, 0.0  ;;  %v1023_v33 = vmul.f32 %v4755_v5, %v914_v37 }
 0x131   :  { %v1022_v17 = vmul.f32 %v4755_v5, %v4456_v48  ;;  %v274_v26 = vmul.f32 %v4717_v27, %v4460_v49  ;;  %v825_v37 = vmul.f32 %v4743_v18, %v4723_v55  ;;  %v630_v48 = vmul.f32 %v4729_v25, %v4735_v14 }
 0x132   :  { %v656_v61 = vadd.f32 %v624_v41, %v459_v31  ;;  %3895 = vset.pattern.permute.xlu1 %v6345_v12  ;;  %v721_v3 = vpop.permute.xlu1 %720  ;;  %v1048_v19 = vadd.f32 %v1016_v35, %v851_v57  ;;  %v856_v35 = vadd.f32 %v824_v52, %v659_v15  ;;  %v858_v57 = vadd.f32 %v826_v39, %v661_v38 }
 0x133   :  { %575 = vperm.xlu1 %3895, %v4313_v20   ;;  %v320_v56 = vpop.permute.xlu0 %319  ;;  %v466_v15 = vadd.f32 %v4602_v11, %v274_v26  ;;  %v1024_v55 = vmul.f32 %v4755_v5, %v4463_v50  ;;  %v827_v14 = vmul.f32 %v4743_v18, %v721_v3  ;;  %v59_v3 = vld [vmem:[%s6287_s2 + $0xb8] sm:$0xff] }
 0x134   :  { %v853_v62 = vadd.f32 %v821_v32, %v656_v61  ;;  %v461_v6 = vadd.f32 %v320_v56, %v269_v43  ;;  %v1080_v53 = vmax.f32 %v1048_v19, 0.0  ;;  %v1053_v58 = vadd.f32 %v1021_v63, %v856_v35 }
 0x135   :  { %v631_v43 = vmul.f32 %v4729_v25, %v4759_v54  ;;  %v1055_v21 = vadd.f32 %v1023_v33, %v858_v57  ;;  %v828_v19 = vmul.f32 %v4743_v18, %v4527_v7 }
 0x136   :  { %v658_v40 = vadd.f32 %v626_v9, %v461_v6  ;;  %v1176_v23 = vpack.c.bf16 %v1081_v42, %v1080_v53  ;;  %v1050_v44 = vadd.f32 %v1018_v0, %v853_v62  ;;  %v1085_v47 = vmax.f32 %v1053_v58, 0.0 }
 0x137   :  { %3896 = vset.pattern.permute.xlu1 %v6343_v16  ;;  %v4821_v45 = vpop.permute.xlu1 %531  ;;  %v330_v2 = vpop.permute.xlu0 %329  ;;  %v663_v11 = vadd.f32 %v631_v43, %v466_v15  ;;  %v1087_v56 = vmax.f32 %v1055_v21, 0.0 }
 0x138   :  { %v855_v41 = vadd.f32 %v823_v22, %v658_v40  ;;  %v463_v4 = vadd.f32 %v330_v2, %v271_v8  ;;  %957 = vperm.xlu1 %3896, %v4451_v46   ;;  %1897 = vmatpush1.bf16.msra.mxu0 %v1176_v23  ;;  %v1082_v0 = vmax.f32 %v1050_v44, 0.0  ;;  %v275_v22 = vmul.f32 %v4717_v27, %v4677_v59  ;;  %v6357_v2 = vld [vmem:[#allocation32_spill] sm:$0xff] }
 0x139   :  { %1898 = vmatprep.subr.bf16.mxu0 %v6341_v24  ;;  %v860_v6 = vadd.f32 %v828_v19, %v663_v11  ;;  %v6363_v19 = vld [vmem:[#allocation38_spill] sm:$0xff] }
 0x13a   :  { %v660_v31 = vadd.f32 %v628_v29, %v463_v4  ;;  %v1177_v52 = vpack.c.bf16 %v1083_v60, %v1082_v0  ;;  %v1052_v46 = vadd.f32 %v1020_v10, %v855_v41  ;;  %v276_v60 = vmul.f32 %v4717_v27, %v4466_v51  ;;  %v6358_v0 = vld [vmem:[#allocation9_spill] sm:$0xff] }
 0x13b   :  { %v536_v34 = vpop.permute.xlu1 %535  ;;  %v340_v49 = vpop.permute.xlu0 %339  ;;  %v632_v29 = vmul.f32 %v4729_v25, %v4821_v45  ;;  %v277_v11 = vmul.f32 %v4717_v27, %v6363_v19 }
 0x13c   :  { %v857_v32 = vadd.f32 %v825_v37, %v660_v31  ;;  %v465_v54 = vadd.f32 %v340_v49, %v273_v30  ;;  %3897 = vset.pattern.permute.xlu1 %v6337_v13  ;;  %1899 = vmatpush1.bf16.msra.mxu0 %v1177_v52  ;;  %v1084_v61 = vmax.f32 %v1052_v46, 0.0  ;;  %v633_v59 = vmul.f32 %v4729_v25, %v536_v34 }
 0x13d   :  { %768 = vperm.xlu1 %3897, %v4390_v36   ;;  %1900 = vmatprep.subr.bf16.mxu0 %v6341_v24  ;;  %v468_v33 = vadd.f32 %v6357_v2, %v276_v60  ;;  %v62_v2 = vld [vmem:[%s6287_s2 + $0xd0] sm:$0xff] }
 0x13e   :  { %v662_v8 = vadd.f32 %v630_v48, %v465_v54  ;;  %v1178_v1 = vpack.c.bf16 %v1085_v47, %v1084_v61  ;;  %v1054_v63 = vadd.f32 %v1022_v17, %v857_v32  ;;  %v1026_v17 = vmul.f32 %v4755_v5, %v6358_v0  ;;  %v6360_v48 = vld [vmem:[#allocation6_spill] sm:$0xff]  ;;  %v63_v0 = vld [vmem:[%s6287_s2 + $0xd8] sm:$0xff] }
 0x13f   :  { %v350_v40 = vpop.permute.xlu0 %349  ;;  %v665_v51 = vadd.f32 %v633_v59, %v468_v33  ;;  %v6362_v61 = vld [vmem:[#allocation34_spill] sm:$0xff]  ;;  %v1195_v33 = vld [vmem:[%s6289_s4 + $0x18] sm:$0xff] }
 0x140   :  { %v859_v42 = vadd.f32 %v827_v14, %v662_v8  ;;  %v922_v9 = vpop.permute.xlu1 %921  ;;  %1901 = vmatpush1.bf16.msra.mxu0 %v1178_v1  ;;  %v1086_v62 = vmax.f32 %v1054_v63, 0.0  ;;  %v467_v44 = vadd.f32 %v350_v40, %v275_v22  ;;  %v6364_v14 = vld [vmem:[#allocation10_spill] sm:$0xff]  ;;  %v6365_v8 = vld [vmem:[#allocation23_spill] sm:$0xff] }
 0x141   :  { %v1025_v50 = vmul.f32 %v4755_v5, %v922_v9  ;;  %772 = vperm.xlu1 %3897, %v4313_v20   ;;  %1902 = vmatprep.subr.bf16.mxu0 %v6341_v24  ;;  %v832_v1 = vmul.f32 %v4743_v18, %v6365_v8 }
 0x142   :  { %v1179_v7 = vpack.c.bf16 %v1087_v56, %v1086_v62  ;;  %v1056_v53 = vadd.f32 %v1024_v55, %v859_v42  ;;  %v664_v41 = vadd.f32 %v632_v29, %v467_v44 }
 0x143   :  { %v1057_v10 = vadd.f32 %v1025_v50, %v860_v6  ;;  %v360_v56 = vpop.permute.xlu0 %359  ;;  %v6366_v6 = vld [vmem:[#allocation7_spill] sm:$0xff]  ;;  %v1208_v50 = vld [vmem:[%s6289_s4 + $0x80] sm:$0xff] }
 0x144   :  { %1903 = vmatpush1.bf16.msra.mxu0 %v1179_v7  ;;  %v1088_v39 = vmax.f32 %v1056_v53, 0.0  ;;  %v469_v42 = vadd.f32 %v360_v56, %v277_v11  ;;  %1338 = vperm.xlu0 %3923, %v1208_v50  }
 0x145   :  { %v1089_v38 = vmax.f32 %v1057_v10, 0.0  ;;  %3898 = vset.pattern.permute.xlu1 %v6341_v24  ;;  %v729_v35 = vpop.permute.xlu1 %728  ;;  %1904 = vmatprep.subr.bf16.mxu0 %v6341_v24  ;;  %v6367_v10 = vld [vmem:[#allocation12_spill] sm:$0xff] }
 0x146   :  { %414 = vperm.xlu1 %3898, %v59_v3   ;;  %v829_v58 = vmul.f32 %v4743_v18, %v729_v35  ;;  %v1029_v3 = vmul.f32 %v4755_v5, %v6367_v10  ;;  %v1193_v35 = vld [vmem:[%s6289_s4 + $0x8] sm:$0xff] }
 0x147   :  { %v1180_v23 = vpack.c.bf16 %v1089_v38, %v1088_v39 }
 0x148   :  { %v861_v43 = vadd.f32 %v829_v58, %v664_v41  ;;  %1263 = vperm.xlu0 %3923, %v1193_v35   ;;  %v6372_v35 = vld [vmem:[#allocation40_spill] sm:$0xff] }
 0x149   :  { %1905 = vmatpush1.bf16.msra.mxu0 %v1180_v23 }
 0x14a   :  { %3899 = vset.pattern.permute.xlu1 %v6345_v12  ;;  %v540_v30 = vpop.permute.xlu1 %539  ;;  %1906 = vmatprep.subr.bf16.mxu0 %v6341_v24  ;;  %v1058_v57 = vadd.f32 %v1026_v17, %v861_v43  ;;  %v1213_v17 = vld [vmem:[%s6289_s4 + $0xa8] sm:$0xff] }
 0x14b   :  { %579 = vperm.xlu1 %3899, %v4359_v28   ;;  %v6359_v28 = vld [vmem:[#allocation21_spill] sm:$0xff]  ;;  %v634_v9 = vmul.f32 %v4729_v25, %v540_v30  ;;  %v1197_v43 = vld [vmem:[%s6289_s4 + $0x28] sm:$0xff] }
 0x14c   :  { %v830_v26 = vmul.f32 %v4743_v18, %v6359_v28  ;;  %v1090_v47 = vmax.f32 %v1058_v57, 0.0  ;;  %v1211_v30 = vld [vmem:[%s6289_s4 + $0x98] sm:$0xff] }
 0x14d   :  { %v666_v39 = vadd.f32 %v634_v9, %v469_v42  ;;  %1353 = vperm.xlu0 %3923, %v1211_v30  }
 0x14e   :  { %v544_v4 = vpop.permute.xlu1 %543  ;;  %v862_v37 = vadd.f32 %v830_v26, %v665_v51  ;;  %v6368_v26 = vld [vmem:[#allocation39_spill] sm:$0xff] }
 0x14f   :  { %3900 = vset.pattern.permute.xlu1 %v6343_v16  ;;  %v635_v32 = vmul.f32 %v4729_v25, %v544_v4  ;;  %v380_v4 = vpop.permute.xlu0 %379  ;;  %v279_v51 = vmul.f32 %v4717_v27, %v6368_v26  ;;  %v6376_v26 = vld [vmem:[#allocation31_spill] sm:$0xff] }
 0x150   :  { %965 = vperm.xlu1 %3900, %v4390_v36   ;;  %v60_v36 = vld [vmem:[%s6287_s2 + $0xc0] sm:$0xff] }
 0x151   :  { %1273 = vperm.xlu0 %3923, %v1195_v33  }
 0x153   :  { %v930_v45 = vpop.permute.xlu1 %929 }
 0x154   :  { %v1027_v31 = vmul.f32 %v4755_v5, %v930_v45  ;;  %969 = vperm.xlu1 %3900, %v4313_v20   ;;  %v6361_v20 = vld [vmem:[#allocation11_spill] sm:$0xff]  ;;  %v4932_v45 = vpop.permute.xlu0 %394 }
 0x155   :  { %v278_v21 = vmul.f32 %v4717_v27, %v6361_v20  ;;  %1363 = vperm.xlu0 %3923, %v1213_v17  }
 0x156   :  { %v1059_v52 = vadd.f32 %v1027_v31, %v862_v37  ;;  %v6369_v37 = vld [vmem:[#allocation30_spill] sm:$0xff] }
 0x157   :  { %v470_v55 = vadd.f32 %v6362_v61, %v278_v21  ;;  %v636_v31 = vmul.f32 %v4729_v25, %v6369_v37  ;;  %v1205_v37 = vld [vmem:[%s6289_s4 + $0x68] sm:$0xff] }
 0x158   :  { %v1091_v46 = vmax.f32 %v1059_v52, 0.0  ;;  %3901 = vset.pattern.permute.xlu1 %v6337_v13  ;;  %v737_v15 = vpop.permute.xlu1 %736 }
 0x159   :  { %780 = vperm.xlu1 %3901, %v6360_v48   ;;  %v667_v63 = vadd.f32 %v635_v32, %v470_v55  ;;  %v831_v53 = vmul.f32 %v4743_v18, %v737_v15  ;;  %1283 = vperm.xlu0 %3923, %v1197_v43   ;;  %v1215_v15 = vld [vmem:[%s6289_s4 + $0xb8] sm:$0xff] }
 0x15a   :  { %v1181_v34 = vpack.c.bf16 %v1091_v46, %v1090_v47  ;;  %v4940_v46 = vld [vmem:[%s6286_s1 + $0xd8] sm:$0xff] }
 0x15b   :  { %v864_v7 = vadd.f32 %v832_v1, %v667_v63  ;;  %v863_v22 = vadd.f32 %v831_v53, %v666_v39  ;;  %v6370_v47 = vld [vmem:[#allocation13_spill] sm:$0xff]  ;;  %v1217_v63 = vld [vmem:[%s6289_s4 + $0xc8] sm:$0xff] }
 0x15c   :  { %1907 = vmatpush1.bf16.msra.mxu0 %v1181_v34  ;;  %v1199_v32 = vld [vmem:[%s6289_s4 + $0x38] sm:$0xff]  ;;  %v65_v39 = vld [vmem:[%s6287_s2 + $0xe8] sm:$0xff] }
 0x15d   :  { %3902 = vset.pattern.permute.xlu1 %v6341_v24  ;;  %v370_v49 = vpop.permute.xlu1 %369  ;;  %1908 = vmatprep.subr.bf16.mxu0 %v6341_v24  ;;  %v1061_v23 = vadd.f32 %v1029_v3, %v864_v7 }
 0x15e   :  { %419 = vperm.xlu1 %3902, %v60_v36   ;;  %v471_v52 = vadd.f32 %v370_v49, %v279_v51  ;;  %1373 = vperm.xlu0 %3923, %v1215_v15   ;;  %v4950_v49 = vpop.permute.xlu0 %409  ;;  %v639_v51 = vmul.f32 %v4729_v25, %v6376_v26 }
 0x15f   :  { %v1093_v59 = vmax.f32 %v1061_v23, 0.0  ;;  %v1203_v23 = vld [vmem:[%s6289_s4 + $0x58] sm:$0xff] }
 0x160   :  { %v668_v20 = vadd.f32 %v636_v31, %v471_v52 }
 0x161   :  { %v4883_v54 = vpop.permute.xlu1 %374 }
 0x162   :  { %3903 = vset.pattern.permute.xlu1 %v6345_v12  ;;  %1293 = vperm.xlu0 %3923, %v1199_v32  }
 0x163   :  { %587 = vperm.xlu1 %3903, %v6364_v14  }
 0x166   :  { %v552_v62 = vpop.permute.xlu1 %551  ;;  %1383 = vperm.xlu0 %3923, %v1217_v63   ;;  %v1241_v63 = vld [vmem:[%s6289_s4 + $0x188] sm:$0xff] }
 0x167   :  { %591 = vperm.xlu1 %3903, %v6366_v6   ;;  %v637_v34 = vmul.f32 %v4729_v25, %v552_v62  ;;  %v6371_v62 = vld [vmem:[#allocation8_spill] sm:$0xff]  ;;  %v1201_v6 = vld [vmem:[%s6289_s4 + $0x48] sm:$0xff] }
 0x16a   :  { %1303 = vperm.xlu0 %3923, %v1201_v6  }
 0x16b   :  { %3904 = vset.pattern.permute.xlu1 %v6343_v16  ;;  %v934_v38 = vpop.permute.xlu1 %933 }
 0x16c   :  { %v1028_v40 = vmul.f32 %v4755_v5, %v934_v38  ;;  %977 = vperm.xlu1 %3904, %v6360_v48   ;;  %v280_v48 = vmul.f32 %v4717_v27, %v6370_v47  ;;  %v1219_v38 = vld [vmem:[%s6289_s4 + $0xd8] sm:$0xff]  ;;  %v4118_v47 = vld [vmem:[%s6286_s1 + $0xd0] sm:$0xff] }
 0x16e   :  { %v1060_v44 = vadd.f32 %v1028_v40, %v863_v22  ;;  %v472_v61 = vadd.f32 %v4883_v54, %v280_v48  ;;  %v4965_v54 = vpop.permute.xlu0 %424  ;;  %v281_v22 = vmul.f32 %v4717_v27, %v6372_v35  ;;  %1393 = vperm.xlu0 %3923, %v1219_v38  }
 0x170   :  { %v1092_v60 = vmax.f32 %v1060_v44, 0.0  ;;  %3905 = vset.pattern.permute.xlu1 %v6337_v13  ;;  %v745_v29 = vpop.permute.xlu1 %744  ;;  %v669_v11 = vadd.f32 %v637_v34, %v472_v61  ;;  %v473_v44 = vadd.f32 %v380_v4, %v281_v22  ;;  %v1223_v34 = vld [vmem:[%s6289_s4 + $0xf8] sm:$0xff]  ;;  %v6380_v22 = vld [vmem:[#allocation27_spill] sm:$0xff] }
 0x171   :  { %784 = vperm.xlu1 %3905, %v6364_v14   ;;  %v833_v36 = vmul.f32 %v4743_v18, %v745_v29  ;;  %v1207_v61 = vld [vmem:[%s6289_s4 + $0x78] sm:$0xff] }
 0x172   :  { %v1182_v58 = vpack.c.bf16 %v1093_v59, %v1092_v60  ;;  %v4972_v3 = vpop.permute.xlu0 %439  ;;  %1313 = vperm.xlu0 %3923, %v1203_v23   ;;  %v6373_v59 = vld [vmem:[#allocation14_spill] sm:$0xff]  ;;  %v838_v23 = vmul.f32 %v4743_v18, %v6380_v22 }
 0x173   :  { %v865_v8 = vadd.f32 %v833_v36, %v668_v20 }
 0x174   :  { %v749_v41 = vpop.permute.xlu1 %748  ;;  %1909 = vmatpush1.bf16.msra.mxu0 %v1182_v58  ;;  %v1221_v58 = vld [vmem:[%s6289_s4 + $0xe8] sm:$0xff] }
 0x175   :  { %3907 = vset.pattern.permute.xlu1 %v6341_v24  ;;  %1910 = vmatprep.subr.bf16.mxu0 %v6341_v24  ;;  %v834_v55 = vmul.f32 %v4743_v18, %v749_v41 }
 0x176   :  { %429 = vperm.xlu1 %3907, %v62_v2   ;;  %v4990_v60 = vpop.permute.xlu0 %454  ;;  %v6374_v2 = vld [vmem:[#allocation15_spill] sm:$0xff]  ;;  %1403 = vperm.xlu0 %3923, %v1221_v58  }
 0x177   :  { %v866_v56 = vadd.f32 %v834_v55, %v669_v11  ;;  %v282_v33 = vmul.f32 %v4717_v27, %v6374_v2 }
 0x179   :  { %v4925_v28 = vpop.permute.xlu1 %384 }
 0x17a   :  { %434 = vperm.xlu1 %3907, %v63_v0   ;;  %v950_v4 = vpop.permute.xlu0 %949  ;;  %v6375_v0 = vld [vmem:[#allocation25_spill] sm:$0xff]  ;;  %v474_v43 = vadd.f32 %v4925_v28, %v282_v33  ;;  %1323 = vperm.xlu0 %3923, %v1205_v37  }
 0x17b   :  { %v835_v17 = vmul.f32 %v4743_v18, %v6375_v0  ;;  %v1032_v52 = vmul.f32 %v4755_v5, %v950_v4  ;;  %v1245_v4 = vld [vmem:[%s6289_s4 + $0x1a8] sm:$0xff] }
 0x17c   :  { %v671_v48 = vadd.f32 %v639_v51, %v474_v43  ;;  %v1229_v51 = vld [vmem:[%s6289_s4 + $0x128] sm:$0xff] }
 0x17e   :  { %3908 = vset.pattern.permute.xlu1 %v6345_v12  ;;  %v556_v57 = vpop.permute.xlu1 %555  ;;  %1413 = vperm.xlu0 %3923, %v1223_v34   ;;  %v962_v35 = vpop.permute.xlu0 %961 }
 0x17f   :  { %599 = vperm.xlu1 %3908, %v4940_v46   ;;  %v638_v30 = vmul.f32 %v4729_v25, %v556_v57  ;;  %v1035_v2 = vmul.f32 %v4755_v5, %v962_v35 }
 0x181   :  { %v670_v41 = vadd.f32 %v638_v30, %v473_v44  ;;  %v1227_v30 = vld [vmem:[%s6289_s4 + $0x118] sm:$0xff] }
 0x182   :  { %1333 = vperm.xlu0 %3923, %v1207_v61   ;;  %v1192_v61 = vld [vmem:[%s6289_s4] sm:$0xff] }
 0x183   :  { %3909 = vset.pattern.permute.xlu1 %v6343_v16  ;;  %v942_v21 = vpop.permute.xlu1 %941  ;;  %v867_v31 = vadd.f32 %v835_v17, %v670_v41 }
 0x184   :  { %v1030_v19 = vmul.f32 %v4755_v5, %v942_v21  ;;  %981 = vperm.xlu1 %3909, %v6364_v14  }
 0x185   :  { %v1064_v36 = vadd.f32 %v1032_v52, %v867_v31  ;;  %v4121_v31 = vld [vmem:[%s6286_s1 + $0xf0] sm:$0xff] }
 0x186   :  { %v1062_v42 = vadd.f32 %v1030_v19, %v865_v8  ;;  %v4119_v8 = vld [vmem:[%s6286_s1 + $0xe8] sm:$0xff]  ;;  %1503 = vperm.xlu0 %3923, %v1241_v63  }
 0x187   :  { %v946_v1 = vpop.permute.xlu1 %945  ;;  %v1096_v55 = vmax.f32 %v1064_v36, 0.0  ;;  %v1249_v36 = vld [vmem:[%s6289_s4 + $0x1c8] sm:$0xff] }
 0x188   :  { %v1031_v9 = vmul.f32 %v4755_v5, %v946_v1  ;;  %3910 = vset.pattern.permute.xlu1 %v6337_v13  ;;  %v1094_v50 = vmax.f32 %v1062_v42, 0.0  ;;  %v1225_v42 = vld [vmem:[%s6289_s4 + $0x108] sm:$0xff] }
 0x189   :  { %792 = vperm.xlu1 %3910, %v6371_v62   ;;  %v3927_v63 = vld [vmem:[%s6288_s3 + $0x4] ss:$8 sps:$4 sm:$0xff]  }
 0x18a   :  { %v1063_v14 = vadd.f32 %v1031_v9, %v866_v56  ;;  %v6377_v9 = vld [vmem:[#allocation17_spill] sm:$0xff]  ;;  %1423 = vperm.xlu0 %3923, %v1225_v42   ;;  %1928 = vmatprep.mubr.bf16.mxu0 %v3927_v63 }
 0x18b   :  { %v284_v62 = vmul.f32 %v4717_v27, %v6377_v9  ;;  %v1251_v9 = vld [vmem:[%s6289_s4 + $0x1d8] sm:$0xff]  ;;  %v1200_v63 = vld [vmem:[%s6289_s4 + $0x40] sm:$0xff] }
 0x18c   :  { %v1095_v7 = vmax.f32 %v1063_v14, 0.0  ;;  %v757_v53 = vpop.permute.xlu1 %756 }
 0x18d   :  { %796 = vperm.xlu1 %3910, %v4940_v46   ;;  %v836_v15 = vmul.f32 %v4743_v18, %v757_v53  ;;  %v1243_v53 = vld [vmem:[%s6289_s4 + $0x198] sm:$0xff] }
 0x18e   :  { %v1183_v10 = vpack.c.bf16 %v1095_v7, %v1094_v50  ;;  %v476_v50 = vadd.f32 %v4932_v45, %v284_v62  ;;  %v6378_v7 = vld [vmem:[#allocation16_spill] sm:$0xff]  ;;  %1513 = vperm.xlu0 %3923, %v1243_v53  }
 0x18f   :  { %v868_v20 = vadd.f32 %v836_v15, %v671_v48  ;;  %v1247_v15 = vld [vmem:[%s6289_s4 + $0x1b8] sm:$0xff] }
 0x190   :  { %1911 = vmatpush1.bf16.msra.mxu0 %v1183_v10  ;;  %v6379_v10 = vld [vmem:[#allocation41_spill] sm:$0xff] }
 0x191   :  { %3911 = vset.pattern.permute.xlu1 %v6341_v24  ;;  %v4983_v40 = vpop.permute.xlu1 %389  ;;  %1912 = vmatprep.subr.bf16.mxu0 %v6341_v24 }
 0x192   :  { %444 = vperm.xlu1 %3911, %v65_v39   ;;  %v283_v39 = vmul.f32 %v4717_v27, %v6379_v10  ;;  %1433 = vperm.xlu0 %3923, %v1227_v30  }
 0x196   :  { %3912 = vset.pattern.permute.xlu1 %v6345_v12  ;;  %v564_v29 = vpop.permute.xlu1 %563  ;;  %1523 = vperm.xlu0 %3923, %v1245_v4   ;;  %v6384_v4 = vld [vmem:[#allocation43_spill] sm:$0xff] }
 0x197   :  { %603 = vperm.xlu1 %3912, %v6373_v59   ;;  %v640_v44 = vmul.f32 %v4729_v25, %v564_v29  ;;  %v475_v59 = vadd.f32 %v4983_v40, %v283_v39 }
 0x199   :  { %v672_v41 = vadd.f32 %v640_v44, %v475_v59 }
 0x19a   :  { %v568_v57 = vpop.permute.xlu1 %567  ;;  %1443 = vperm.xlu0 %3923, %v1229_v51  }
 0x19b   :  { %3914 = vset.pattern.permute.xlu1 %v6343_v16  ;;  %v641_v14 = vmul.f32 %v4729_v25, %v568_v57 }
 0x19c   :  { %989 = vperm.xlu1 %3914, %v4118_v47  }
 0x19d   :  { %v673_v38 = vadd.f32 %v641_v14, %v476_v50 }
 0x19e   :  { %1533 = vperm.xlu0 %3923, %v1247_v15   ;;  %v1198_v15 = vld [vmem:[%s6289_s4 + $0x30] sm:$0xff] }
 0x19f   :  { %v954_v28 = vpop.permute.xlu1 %953  ;;  %v870_v58 = vadd.f32 %v838_v23, %v673_v38  ;;  %v1235_v38 = vld [vmem:[%s6289_s4 + $0x158] sm:$0xff]  ;;  %v1194_v23 = vld [vmem:[%s6289_s4 + $0x10] sm:$0xff] }
 0x1a0   :  { %v1033_v21 = vmul.f32 %v4755_v5, %v954_v28  ;;  %993 = vperm.xlu1 %3914, %v4940_v46   ;;  %v66_v46 = vld [vmem:[%s6287_s2 + $0xf0] sm:$0xff]  ;;  %v6381_v28 = vld [vmem:[#allocation42_spill] sm:$0xff] }
 0x1a1   :  { %v1067_v0 = vadd.f32 %v1035_v2, %v870_v58  ;;  %v285_v34 = vmul.f32 %v4717_v27, %v6381_v28  ;;  %v1212_v58 = vld [vmem:[%s6289_s4 + $0xa0] sm:$0xff] }
 0x1a2   :  { %v1065_v32 = vadd.f32 %v1033_v21, %v868_v20 }
 0x1a3   :  { %v1099_v43 = vmax.f32 %v1067_v0, 0.0  ;;  %v287_v0 = vmul.f32 %v4717_v27, %v6384_v4 }
 0x1a4   :  { %v1097_v19 = vmax.f32 %v1065_v32, 0.0  ;;  %3915 = vset.pattern.permute.xlu1 %v6337_v13  ;;  %v761_v11 = vpop.permute.xlu1 %760  ;;  %v1233_v32 = vld [vmem:[%s6289_s4 + $0x148] sm:$0xff] }
 0x1a5   :  { %804 = vperm.xlu1 %3915, %v4119_v8   ;;  %v837_v33 = vmul.f32 %v4743_v18, %v761_v11  ;;  %v6383_v11 = vld [vmem:[#allocation18_spill] sm:$0xff]  ;;  %v479_v51 = vadd.f32 %v4950_v49, %v287_v0 }
 0x1a6   :  { %v1184_v1 = vpack.c.bf16 %v1097_v19, %v1096_v55  ;;  %v6382_v55 = vld [vmem:[#allocation33_spill] sm:$0xff] }
 0x1a7   :  { %v869_v17 = vadd.f32 %v837_v33, %v672_v41  ;;  %v642_v19 = vmul.f32 %v4729_v25, %v6382_v55  ;;  %v1237_v33 = vld [vmem:[%s6289_s4 + $0x168] sm:$0xff]  ;;  %v1196_v41 = vld [vmem:[%s6289_s4 + $0x20] sm:$0xff] }
 0x1a8   :  { %1913 = vmatpush1.bf16.msra.mxu0 %v1184_v1  ;;  %v1216_v55 = vld [vmem:[%s6289_s4 + $0xc0] sm:$0xff] }
 0x1a9   :  { %3916 = vset.pattern.permute.xlu1 %v6341_v24  ;;  %v5032_v56 = vpop.permute.xlu1 %399  ;;  %1914 = vmatprep.subr.bf16.mxu0 %v6341_v24 }
 0x1aa   :  { %449 = vperm.xlu1 %3916, %v66_v46   ;;  %v477_v21 = vadd.f32 %v5032_v56, %v285_v34 }
 0x1ac   :  { %v674_v56 = vadd.f32 %v642_v19, %v477_v21 }
 0x1ad   :  { %v5041_v6 = vpop.permute.xlu1 %404 }
 0x1ae   :  { %3918 = vset.pattern.permute.xlu1 %v6345_v12  ;;  %v4120_v12 = vld [vmem:[%s6286_s1 + $0xf8] sm:$0xff] }
 0x1af   :  { %611 = vperm.xlu1 %3918, %v6378_v7   ;;  %v1210_v7 = vld [vmem:[%s6289_s4 + $0x90] sm:$0xff] }
 0x1b2   :  { %v576_v45 = vpop.permute.xlu1 %575 }
 0x1b3   :  { %615 = vperm.xlu1 %3918, %v4120_v12   ;;  %v643_v1 = vmul.f32 %v4729_v25, %v576_v45  ;;  %v1253_v45 = vld [vmem:[%s6289_s4 + $0x1e8] sm:$0xff] }
 0x1b7   :  { %3920 = vset.pattern.permute.xlu1 %v6343_v16  ;;  %v958_v29 = vpop.permute.xlu1 %957 }
 0x1b8   :  { %v1034_v26 = vmul.f32 %v4755_v5, %v958_v29  ;;  %1001 = vperm.xlu1 %3920, %v4119_v8   ;;  %v286_v8 = vmul.f32 %v4717_v27, %v6383_v11  ;;  %v2348_v11 = vld [vmem:[%s6291_s6 + $0x18] sm:$0xff] }
 0x1ba   :  { %v1066_v40 = vadd.f32 %v1034_v26, %v869_v17  ;;  %v478_v62 = vadd.f32 %v5041_v6, %v286_v8  ;;  %v1255_v17 = vld [vmem:[%s6289_s4 + $0x1f8] sm:$0xff] }
 0x1bc   :  { %v1098_v57 = vmax.f32 %v1066_v40, 0.0  ;;  %3921 = vset.pattern.permute.xlu1 %v6337_v13  ;;  %v769_v37 = vpop.permute.xlu1 %768  ;;  %v1231_v13 = vld [vmem:[%s6289_s4 + $0x138] sm:$0xff]  ;;  %v675_v53 = vadd.f32 %v643_v1, %v478_v62  ;;  %v1214_v40 = vld [vmem:[%s6289_s4 + $0xb0] sm:$0xff] }
 0x1bd   :  { %808 = vperm.xlu1 %3921, %v4121_v31   ;;  %1453 = vperm.xlu0 %3923, %v1231_v13   ;;  %v839_v46 = vmul.f32 %v4743_v18, %v769_v37  ;;  %v6385_v37 = vld [vmem:[#allocation19_spill] sm:$0xff]  ;;  %v6386_v13 = vld [vmem:[#allocation28_spill] sm:$0xff] }
 0x1be   :  { %v1185_v52 = vpack.c.bf16 %v1099_v43, %v1098_v57  ;;  %v1239_v57 = vld [vmem:[%s6289_s4 + $0x178] sm:$0xff]  ;;  %v841_v28 = vmul.f32 %v4743_v18, %v6386_v13  ;;  %v2362_v13 = vld [vmem:[%s6291_s6 + $0x88] sm:$0xff] }
 0x1bf   :  { %v871_v10 = vadd.f32 %v839_v46, %v674_v56 }
 0x1c0   :  { %v773_v47 = vpop.permute.xlu1 %772  ;;  %1915 = vmatpush1.bf16.msra.mxu0 %v1185_v52 }
 0x1c1   :  { %3922 = vset.pattern.permute.xlu1 %v6343_v16  ;;  %1916 = vmatprep.subr.bf16.mxu0 %v6341_v24  ;;  %v1209_v16 = vld [vmem:[%s6289_s4 + $0x88] sm:$0xff]  ;;  %v840_v14 = vmul.f32 %v4743_v18, %v773_v47  ;;  %v974_v47 = vpop.permute.xlu0 %973 }
 0x1c2   :  { %1005 = vperm.xlu1 %3922, %v4121_v31   ;;  %1543 = vperm.xlu0 %3923, %v1249_v36   ;;  %v288_v31 = vmul.f32 %v4717_v27, %v6385_v37  ;;  %v2346_v36 = vld [vmem:[%s6291_s6 + $0x8] sm:$0xff]  ;;  %v1222_v37 = vld [vmem:[%s6289_s4 + $0xf0] sm:$0xff] }
 0x1c3   :  { %v872_v35 = vadd.f32 %v840_v14, %v675_v53  ;;  %v2352_v53 = vld [vmem:[%s6291_s6 + $0x38] sm:$0xff] }
 0x1c5   :  { %v5083_v48 = vpop.permute.xlu1 %414 }
 0x1c6   :  { %1009 = vperm.xlu1 %3922, %v4120_v12   ;;  %1463 = vperm.xlu0 %3923, %v1233_v32   ;;  %v480_v49 = vadd.f32 %v5083_v48, %v288_v31  ;;  %v1038_v32 = vmul.f32 %v4755_v5, %v974_v47  ;;  %v2360_v31 = vld [vmem:[%s6291_s6 + $0x78] sm:$0xff] }
 0x1ca   :  { %v580_v20 = vpop.permute.xlu1 %579  ;;  %3924 = vset.pattern.permute.xlu1 %v6341_v24  ;;  %1553 = vperm.xlu0 %3923, %v1251_v9  }
 0x1cb   :  { %1343 = vperm.xlu1 %3924, %v1209_v16   ;;  %v644_v26 = vmul.f32 %v4729_v25, %v580_v20  ;;  %v6387_v16 = vld [vmem:[#allocation35_spill] sm:$0xff] }
 0x1cc   :  { %v645_v20 = vmul.f32 %v4729_v25, %v6387_v16 }
 0x1cd   :  { %v676_v52 = vadd.f32 %v644_v26, %v479_v51 }
 0x1ce   :  { %1473 = vperm.xlu0 %3923, %v1235_v38   ;;  %v677_v48 = vadd.f32 %v645_v20, %v480_v49  ;;  %v2354_v38 = vld [vmem:[%s6291_s6 + $0x48] sm:$0xff]  ;;  %v2364_v20 = vld [vmem:[%s6291_s6 + $0x98] sm:$0xff] }
 0x1cf   :  { %v966_v42 = vpop.permute.xlu1 %965  ;;  %1258 = vperm.xlu1 %3924, %v1192_v61   ;;  %v873_v21 = vadd.f32 %v841_v28, %v676_v52 }
 0x1d0   :  { %v1036_v50 = vmul.f32 %v4755_v5, %v966_v42  ;;  %v2350_v42 = vld [vmem:[%s6291_s6 + $0x28] sm:$0xff] }
 0x1d1   :  { %v1070_v8 = vadd.f32 %v1038_v32, %v873_v21 }
 0x1d2   :  { %v1068_v6 = vadd.f32 %v1036_v50, %v871_v10  ;;  %1563 = vperm.xlu0 %3923, %v1253_v45   ;;  %v1218_v50 = vld [vmem:[%s6289_s4 + $0xd0] sm:$0xff] }
 0x1d3   :  { %v970_v39 = vpop.permute.xlu1 %969  ;;  %1348 = vperm.xlu1 %3924, %v1210_v7   ;;  %v1102_v9 = vmax.f32 %v1070_v8, 0.0  ;;  %v1202_v10 = vld [vmem:[%s6289_s4 + $0x50] sm:$0xff]  ;;  %v2368_v8 = vld [vmem:[%s6291_s6 + $0xb8] sm:$0xff] }
 0x1d4   :  { %v1037_v22 = vmul.f32 %v4755_v5, %v970_v39  ;;  %v1100_v12 = vmax.f32 %v1068_v6, 0.0 }
 0x1d6   :  { %v1069_v44 = vadd.f32 %v1037_v22, %v872_v35  ;;  %1483 = vperm.xlu0 %3923, %v1237_v33   ;;  %v6388_v35 = vld [vmem:[#allocation20_spill] sm:$0xff] }
 0x1d7   :  { %1268 = vperm.xlu1 %3924, %v1194_v23   ;;  %v290_v6 = vmul.f32 %v4717_v27, %v6388_v35  ;;  %v1220_v23 = vld [vmem:[%s6289_s4 + $0xe0] sm:$0xff] }
 0x1d8   :  { %v1101_v30 = vmax.f32 %v1069_v44, 0.0  ;;  %v781_v59 = vpop.permute.xlu1 %780 }
 0x1d9   :  { %v842_v61 = vmul.f32 %v4743_v18, %v781_v59  ;;  %v482_v45 = vadd.f32 %v4965_v54, %v290_v6  ;;  %v1204_v59 = vld [vmem:[%s6289_s4 + $0x60] sm:$0xff] }
 0x1da   :  { %v1186_v2 = vpack.c.bf16 %v1101_v30, %v1100_v12  ;;  %1573 = vperm.xlu0 %3923, %v1255_v17   ;;  %v2356_v12 = vld [vmem:[%s6291_s6 + $0x58] sm:$0xff]  ;;  %v2358_v17 = vld [vmem:[%s6291_s6 + $0x68] sm:$0xff] }
 0x1db   :  { %1358 = vperm.xlu1 %3924, %v1212_v58   ;;  %v874_v1 = vadd.f32 %v842_v61, %v677_v48  ;;  %v986_v58 = vpop.permute.xlu0 %985  ;;  %v1224_v61 = vld [vmem:[%s6289_s4 + $0x100] sm:$0xff]  ;;  %v1242_v48 = vld [vmem:[%s6289_s4 + $0x190] sm:$0xff] }
 0x1dc   :  { %1917 = vmatpush1.bf16.msra.mxu0 %v1186_v2  ;;  %v6389_v2 = vld [vmem:[#allocation29_spill] sm:$0xff]  ;;  %v1041_v51 = vmul.f32 %v4755_v5, %v986_v58  ;;  %v5308_v58 = vld [vmem:[%s6285_s0 + $0x3] ss:$0 sm:$0xff] }
 0x1dd   :  { %v5138_v29 = vpop.permute.xlu1 %419  ;;  %1918 = vmatprep.subr.bf16.mxu0 %v6341_v24  ;;  %v844_v33 = vmul.f32 %v4743_v18, %v6389_v2 }
 0x1de   :  { %1493 = vperm.xlu0 %3923, %v1239_v57  }
 0x1df   :  { %1278 = vperm.xlu1 %3924, %v1196_v41   ;;  %v6390_v41 = vld [vmem:[#allocation44_spill] sm:$0xff] }
 0x1e0   :  { %v289_v4 = vmul.f32 %v4717_v27, %v6390_v41 }
 0x1e2   :  { %v588_v43 = vpop.permute.xlu1 %587  ;;  %2384 = vperm.xlu0 %3923, %v2346_v36   ;;  %v481_v26 = vadd.f32 %v5138_v29, %v289_v4 }
 0x1e3   :  { %1368 = vperm.xlu1 %3924, %v1214_v40   ;;  %v646_v54 = vmul.f32 %v4729_v25, %v588_v43 }
 0x1e5   :  { %v678_v27 = vadd.f32 %v646_v54, %v481_v26 }
 0x1e6   :  { %v592_v34 = vpop.permute.xlu1 %591  ;;  %2394 = vperm.xlu0 %3923, %v2348_v11  }
 0x1e7   :  { %1288 = vperm.xlu1 %3924, %v1198_v15   ;;  %v647_v22 = vmul.f32 %v4729_v25, %v592_v34  ;;  %v5226_v25 = vpop.permute.xlu0 %997 }
 0x1e9   :  { %v679_v30 = vadd.f32 %v647_v22, %v482_v45  ;;  %v2372_v45 = vld [vmem:[%s6291_s6 + $0xd8] sm:$0xff] }
 0x1ea   :  { %2404 = vperm.xlu0 %3923, %v2350_v42  }
 0x1eb   :  { %v978_v19 = vpop.permute.xlu1 %977  ;;  %1378 = vperm.xlu1 %3924, %v1216_v55   ;;  %v876_v40 = vadd.f32 %v844_v33, %v679_v30  ;;  %v5238_v36 = vpop.permute.xlu0 %800  ;;  %v2366_v55 = vld [vmem:[%s6291_s6 + $0xa8] sm:$0xff]  ;;  %v1228_v33 = vld [vmem:[%s6289_s4 + $0x120] sm:$0xff] }
 0x1ec   :  { %v1039_v46 = vmul.f32 %v4755_v5, %v978_v19 }
 0x1ed   :  { %v1073_v29 = vadd.f32 %v1041_v51, %v876_v40  ;;  %v1246_v51 = vld [vmem:[%s6289_s4 + $0x1b0] sm:$0xff] }
 0x1ee   :  { %v1071_v56 = vadd.f32 %v1039_v46, %v874_v1  ;;  %2414 = vperm.xlu0 %3923, %v2352_v53   ;;  %v1226_v1 = vld [vmem:[%s6289_s4 + $0x110] sm:$0xff]  ;;  %v5271_v46 = vld [vmem:[%s6285_s0] ss:$0 sm:$0xff] }
 0x1ef   :  { %1298 = vperm.xlu1 %3924, %v1200_v63   ;;  %v1105_v28 = vmax.f32 %v1073_v29, 0.0  ;;  %v5246_v32 = vpop.permute.xlu0 %812  ;;  %v6391_v63 = vld [vmem:[#allocation45_spill] sm:$0xff] }
 0x1f0   :  { %v1103_v62 = vmax.f32 %v1071_v56, 0.0  ;;  %v785_v14 = vpop.permute.xlu1 %784  ;;  %v291_v56 = vmul.f32 %v5271_v46, %v6391_v63 }
 0x1f1   :  { %v843_v57 = vmul.f32 %v4743_v18, %v785_v14  ;;  %v1206_v18 = vld [vmem:[%s6289_s4 + $0x70] sm:$0xff] }
 0x1f2   :  { %v1187_v7 = vpack.c.bf16 %v1103_v62, %v1102_v9  ;;  %2424 = vperm.xlu0 %3923, %v2354_v38   ;;  %v2370_v62 = vld [vmem:[%s6291_s6 + $0xc8] sm:$0xff]  ;;  %v6393_v38 = vld [vmem:[#allocation36_spill] sm:$0xff] }
 0x1f3   :  { %1388 = vperm.xlu1 %3924, %v1218_v50   ;;  %v875_v52 = vadd.f32 %v843_v57, %v678_v27  ;;  %v5258_v19 = vpop.permute.xlu0 %1338  ;;  %v1244_v50 = vld [vmem:[%s6289_s4 + $0x1a0] sm:$0xff]  ;;  %v3213_v27 = vld [vmem:[%s6292_s7 + $0x10] sm:$0xff] }
 0x1f4   :  { %1919 = vmatpush1.bf16.msra.mxu0 %v1187_v7  ;;  %v6392_v7 = vld [vmem:[#allocation22_spill] sm:$0xff] }
 0x1f5   :  { %v5191_v39 = vpop.permute.xlu1 %429  ;;  %1920 = vmatprep.subr.bf16.mxu0 %v6341_v24  ;;  %v292_v53 = vmul.f32 %v5271_v46, %v6392_v7 }
 0x1f6   :  { %2434 = vperm.xlu0 %3923, %v2356_v12   ;;  %v483_v14 = vadd.f32 %v5191_v39, %v291_v56  ;;  %v5297_v39 = vld [vmem:[%s6285_s0 + $0x2] ss:$0 sm:$0xff] }
 0x1f7   :  { %1308 = vperm.xlu1 %3924, %v1202_v10   ;;  %v5275_v9 = vpop.permute.xlu0 %1263  ;;  %v5289_v10 = vld [vmem:[%s6285_s0 + $0x1] ss:$0 sm:$0xff]  ;;  %v847_v56 = vmul.f32 %v5297_v39, %v5238_v36 }
 0x1f8   :  { %v648_v35 = vmul.f32 %v5289_v10, %v6393_v38 }
 0x1f9   :  { %v5203_v44 = vpop.permute.xlu1 %434 }
 0x1fa   :  { %2444 = vperm.xlu0 %3923, %v2358_v17   ;;  %v680_v12 = vadd.f32 %v648_v35, %v483_v14  ;;  %v484_v30 = vadd.f32 %v5203_v44, %v292_v53  ;;  %v3211_v44 = vld [vmem:[%s6292_s7] sm:$0xff]  ;;  %v3221_v14 = vld [vmem:[%s6292_s7 + $0x50] sm:$0xff]  ;;  %v1044_v53 = vmul.f32 %v5308_v58, %v5226_v25 }
 0x1fb   :  { %1398 = vperm.xlu1 %3924, %v1220_v23   ;;  %v5314_v41 = vpop.permute.xlu0 %1353  ;;  %v1234_v35 = vld [vmem:[%s6289_s4 + $0x150] sm:$0xff] }
 0x1fe   :  { %v600_v0 = vpop.permute.xlu1 %599  ;;  %2454 = vperm.xlu0 %3923, %v2360_v31  }
 0x1ff   :  { %1318 = vperm.xlu1 %3924, %v1204_v59   ;;  %v649_v6 = vmul.f32 %v5289_v10, %v600_v0 }
 0x201   :  { %v681_v4 = vadd.f32 %v649_v6, %v484_v30  ;;  %v1252_v30 = vld [vmem:[%s6289_s4 + $0x1e0] sm:$0xff] }
 0x202   :  { %2464 = vperm.xlu0 %3923, %v2362_v13  }
 0x203   :  { %v982_v43 = vpop.permute.xlu1 %981  ;;  %1408 = vperm.xlu1 %3924, %v1222_v37   ;;  %v5323_v37 = vpop.permute.xlu0 %1273 }
 0x204   :  { %v1040_v15 = vmul.f32 %v4755_v5, %v982_v43  ;;  %v1240_v5 = vld [vmem:[%s6289_s4 + $0x180] sm:$0xff] }
 0x206   :  { %v1072_v47 = vadd.f32 %v1040_v15, %v875_v52  ;;  %2474 = vperm.xlu0 %3923, %v2364_v20   ;;  %v1230_v52 = vld [vmem:[%s6289_s4 + $0x130] sm:$0xff]  ;;  %v1232_v20 = vld [vmem:[%s6289_s4 + $0x140] sm:$0xff] }
 0x207   :  { %1328 = vperm.xlu1 %3924, %v1206_v18   ;;  %v3215_v18 = vld [vmem:[%s6292_s7 + $0x20] sm:$0xff]  ;;  %v5337_v13 = vpop.permute.xlu0 %1363 }
 0x208   :  { %v1104_v49 = vmax.f32 %v1072_v47, 0.0  ;;  %v793_v34 = vpop.permute.xlu1 %792  ;;  %v1248_v47 = vld [vmem:[%s6289_s4 + $0x1c0] sm:$0xff] }
 0x209   :  { %v845_v22 = vmul.f32 %v5297_v39, %v793_v34 }
 0x20a   :  { %v1188_v16 = vpack.c.bf16 %v1105_v28, %v1104_v49  ;;  %2484 = vperm.xlu0 %3923, %v2366_v55   ;;  %v6394_v49 = vld [vmem:[#allocation46_spill] sm:$0xff] }
 0x20b   :  { %1498 = vperm.xlu1 %3924, %v1240_v5   ;;  %v877_v54 = vadd.f32 %v845_v22, %v680_v12  ;;  %v293_v34 = vmul.f32 %v5271_v46, %v6394_v49  ;;  %v3217_v5 = vld [vmem:[%s6292_s7 + $0x30] sm:$0xff]  ;;  %v5350_v55 = vpop.permute.xlu0 %1283 }
 0x20c   :  { %v797_v21 = vpop.permute.xlu1 %796  ;;  %1921 = vmatpush1.bf16.msra.mxu0 %v1188_v16 }
 0x20d   :  { %1922 = vmatprep.subr.bf16.mxu0 %v6341_v24  ;;  %v846_v59 = vmul.f32 %v5297_v39, %v797_v21  ;;  %v485_v21 = vadd.f32 %v4972_v3, %v293_v34  ;;  %v850_v34 = vmul.f32 %v5297_v39, %v5246_v32  ;;  %v3231_v32 = vld [vmem:[%s6292_s7 + $0xa0] sm:$0xff] }
 0x20e   :  { %2494 = vperm.xlu0 %3923, %v2368_v8   ;;  %v6395_v8 = vld [vmem:[#allocation24_spill] sm:$0xff] }
 0x20f   :  { %1418 = vperm.xlu1 %3924, %v1224_v61   ;;  %v878_v17 = vadd.f32 %v846_v59, %v681_v4 }
 0x211   :  { %v5260_v11 = vpop.permute.xlu1 %444 }
 0x212   :  { %2504 = vperm.xlu0 %3923, %v2370_v62  }
 0x213   :  { %1508 = vperm.xlu1 %3924, %v1242_v48   ;;  %v3219_v48 = vld [vmem:[%s6292_s7 + $0x40] sm:$0xff] }
 0x216   :  { %v604_v42 = vpop.permute.xlu1 %603  ;;  %2514 = vperm.xlu0 %3923, %v2372_v45  }
 0x217   :  { %1428 = vperm.xlu1 %3924, %v1226_v1   ;;  %v650_v16 = vmul.f32 %v5289_v10, %v604_v42  ;;  %v294_v1 = vmul.f32 %v5271_v46, %v6395_v8  ;;  %v1250_v42 = vld [vmem:[%s6289_s4 + $0x1d0] sm:$0xff]  ;;  %v2345_v8 = vld [vmem:[%s6291_s6] sm:$0xff] }
 0x219   :  { %v682_v63 = vadd.f32 %v650_v16, %v485_v21  ;;  %v486_v3 = vadd.f32 %v5260_v11, %v294_v1  ;;  %v5374_v11 = vpop.permute.xlu0 %1373  ;;  %v1238_v16 = vld [vmem:[%s6289_s4 + $0x170] sm:$0xff] }
 0x21a   :  { %3245 = vperm.xlu0 %3923, %v3211_v44   ;;  %v1236_v44 = vld [vmem:[%s6289_s4 + $0x160] sm:$0xff] }
 0x21b   :  { %v990_v23 = vpop.permute.xlu1 %989  ;;  %1518 = vperm.xlu1 %3924, %v1244_v50   ;;  %v6396_v50 = vld [vmem:[#allocation37_spill] sm:$0xff]  ;;  %v879_v36 = vadd.f32 %v847_v56, %v682_v63 }
 0x21c   :  { %v1042_v2 = vmul.f32 %v5308_v58, %v990_v23  ;;  %v651_v7 = vmul.f32 %v5289_v10, %v6396_v50  ;;  %v3223_v23 = vld [vmem:[%s6292_s7 + $0x60] sm:$0xff] }
 0x21d   :  { %v1076_v45 = vadd.f32 %v1044_v53, %v879_v36  ;;  %v3235_v50 = vld [vmem:[%s6292_s7 + $0xc0] sm:$0xff]  ;;  %v2374_v36 = vld [vmem:[%s6291_s6 + $0xe8] sm:$0xff] }
 0x21e   :  { %v1074_v26 = vadd.f32 %v1042_v2, %v877_v54  ;;  %3255 = vperm.xlu0 %3923, %v3213_v27   ;;  %v683_v6 = vadd.f32 %v651_v7, %v486_v3  ;;  %v5383_v2 = vpop.permute.xlu0 %1293  ;;  %v2349_v7 = vld [vmem:[%s6291_s6 + $0x20] sm:$0xff] }
 0x21f   :  { %v994_v0 = vpop.permute.xlu1 %993  ;;  %1438 = vperm.xlu1 %3924, %v1228_v33   ;;  %v3225_v33 = vld [vmem:[%s6292_s7 + $0x70] sm:$0xff] }
 0x220   :  { %v1043_v40 = vmul.f32 %v5308_v58, %v994_v0  ;;  %v1106_v43 = vmax.f32 %v1074_v26, 0.0  ;;  %v1108_v0 = vmax.f32 %v1076_v45, 0.0 }
 0x222   :  { %v1075_v57 = vadd.f32 %v1043_v40, %v878_v17  ;;  %3265 = vperm.xlu0 %3923, %v3215_v18   ;;  %v6397_v17 = vld [vmem:[#allocation26_spill] sm:$0xff]  ;;  %v6398_v40 = vld [vmem:[#allocation47_spill] sm:$0xff]  ;;  %v5405_v18 = vpop.permute.xlu0 %1383 }
 0x223   :  { %1528 = vperm.xlu1 %3924, %v1246_v51   ;;  %v296_v26 = vmul.f32 %v5271_v46, %v6397_v17  ;;  %v295_v51 = vmul.f32 %v5271_v46, %v6398_v40  ;;  %v1254_v46 = vld [vmem:[%s6289_s4 + $0x1f0] sm:$0xff]  ;;  %v3937_v40 = vld [vmem:[%s6288_s3 + $0x44] ss:$8 sps:$4 sm:$0xff]  }
 0x224   :  { %v1107_v31 = vmax.f32 %v1075_v57, 0.0  ;;  %v805_v29 = vpop.permute.xlu1 %804 }
 0x225   :  { %v848_v38 = vmul.f32 %v5297_v39, %v805_v29  ;;  %v488_v29 = vadd.f32 %v4990_v60, %v296_v26  ;;  %v3936_v26 = vld [vmem:[%s6288_s3 + $0x30] ss:$8 sps:$4 sm:$0xff]  }
 0x226   :  { %v1189_v15 = vpack.c.bf16 %v1107_v31, %v1106_v43  ;;  %3275 = vperm.xlu0 %3923, %v3217_v5   ;;  %v3227_v31 = vld [vmem:[%s6292_s7 + $0x80] sm:$0xff] }
 0x227   :  { %1448 = vperm.xlu1 %3924, %v1230_v52   ;;  %v880_v12 = vadd.f32 %v848_v38, %v683_v6  ;;  %v2351_v38 = vld [vmem:[%s6291_s6 + $0x30] sm:$0xff]  ;;  %v3931_v6 = vld [vmem:[%s6288_s3 + $0x24] ss:$8 sps:$4 sm:$0xff]  }
 0x228   :  { %1923 = vmatpush1.bf16.msra.mxu0 %v1189_v15 }
 0x229   :  { %v450_v28 = vpop.permute.xlu1 %449  ;;  %1924 = vmatprep.subr.bf16.mxu0 %v6341_v24 }
 0x22a   :  { %3285 = vperm.xlu0 %3923, %v3219_v48   ;;  %v487_v52 = vadd.f32 %v450_v28, %v295_v51  ;;  %v3229_v28 = vld [vmem:[%s6292_s7 + $0x90] sm:$0xff]  ;;  %v5418_v48 = vpop.permute.xlu0 %1303  ;;  %v2361_v51 = vld [vmem:[%s6291_s6 + $0x80] sm:$0xff] }
 0x22b   :  { %1538 = vperm.xlu1 %3924, %v1248_v47  }
 0x22e   :  { %v612_v61 = vpop.permute.xlu1 %611  ;;  %3295 = vperm.xlu0 %3923, %v3221_v14   ;;  %v5432_v3 = vpop.permute.xlu0 %1393  ;;  %v3928_v14 = vld [vmem:[%s6288_s3 + $0x14] ss:$8 sps:$4 sm:$0xff]  }
 0x22f   :  { %1458 = vperm.xlu1 %3924, %v1232_v20   ;;  %v652_v57 = vmul.f32 %v5289_v10, %v612_v61 }
 0x231   :  { %v684_v47 = vadd.f32 %v652_v57, %v487_v52  ;;  %v2363_v57 = vld [vmem:[%s6291_s6 + $0x90] sm:$0xff] }
 0x232   :  { %v616_v62 = vpop.permute.xlu1 %615  ;;  %3305 = vperm.xlu0 %3923, %v3223_v23   ;;  %v5446_v53 = vpop.permute.xlu0 %1313  ;;  %v2353_v23 = vld [vmem:[%s6291_s6 + $0x40] sm:$0xff]  ;;  %v2367_v52 = vld [vmem:[%s6291_s6 + $0xb0] sm:$0xff] }
 0x233   :  { %1548 = vperm.xlu1 %3924, %v1250_v42   ;;  %v653_v27 = vmul.f32 %v5289_v10, %v616_v62  ;;  %v2347_v42 = vld [vmem:[%s6291_s6 + $0x10] sm:$0xff]  ;;  %v3925_v62 = vld [vmem:[%s6288_s3] ss:$8 sps:$4 sm:$0xff]  }
 0x235   :  { %v685_v49 = vadd.f32 %v653_v27, %v488_v29  ;;  %v3939_v27 = vld [vmem:[%s6288_s3 + $0x40] ss:$8 sps:$4 sm:$0xff]  }
 0x236   :  { %3315 = vperm.xlu0 %3923, %v3225_v33   ;;  %v5466_v45 = vpop.permute.xlu0 %1403 }
 0x237   :  { %v1002_v22 = vpop.permute.xlu1 %1001  ;;  %1468 = vperm.xlu1 %3924, %v1234_v35   ;;  %v3930_v35 = vld [vmem:[%s6288_s3 + $0x10] ss:$8 sps:$4 sm:$0xff]  }
 0x238   :  { %v1045_v25 = vmul.f32 %v5308_v58, %v1002_v22  ;;  %v2375_v22 = vld [vmem:[%s6291_s6 + $0xf0] sm:$0xff] }
 0x23a   :  { %v1077_v59 = vadd.f32 %v1045_v25, %v880_v12  ;;  %3325 = vperm.xlu0 %3923, %v3227_v31   ;;  %v2376_v12 = vld [vmem:[%s6291_s6 + $0xf8] sm:$0xff]  ;;  %v2355_v25 = vld [vmem:[%s6291_s6 + $0x50] sm:$0xff]  ;;  %v5480_v33 = vpop.permute.xlu0 %1323  ;;  %v2365_v31 = vld [vmem:[%s6291_s6 + $0xa0] sm:$0xff] }
 0x23b   :  { %1558 = vperm.xlu1 %3924, %v1252_v30   ;;  %v3933_v30 = vld [vmem:[%s6288_s3 + $0x20] ss:$8 sps:$4 sm:$0xff]  }
 0x23c   :  { %v1109_v4 = vmax.f32 %v1077_v59, 0.0  ;;  %v809_v54 = vpop.permute.xlu1 %808  ;;  %v3934_v59 = vld [vmem:[%s6288_s3 + $0x34] ss:$8 sps:$4 sm:$0xff]  }
 0x23d   :  { %v849_v15 = vmul.f32 %v5297_v39, %v809_v54  ;;  %v2357_v54 = vld [vmem:[%s6291_s6 + $0x60] sm:$0xff] }
 0x23e   :  { %v1190_v43 = vpack.c.bf16 %v1109_v4, %v1108_v0  ;;  %3335 = vperm.xlu0 %3923, %v3229_v28   ;;  %v3240_v4 = vld [vmem:[%s6292_s7 + $0xe8] sm:$0xff]  ;;  %v3242_v0 = vld [vmem:[%s6292_s7 + $0xf8] sm:$0xff]  ;;  %v5494_v17 = vpop.permute.xlu0 %1413 }
 0x23f   :  { %1478 = vperm.xlu1 %3924, %v1236_v44   ;;  %v881_v5 = vadd.f32 %v849_v15, %v684_v47  ;;  %v2359_v44 = vld [vmem:[%s6291_s6 + $0x70] sm:$0xff]  ;;  %v2369_v47 = vld [vmem:[%s6291_s6 + $0xc0] sm:$0xff] }
 0x240   :  { %1925 = vmatpush1.bf16.msra.mxu0 %v1190_v43  ;;  %v3940_v43 = vld [vmem:[%s6288_s3 + $0x54] ss:$8 sps:$4 sm:$0xff]   ;;  %v3942_v15 = vld [vmem:[%s6288_s3 + $0x50] ss:$8 sps:$4 sm:$0xff]  }
 0x241   :  { %v1006_v10 = vpop.permute.xlu1 %1005  ;;  %1926 = vmatprep.subr.bf16.mxu0 %v6341_v24  ;;  %v882_v24 = vadd.f32 %v850_v34, %v685_v49  ;;  %v2371_v49 = vld [vmem:[%s6291_s6 + $0xd0] sm:$0xff]  ;;  %v3945_v34 = vld [vmem:[%s6288_s3 + $0x60] ss:$8 sps:$4 sm:$0xff]  }
 0x242   :  { %v1046_v60 = vmul.f32 %v5308_v58, %v1006_v10  ;;  %3345 = vperm.xlu0 %3923, %v3231_v32   ;;  %v3946_v28 = vld [vmem:[%s6288_s3 + $0x74] ss:$8 sps:$4 sm:$0xff]  }
 0x243   :  { %1568 = vperm.xlu1 %3924, %v1254_v46   ;;  %v3943_v46 = vld [vmem:[%s6288_s3 + $0x64] ss:$8 sps:$4 sm:$0xff]  }
 0x244   :  { %v1078_v21 = vadd.f32 %v1046_v60, %v881_v5  ;;  %v2373_v5 = vld [vmem:[%s6291_s6 + $0xe0] sm:$0xff] }
 0x245   :  { %v1010_v20 = vpop.permute.xlu1 %1009 }
 0x246   :  { %v1047_v61 = vmul.f32 %v5308_v58, %v1010_v20  ;;  %v1110_v1 = vmax.f32 %v1078_v21, 0.0  ;;  %v3233_v58 = vld [vmem:[%s6292_s7 + $0xb0] sm:$0xff]  ;;  %v3212_v20 = vld [vmem:[%s6292_s7 + $0x8] sm:$0xff] }
 0x247   :  { %1488 = vperm.xlu1 %3924, %v1238_v16   ;;  %3355 = vperm.xlu0 %3923, %v3233_v58   ;;  %v3949_v21 = vld [vmem:[%s6288_s3 + $0x84] ss:$8 sps:$4 sm:$0xff]   ;;  %v3218_v58 = vld [vmem:[%s6292_s7 + $0x38] sm:$0xff] }
 0x248   :  { %v1079_v39 = vadd.f32 %v1047_v61, %v882_v24  ;;  %v3948_v24 = vld [vmem:[%s6288_s3 + $0x70] ss:$8 sps:$4 sm:$0xff]  }
 0x249   :  { %v3214_v61 = vld [vmem:[%s6292_s7 + $0x18] sm:$0xff] }
 0x24a   :  { %v1111_v63 = vmax.f32 %v1079_v39, 0.0  ;;  %v5517_v29 = vpop.permute.xlu1 %1343  ;;  %v3216_v39 = vld [vmem:[%s6292_s7 + $0x28] sm:$0xff] }
 0x24b   :  { %2379 = vperm.xlu1 %3924, %v2345_v8   ;;  %3365 = vperm.xlu0 %3923, %v3235_v50   ;;  %v3951_v8 = vld [vmem:[%s6288_s3 + $0x80] ss:$8 sps:$4 sm:$0xff]   ;;  %v3222_v50 = vld [vmem:[%s6292_s7 + $0x58] sm:$0xff] }
 0x24c   :  { %v1191_v56 = vpack.c.bf16 %v1111_v63, %v1110_v1  ;;  %v3952_v1 = vld [vmem:[%s6288_s3 + $0x94] ss:$8 sps:$4 sm:$0xff]  }
 0x24e   :  { %1927 = vmatpush1.bf16.msra.mxu0 %v1191_v56  ;;  %v5528_v10 = vpop.permute.xlu1 %1258  ;;  %v3220_v56 = vld [vmem:[%s6292_s7 + $0x48] sm:$0xff] }
 0x24f   :  { %2389 = vperm.xlu1 %3924, %v2347_v42   ;;  %2524 = vperm.xlu0 %3923, %v2374_v36   ;;  %v3954_v42 = vld [vmem:[%s6288_s3 + $0x90] ss:$8 sps:$4 sm:$0xff]   ;;  %v3224_v36 = vld [vmem:[%s6292_s7 + $0x68] sm:$0xff] }
 0x251   :  { %1929 = vmatmul.mubr.bf16.vlgmr.msra.gmra.mrb[0].mxu0 %v3925_v62 }
 0x252   :  { %1936 = vmatprep.mubr.bf16.mxu0 %v3928_v14  ;;  %v5539_v60 = vpop.permute.xlu1 %1348  ;;  %v3955_v14 = vld [vmem:[%s6288_s3 + $0xa4] ss:$8 sps:$4 sm:$0xff]  }
 0x253   :  { %2399 = vperm.xlu1 %3924, %v2349_v7   ;;  %2529 = vperm.xlu0 %3923, %v2375_v22  }
 0x256   :  { %v5547_v16 = vpop.permute.xlu1 %1268 }
 0x257   :  { %2409 = vperm.xlu1 %3924, %v2351_v38   ;;  %2534 = vperm.xlu0 %3923, %v2376_v12   ;;  %v3957_v38 = vld [vmem:[%s6288_s3 + $0xa0] ss:$8 sps:$4 sm:$0xff]   ;;  %v3960_v12 = vld [vmem:[%s6288_s3 + $0xb0] ss:$8 sps:$4 sm:$0xff]  }
 0x259   :  { %1937 = vmatmul.mubr.bf16.gmra.mrb[4].mxu0 %v3930_v35  ;;  %v3958_v35 = vld [vmem:[%s6288_s3 + $0xb4] ss:$8 sps:$4 sm:$0xff]  }
 0x25a   :  { %1944 = vmatprep.mubr.bf16.mxu0 %v3931_v6  ;;  %v5561_v32 = vpop.permute.xlu1 %1358  ;;  %v3226_v6 = vld [vmem:[%s6292_s7 + $0x78] sm:$0xff] }
 0x25b   :  { %2419 = vperm.xlu1 %3924, %v2353_v23   ;;  %3390 = vperm.xlu0 %3923, %v3240_v4   ;;  %v3228_v23 = vld [vmem:[%s6292_s7 + $0x88] sm:$0xff] }
 0x25c   :  { %v3232_v4 = vld [vmem:[%s6292_s7 + $0xa8] sm:$0xff] }
 0x25e   :  { %v5572_v63 = vpop.permute.xlu1 %1278 }
 0x25f   :  { %2429 = vperm.xlu1 %3924, %v2355_v25   ;;  %3400 = vperm.xlu0 %3923, %v3242_v0   ;;  %v3961_v25 = vld [vmem:[%s6288_s3 + $0xc4] ss:$8 sps:$4 sm:$0xff]  }
 0x261   :  { %1945 = vmatmul.mubr.bf16.gmra.mrb[8].mxu0 %v3933_v30 }
 0x262   :  { %1952 = vmatprep.mubr.bf16.mxu0 %v3934_v59  ;;  %v5583_v62 = vpop.permute.xlu1 %1368  ;;  %v3230_v59 = vld [vmem:[%s6292_s7 + $0x98] sm:$0xff] }
 0x263   :  { %2439 = vperm.xlu1 %3924, %v2357_v54   ;;  %v3963_v54 = vld [vmem:[%s6288_s3 + $0xc0] ss:$8 sps:$4 sm:$0xff]  }
 0x266   :  { %v5591_v7 = vpop.permute.xlu1 %1288 }
 0x267   :  { %2449 = vperm.xlu1 %3924, %v2359_v44   ;;  %v3964_v44 = vld [vmem:[%s6288_s3 + $0xd4] ss:$8 sps:$4 sm:$0xff]  }
 0x269   :  { %1953 = vmatmul.mubr.bf16.gmra.mrb[12].mxu0 %v3936_v26  ;;  %v3234_v26 = vld [vmem:[%s6292_s7 + $0xb8] sm:$0xff] }
 0x26a   :  { %1960 = vmatprep.mubr.bf16.mxu0 %v3937_v40  ;;  %v5605_v22 = vpop.permute.xlu1 %1378 }
 0x26b   :  { %2459 = vperm.xlu1 %3924, %v2361_v51   ;;  %v3236_v51 = vld [vmem:[%s6292_s7 + $0xc8] sm:$0xff] }
 0x26e   :  { %v5616_v30 = vpop.permute.xlu1 %1298 }
 0x26f   :  { %2469 = vperm.xlu1 %3924, %v2363_v57   ;;  %v3966_v57 = vld [vmem:[%s6288_s3 + $0xd0] ss:$8 sps:$4 sm:$0xff]  }
 0x271   :  { %1961 = vmatmul.mubr.bf16.gmra.mrb[16].mxu0 %v3939_v27  ;;  %v3967_v27 = vld [vmem:[%s6288_s3 + $0xe4] ss:$8 sps:$4 sm:$0xff]  }
 0x272   :  { %1968 = vmatprep.mubr.bf16.mxu0 %v3940_v43  ;;  %v5627_v0 = vpop.permute.xlu1 %1388  ;;  %v3237_v43 = vld [vmem:[%s6292_s7 + $0xd0] sm:$0xff] }
 0x273   :  { %2479 = vperm.xlu1 %3924, %v2365_v31  }
 0x276   :  { %v5635_v40 = vpop.permute.xlu1 %1308 }
 0x277   :  { %2489 = vperm.xlu1 %3924, %v2367_v52   ;;  %v3238_v52 = vld [vmem:[%s6292_s7 + $0xd8] sm:$0xff] }
 0x279   :  { %1969 = vmatmul.mubr.bf16.gmra.mrb[20].mxu0 %v3942_v15  ;;  %v3969_v15 = vld [vmem:[%s6288_s3 + $0xe0] ss:$8 sps:$4 sm:$0xff]  }
 0x27a   :  { %1976 = vmatprep.mubr.bf16.mxu0 %v3943_v46  ;;  %v5649_v31 = vpop.permute.xlu1 %1398  ;;  %v3970_v46 = vld [vmem:[%s6288_s3 + $0xf4] ss:$8 sps:$4 sm:$0xff]  }
 0x27b   :  { %2499 = vperm.xlu1 %3924, %v2369_v47  }
 0x27e   :  { %v5660_v47 = vpop.permute.xlu1 %1318 }
 0x27f   :  { %2509 = vperm.xlu1 %3924, %v2371_v49   ;;  %v3239_v49 = vld [vmem:[%s6292_s7 + $0xe0] sm:$0xff] }
 0x281   :  { %1977 = vmatmul.mubr.bf16.gmra.mrb[24].mxu0 %v3945_v34  ;;  %v3241_v34 = vld [vmem:[%s6292_s7 + $0xf0] sm:$0xff] }
 0x282   :  { %1984 = vmatprep.mubr.bf16.mxu0 %v3946_v28  ;;  %v3972_v28 = vld [vmem:[%s6288_s3 + $0xf0] ss:$8 sps:$4 sm:$0xff]  }
 0x283   :  { %2519 = vperm.xlu1 %3924, %v2373_v5   ;;  %v5671_v5 = vpop.permute.xlu1 %1408 }
 0x287   :  { %3250 = vperm.xlu1 %3924, %v3212_v20   ;;  %v3973_v20 = vld [vmem:[%s6288_s3 + $0x104] ss:$8 sps:$4 sm:$0xff]  }
 0x289   :  { %1985 = vmatmul.mubr.bf16.gmra.mrb[28].mxu0 %v3948_v24  ;;  %v3472_v24 = vld [vmem:[#allocation2] sm:$0x1] }
 0x28a   :  { %1992 = vmatprep.mubr.bf16.mxu0 %v3949_v21  ;;  %v5676_v21 = vpop.permute.xlu1 %1328 }
 0x28b   :  { %3260 = vperm.xlu1 %3924, %v3214_v61   ;;  %v3975_v61 = vld [vmem:[%s6288_s3 + $0x100] ss:$8 sps:$4 sm:$0xff]  }
 0x28f   :  { %3270 = vperm.xlu1 %3924, %v3216_v39   ;;  %v3976_v39 = vld [vmem:[%s6288_s3 + $0x114] ss:$8 sps:$4 sm:$0xff]  }
 0x291   :  { %1993 = vmatmul.mubr.bf16.gmra.mrb[32].mxu0 %v3951_v8  ;;  %v3978_v8 = vld [vmem:[%s6288_s3 + $0x110] ss:$8 sps:$4 sm:$0xff]  }
 0x292   :  { %2000 = vmatprep.mubr.bf16.mxu0 %v3952_v1  ;;  %v3979_v1 = vld [vmem:[%s6288_s3 + $0x124] ss:$8 sps:$4 sm:$0xff]  }
 0x293   :  { %3280 = vperm.xlu1 %3924, %v3218_v58   ;;  %v3981_v58 = vld [vmem:[%s6288_s3 + $0x120] ss:$8 sps:$4 sm:$0xff]  }
 0x297   :  { %3290 = vperm.xlu1 %3924, %v3220_v56   ;;  %v3982_v56 = vld [vmem:[%s6288_s3 + $0x134] ss:$8 sps:$4 sm:$0xff]  }
 0x299   :  { %2001 = vmatmul.mubr.bf16.gmra.mrb[36].mxu0 %v3954_v42  ;;  %v3984_v42 = vld [vmem:[%s6288_s3 + $0x130] ss:$8 sps:$4 sm:$0xff]  }
 0x29a   :  { %2008 = vmatprep.mubr.bf16.mxu0 %v3955_v14  ;;  %v3985_v14 = vld [vmem:[%s6288_s3 + $0x144] ss:$8 sps:$4 sm:$0xff]  }
 0x29b   :  { %3300 = vperm.xlu1 %3924, %v3222_v50   ;;  %v3987_v50 = vld [vmem:[%s6288_s3 + $0x140] ss:$8 sps:$4 sm:$0xff]  }
 0x29f   :  { %3310 = vperm.xlu1 %3924, %v3224_v36   ;;  %v3988_v36 = vld [vmem:[%s6288_s3 + $0x154] ss:$8 sps:$4 sm:$0xff]  }
 0x2a1   :  { %2009 = vmatmul.mubr.bf16.gmra.mrb[40].mxu0 %v3957_v38  ;;  %v3990_v38 = vld [vmem:[%s6288_s3 + $0x150] ss:$8 sps:$4 sm:$0xff]  }
 0x2a2   :  { %2016 = vmatprep.mubr.bf16.mxu0 %v3958_v35  ;;  %v3991_v35 = vld [vmem:[%s6288_s3 + $0x164] ss:$8 sps:$4 sm:$0xff]  }
 0x2a3   :  { %3320 = vperm.xlu1 %3924, %v3226_v6   ;;  %v3993_v6 = vld [vmem:[%s6288_s3 + $0x160] ss:$8 sps:$4 sm:$0xff]  }
 0x2a7   :  { %3330 = vperm.xlu1 %3924, %v3228_v23   ;;  %v3994_v23 = vld [vmem:[%s6288_s3 + $0x174] ss:$8 sps:$4 sm:$0xff]  }
 0x2a9   :  { %2017 = vmatmul.mubr.bf16.gmra.mrb[44].mxu0 %v3960_v12  ;;  %v3996_v12 = vld [vmem:[%s6288_s3 + $0x170] ss:$8 sps:$4 sm:$0xff]  }
 0x2aa   :  { %2024 = vmatprep.mubr.bf16.mxu0 %v3961_v25  ;;  %v3997_v25 = vld [vmem:[%s6288_s3 + $0x184] ss:$8 sps:$4 sm:$0xff]  }
 0x2ab   :  { %3340 = vperm.xlu1 %3924, %v3230_v59   ;;  %v3999_v59 = vld [vmem:[%s6288_s3 + $0x180] ss:$8 sps:$4 sm:$0xff]  }
 0x2af   :  { %3350 = vperm.xlu1 %3924, %v3232_v4   ;;  %v4000_v4 = vld [vmem:[%s6288_s3 + $0x194] ss:$8 sps:$4 sm:$0xff]  }
 0x2b1   :  { %2025 = vmatmul.mubr.bf16.gmra.mrb[48].mxu0 %v3963_v54  ;;  %v4002_v54 = vld [vmem:[%s6288_s3 + $0x190] ss:$8 sps:$4 sm:$0xff]  }
 0x2b2   :  { %2032 = vmatprep.mubr.bf16.mxu0 %v3964_v44  ;;  %v4003_v44 = vld [vmem:[%s6288_s3 + $0x1a4] ss:$8 sps:$4 sm:$0xff]  }
 0x2b3   :  { %3360 = vperm.xlu1 %3924, %v3234_v26   ;;  %v4005_v26 = vld [vmem:[%s6288_s3 + $0x1a0] ss:$8 sps:$4 sm:$0xff]  }
 0x2b7   :  { %3370 = vperm.xlu1 %3924, %v3236_v51   ;;  %v4006_v51 = vld [vmem:[%s6288_s3 + $0x1b4] ss:$8 sps:$4 sm:$0xff]  }
 0x2b9   :  { %2033 = vmatmul.mubr.bf16.gmra.mrb[52].mxu0 %v3966_v57 }
 0x2ba   :  { %2040 = vmatprep.mubr.bf16.mxu0 %v3967_v27 }
 0x2bb   :  { %3375 = vperm.xlu1 %3924, %v3237_v43  }
 0x2bf   :  { %3380 = vperm.xlu1 %3924, %v3238_v52   ;;  %v4008_v52 = vld [vmem:[%s6288_s3 + $0x1b0] ss:$8 sps:$4 sm:$0xff]  }
 0x2c1   :  { %2041 = vmatmul.mubr.bf16.gmra.mrb[56].mxu0 %v3969_v15 }
 0x2c2   :  { %2048 = vmatprep.mubr.bf16.mxu0 %v3970_v46  ;;  %v4009_v46 = vld [vmem:[%s6288_s3 + $0x1c4] ss:$8 sps:$4 sm:$0xff]  }
 0x2c3   :  { %3385 = vperm.xlu1 %3924, %v3239_v49   ;;  %v4023_v49 = vld [vmem:[%s6290_s5 + $0x4] ss:$16 sps:$4 sm:$0xff]  }
 0x2c4   :  { %2889 = vmatprep.mubr.bf16.mxu1 %v4023_v49 }
 0x2c7   :  { %3395 = vperm.xlu1 %3924, %v3241_v34  }
 0x2c9   :  { %2049 = vmatmul.mubr.bf16.gmra.mrb[60].mxu0 %v3972_v28 }
 0x2ca   :  { %2056 = vmatprep.mubr.bf16.mxu0 %v3973_v20 }
 0x2cb   :  { %3475 = vperm.xlu1 %3924, %v3472_v24  }
 0x2d1   :  { %2057 = vmatmul.mubr.bf16.gmra.mrb[64].mxu0 %v3975_v61 }
 0x2d2   :  { %2064 = vmatprep.mubr.bf16.mxu0 %v3976_v39 }
 0x2d9   :  { %2065 = vmatmul.mubr.bf16.gmra.mrb[68].mxu0 %v3978_v8 }
 0x2da   :  { %2072 = vmatprep.mubr.bf16.mxu0 %v3979_v1  ;;  %v4011_v1 = vld [vmem:[%s6288_s3 + $0x1c0] ss:$8 sps:$4 sm:$0xff]  }
 0x2e1   :  { %2073 = vmatmul.mubr.bf16.gmra.mrb[72].mxu0 %v3981_v58 }
 0x2e2   :  { %2080 = vmatprep.mubr.bf16.mxu0 %v3982_v56 }
 0x2e9   :  { %2081 = vmatmul.mubr.bf16.gmra.mrb[76].mxu0 %v3984_v42 }
 0x2ea   :  { %2088 = vmatprep.mubr.bf16.mxu0 %v3985_v14 }
 0x2f1   :  { %2089 = vmatmul.mubr.bf16.gmra.mrb[80].mxu0 %v3987_v50 }
 0x2f2   :  { %2096 = vmatprep.mubr.bf16.mxu0 %v3988_v36 }
 0x2f9   :  { %2097 = vmatmul.mubr.bf16.gmra.mrb[84].mxu0 %v3990_v38 }
 0x2fa   :  { %2104 = vmatprep.mubr.bf16.mxu0 %v3991_v35 }
 0x301   :  { %2105 = vmatmul.mubr.bf16.gmra.mrb[88].mxu0 %v3993_v6  ;;  %v4014_v6 = vld [vmem:[%s6288_s3 + $0x1d0] ss:$8 sps:$4 sm:$0xff]  }
 0x302   :  { %2112 = vmatprep.mubr.bf16.mxu0 %v3994_v23 }
 0x309   :  { %2113 = vmatmul.mubr.bf16.gmra.mrb[92].mxu0 %v3996_v12 }
 0x30a   :  { %2120 = vmatprep.mubr.bf16.mxu0 %v3997_v25 }
 0x311   :  { %2121 = vmatmul.mubr.bf16.gmra.mrb[96].mxu0 %v3999_v59 }
 0x312   :  { %2128 = vmatprep.mubr.bf16.mxu0 %v4000_v4 }
 0x319   :  { %2129 = vmatmul.mubr.bf16.gmra.mrb[100].mxu0 %v4002_v54 }
 0x31a   :  { %2136 = vmatprep.mubr.bf16.mxu0 %v4003_v44 }
 0x321   :  { %2137 = vmatmul.mubr.bf16.gmra.mrb[104].mxu0 %v4005_v26 }
 0x322   :  { %2144 = vmatprep.mubr.bf16.mxu0 %v4006_v51  ;;  %v4017_v51 = vld [vmem:[%s6288_s3 + $0x1e0] ss:$8 sps:$4 sm:$0xff]  }
 0x324   :  { %v1930_v57 = vpop.f32.mrb[0].mxu0 }
 0x325   :  { %v1931_v27 = vadd.f32 %v1930_v57, %v5528_v10  ;;  %v1932_v43 = vpop.f32.mrb[1].mxu0 }
 0x326   :  { %v1933_v15 = vpop.f32.mrb[2].mxu0 }
 0x327   :  { %v1934_v34 = vadd.f32 %v1933_v15, %v5275_v9  ;;  %v1935_v28 = vpop.f32.mrb[3].mxu0  ;;  %v2185_v20 = vmax.f32 %v1931_v27, 0.0  ;;  %v4012_v9 = vld [vmem:[%s6288_s3 + $0x1d4] ss:$8 sps:$4 sm:$0xff]  }
 0x328   :  { %v4020_v28 = vld [vmem:[%s6288_s3 + $0x1f0] ss:$8 sps:$4 sm:$0xff]  }
 0x329   :  { %v2186_v10 = vmax.f32 %v1934_v34, 0.0  ;;  %2145 = vmatmul.mubr.bf16.gmra.mrb[108].mxu0 %v4008_v52 }
 0x32a   :  { %2152 = vmatprep.mubr.bf16.mxu0 %v4009_v46 }
 0x32b   :  { %v5755_v24 = vpack.c.bf16 %v2186_v10, %v2185_v20 }
 0x32c   :  { %v1938_v61 = vpop.f32.mrb[4].mxu0 }
 0x32d   :  { %v1939_v39 = vadd.f32 %v1938_v61, %v5547_v16  ;;  %v1940_v8 = vpop.f32.mrb[5].mxu0 }
 0x32e   :  { %v1941_v58 = vpop.f32.mrb[6].mxu0 }
 0x32f   :  { %v1942_v56 = vadd.f32 %v1941_v58, %v5323_v37  ;;  %v1943_v42 = vpop.f32.mrb[7].mxu0  ;;  %v2187_v14 = vmax.f32 %v1939_v39, 0.0  ;;  %v4015_v37 = vld [vmem:[%s6288_s3 + $0x1e4] ss:$8 sps:$4 sm:$0xff]  }
 0x331   :  { %v2188_v50 = vmax.f32 %v1942_v56, 0.0  ;;  %2153 = vmatmul.mubr.bf16.gmra.mrb[112].mxu0 %v4011_v1 }
 0x332   :  { %2160 = vmatprep.mubr.bf16.mxu0 %v4012_v9 }
 0x333   :  { %v5765_v36 = vpack.c.bf16 %v2188_v50, %v2187_v14 }
 0x334   :  { %v1946_v16 = vpop.f32.mrb[8].mxu0 }
 0x335   :  { %v1947_v38 = vadd.f32 %v1946_v16, %v5572_v63  ;;  %v1948_v35 = vpop.f32.mrb[9].mxu0 }
 0x336   :  { %v1949_v23 = vpop.f32.mrb[10].mxu0 }
 0x337   :  { %v1950_v12 = vadd.f32 %v1949_v23, %v5350_v55  ;;  %v1951_v25 = vpop.f32.mrb[11].mxu0  ;;  %v2189_v59 = vmax.f32 %v1947_v38, 0.0  ;;  %v4018_v55 = vld [vmem:[%s6288_s3 + $0x1f4] ss:$8 sps:$4 sm:$0xff]  }
 0x339   :  { %v2190_v4 = vmax.f32 %v1950_v12, 0.0  ;;  %2161 = vmatmul.mubr.bf16.gmra.mrb[116].mxu0 %v4014_v6 }
 0x33a   :  { %2168 = vmatprep.mubr.bf16.mxu0 %v4015_v37 }
 0x33b   :  { %v5775_v54 = vpack.c.bf16 %v2190_v4, %v2189_v59 }
 0x33c   :  { %v1954_v63 = vpop.f32.mrb[12].mxu0 }
 0x33d   :  { %v1955_v44 = vadd.f32 %v1954_v63, %v5591_v7  ;;  %v1956_v26 = vpop.f32.mrb[13].mxu0  ;;  %v1334_v63 = vpop.permute.xlu0 %1333 }
 0x33e   :  { %v1957_v57 = vpop.f32.mrb[14].mxu0 }
 0x33f   :  { %v1958_v27 = vadd.f32 %v1957_v57, %v5383_v2  ;;  %v1959_v43 = vpop.f32.mrb[15].mxu0  ;;  %v2191_v52 = vmax.f32 %v1955_v44, 0.0 }
 0x341   :  { %v2192_v15 = vmax.f32 %v1958_v27, 0.0  ;;  %2169 = vmatmul.mubr.bf16.gmra.mrb[120].mxu0 %v4017_v51 }
 0x342   :  { %2176 = vmatprep.mubr.bf16.mxu0 %v4018_v55 }
 0x343   :  { %v5785_v46 = vpack.c.bf16 %v2192_v15, %v2191_v52 }
 0x344   :  { %v1962_v7 = vpop.f32.mrb[16].mxu0 }
 0x345   :  { %v1963_v49 = vadd.f32 %v1962_v7, %v5616_v30  ;;  %v1964_v34 = vpop.f32.mrb[17].mxu0 }
 0x346   :  { %v1965_v20 = vpop.f32.mrb[18].mxu0 }
 0x347   :  { %v1966_v10 = vadd.f32 %v1965_v20, %v5418_v48  ;;  %v1967_v61 = vpop.f32.mrb[19].mxu0  ;;  %v2193_v2 = vmax.f32 %v1963_v49, 0.0 }
 0x349   :  { %v2194_v39 = vmax.f32 %v1966_v10, 0.0  ;;  %2177 = vmatmul.mubr.bf16.gmra.mrb[124].mxu0 %v4020_v28 }
 0x34b   :  { %v5792_v8 = vpack.c.bf16 %v2194_v39, %v2193_v2 }
 0x34c   :  { %v1970_v1 = vpop.f32.mrb[20].mxu0 }
 0x34d   :  { %v1971_v58 = vadd.f32 %v1970_v1, %v5635_v40  ;;  %v1972_v9 = vpop.f32.mrb[21].mxu0 }
 0x34e   :  { %v1973_v56 = vpop.f32.mrb[22].mxu0 }
 0x34f   :  { %v1974_v30 = vadd.f32 %v1973_v56, %v5446_v53  ;;  %v1975_v42 = vpop.f32.mrb[23].mxu0  ;;  %v2195_v14 = vmax.f32 %v1971_v58, 0.0 }
 0x351   :  { %v2196_v50 = vmax.f32 %v1974_v30, 0.0 }
 0x353   :  { %v5796_v16 = vpack.c.bf16 %v2196_v50, %v2195_v14 }
 0x354   :  { %v1978_v38 = vpop.f32.mrb[24].mxu0 }
 0x355   :  { %v1979_v48 = vadd.f32 %v1978_v38, %v5660_v47  ;;  %v1980_v35 = vpop.f32.mrb[25].mxu0 }
 0x356   :  { %v1981_v6 = vpop.f32.mrb[26].mxu0 }
 0x357   :  { %v1982_v23 = vadd.f32 %v1981_v6, %v5480_v33  ;;  %v1983_v37 = vpop.f32.mrb[27].mxu0  ;;  %v2197_v12 = vmax.f32 %v1979_v48, 0.0 }
 0x359   :  { %v2198_v25 = vmax.f32 %v1982_v23, 0.0 }
 0x35b   :  { %v5800_v40 = vpack.c.bf16 %v2198_v25, %v2197_v12  ;;  %v5818_v12 = vpop.permute.xlu0 %1503 }
 0x35c   :  { %v1986_v59 = vpop.f32.mrb[28].mxu0 }
 0x35d   :  { %v1987_v53 = vadd.f32 %v1986_v59, %v5676_v21  ;;  %v1988_v4 = vpop.f32.mrb[29].mxu0 }
 0x35e   :  { %v1989_v44 = vpop.f32.mrb[30].mxu0 }
 0x35f   :  { %v1990_v26 = vadd.f32 %v1989_v44, %v1334_v63  ;;  %v1991_v51 = vpop.f32.mrb[31].mxu0  ;;  %v2199_v57 = vmax.f32 %v1987_v53, 0.0 }
 0x361   :  { %v2200_v55 = vmax.f32 %v1990_v26, 0.0  ;;  %v1424_v26 = vpop.permute.xlu0 %1423 }
 0x363   :  { %v5803_v47 = vpack.c.bf16 %v2200_v55, %v2199_v57 }
 0x364   :  { %v1994_v27 = vpop.f32.mrb[32].mxu0 }
 0x365   :  { %v1995_v33 = vadd.f32 %v1994_v27, %v5258_v19  ;;  %v1996_v43 = vpop.f32.mrb[33].mxu0 }
 0x366   :  { %v1997_v52 = vpop.f32.mrb[34].mxu0 }
 0x367   :  { %v1998_v15 = vadd.f32 %v1997_v52, %v5517_v29  ;;  %v1999_v7 = vpop.f32.mrb[35].mxu0  ;;  %v2201_v49 = vmax.f32 %v1995_v33, 0.0 }
 0x369   :  { %v2202_v34 = vmax.f32 %v1998_v15, 0.0 }
 0x36b   :  { %v2321_v21 = vpack.c.bf16 %v2202_v34, %v2201_v49 }
 0x36c   :  { %v2002_v28 = vpop.f32.mrb[36].mxu0 }
 0x36d   :  { %v2003_v20 = vadd.f32 %v2002_v28, %v5539_v60  ;;  %v2004_v10 = vpop.f32.mrb[37].mxu0  ;;  %3630 = vmatprep.subr.bf16.mxu1 %v2321_v21 }
 0x36e   :  { %v2005_v61 = vpop.f32.mrb[38].mxu0  ;;  %3631 = vmatpush3.bf16.msra.mxu1 %v5755_v24 }
 0x36f   :  { %v2006_v2 = vadd.f32 %v2005_v61, %v5314_v41  ;;  %v2007_v39 = vpop.f32.mrb[39].mxu0  ;;  %v2203_v19 = vmax.f32 %v2003_v20, 0.0 }
 0x371   :  { %v2204_v1 = vmax.f32 %v2006_v2, 0.0 }
 0x373   :  { %v2322_v58 = vpack.c.bf16 %v2204_v1, %v2203_v19 }
 0x374   :  { %v2010_v9 = vpop.f32.mrb[40].mxu0 }
 0x375   :  { %v2011_v29 = vadd.f32 %v2010_v9, %v5561_v32  ;;  %v2012_v56 = vpop.f32.mrb[41].mxu0  ;;  %3632 = vmatprep.subr.bf16.mxu1 %v2322_v58 }
 0x376   :  { %v2013_v30 = vpop.f32.mrb[42].mxu0  ;;  %3633 = vmatpush3.bf16.msra.mxu1 %v5765_v36  ;;  %v5816_v36 = vpop.permute.xlu1 %1498 }
 0x377   :  { %v2014_v60 = vadd.f32 %v2013_v30, %v5337_v13  ;;  %v2015_v42 = vpop.f32.mrb[43].mxu0  ;;  %v2205_v14 = vmax.f32 %v2011_v29, 0.0 }
 0x379   :  { %v2206_v50 = vmax.f32 %v2014_v60, 0.0 }
 0x37b   :  { %v2323_v24 = vpack.c.bf16 %v2206_v50, %v2205_v14 }
 0x37c   :  { %v2018_v38 = vpop.f32.mrb[44].mxu0 }
 0x37d   :  { %v2019_v41 = vadd.f32 %v2018_v38, %v5583_v62  ;;  %v2020_v48 = vpop.f32.mrb[45].mxu0  ;;  %3634 = vmatprep.subr.bf16.mxu1 %v2323_v24 }
 0x37e   :  { %v2021_v35 = vpop.f32.mrb[46].mxu0  ;;  %3635 = vmatpush3.bf16.msra.mxu1 %v5775_v54 }
 0x37f   :  { %v2022_v32 = vadd.f32 %v2021_v35, %v5374_v11  ;;  %v2023_v6 = vpop.f32.mrb[47].mxu0  ;;  %v2207_v23 = vmax.f32 %v2019_v41, 0.0  ;;  %v1419_v11 = vpop.permute.xlu1 %1418 }
 0x381   :  { %v2208_v37 = vmax.f32 %v2022_v32, 0.0 }
 0x383   :  { %v2324_v13 = vpack.c.bf16 %v2208_v37, %v2207_v23  ;;  %v5824_v33 = vpop.permute.xlu1 %1508 }
 0x384   :  { %v2026_v25 = vpop.f32.mrb[48].mxu0 }
 0x385   :  { %v2027_v59 = vadd.f32 %v2026_v25, %v5605_v22  ;;  %v2028_v53 = vpop.f32.mrb[49].mxu0  ;;  %3636 = vmatprep.subr.bf16.mxu1 %v2324_v13 }
 0x386   :  { %v2029_v62 = vpop.f32.mrb[50].mxu0  ;;  %3637 = vmatpush3.bf16.msra.mxu1 %v5785_v46 }
 0x387   :  { %v2030_v54 = vadd.f32 %v2029_v62, %v5405_v18  ;;  %v2031_v4 = vpop.f32.mrb[51].mxu0  ;;  %v2209_v63 = vmax.f32 %v2027_v59, 0.0  ;;  %v5828_v18 = vpop.permute.xlu0 %1513 }
 0x388   :  { %v1429_v49 = vpop.permute.xlu1 %1428 }
 0x389   :  { %v2210_v44 = vmax.f32 %v2030_v54, 0.0  ;;  %v4027_v54 = vld [vmem:[%s6290_s5 + $0x44] ss:$16 sps:$4 sm:$0xff]  }
 0x38b   :  { %v2325_v51 = vpack.c.bf16 %v2210_v44, %v2209_v63  ;;  %v1434_v28 = vpop.permute.xlu0 %1433 }
 0x38c   :  { %v2034_v57 = vpop.f32.mrb[52].mxu0  ;;  %v5833_v2 = vpop.permute.xlu1 %1518 }
 0x38d   :  { %v2035_v55 = vadd.f32 %v2034_v57, %v5627_v0  ;;  %v2036_v27 = vpop.f32.mrb[53].mxu0  ;;  %3638 = vmatprep.subr.bf16.mxu1 %v2325_v51 }
 0x38e   :  { %v2037_v22 = vpop.f32.mrb[54].mxu0  ;;  %3639 = vmatpush3.bf16.msra.mxu1 %v5792_v8 }
 0x38f   :  { %v2038_v46 = vadd.f32 %v2037_v22, %v5432_v3  ;;  %v2039_v43 = vpop.f32.mrb[55].mxu0  ;;  %v2211_v52 = vmax.f32 %v2035_v55, 0.0  ;;  %v5835_v19 = vpop.permute.xlu0 %1523 }
 0x391   :  { %v2212_v15 = vmax.f32 %v2038_v46, 0.0  ;;  %v4029_v46 = vld [vmem:[%s6290_s5 + $0x40] ss:$16 sps:$4 sm:$0xff]  }
 0x393   :  { %v2326_v7 = vpack.c.bf16 %v2212_v15, %v2211_v52  ;;  %v1444_v60 = vpop.permute.xlu0 %1443  ;;  %v4030_v52 = vld [vmem:[%s6290_s5 + $0x64] ss:$16 sps:$4 sm:$0xff]  }
 0x394   :  { %v2042_v34 = vpop.f32.mrb[56].mxu0 }
 0x395   :  { %v2043_v21 = vadd.f32 %v2042_v34, %v5649_v31  ;;  %v2044_v0 = vpop.f32.mrb[57].mxu0  ;;  %3640 = vmatprep.subr.bf16.mxu1 %v2326_v7 }
 0x396   :  { %v2045_v20 = vpop.f32.mrb[58].mxu0  ;;  %3641 = vmatpush3.bf16.msra.mxu1 %v5796_v16 }
 0x397   :  { %v2046_v8 = vadd.f32 %v2045_v20, %v5466_v45  ;;  %v2047_v10 = vpop.f32.mrb[59].mxu0  ;;  %v2213_v3 = vmax.f32 %v2043_v21, 0.0  ;;  %v1439_v45 = vpop.permute.xlu1 %1438 }
 0x398   :  { %v5849_v35 = vpop.permute.xlu0 %1533 }
 0x399   :  { %v2214_v61 = vmax.f32 %v2046_v8, 0.0 }
 0x39b   :  { %v2327_v39 = vpack.c.bf16 %v2214_v61, %v2213_v3  ;;  %v5843_v38 = vpop.permute.xlu1 %1528  ;;  %v4032_v3 = vld [vmem:[%s6290_s5 + $0x60] ss:$16 sps:$4 sm:$0xff]  }
 0x39c   :  { %v2050_v1 = vpop.f32.mrb[60].mxu0  ;;  %v1454_v53 = vpop.permute.xlu0 %1453 }
 0x39d   :  { %v2051_v58 = vadd.f32 %v2050_v1, %v5671_v5  ;;  %v2052_v31 = vpop.f32.mrb[61].mxu0  ;;  %3642 = vmatprep.subr.bf16.mxu1 %v2327_v39  ;;  %v4021_v5 = vld [vmem:[%s6290_s5] ss:$16 sps:$4 sm:$0xff]   ;;  %v4033_v1 = vld [vmem:[%s6290_s5 + $0x84] ss:$16 sps:$4 sm:$0xff]  }
 0x39e   :  { %v2053_v9 = vpop.f32.mrb[62].mxu0  ;;  %3643 = vmatpush3.bf16.msra.mxu1 %v5800_v40 }
 0x39f   :  { %v2054_v16 = vadd.f32 %v2053_v9, %v5494_v17  ;;  %v2055_v29 = vpop.f32.mrb[63].mxu0  ;;  %v2215_v56 = vmax.f32 %v2051_v58, 0.0  ;;  %v4024_v17 = vld [vmem:[%s6290_s5 + $0x24] ss:$16 sps:$4 sm:$0xff]   ;;  %v1449_v37 = vpop.permute.xlu1 %1448 }
 0x3a0   :  { %v5863_v57 = vpop.permute.xlu0 %1543 }
 0x3a1   :  { %v2216_v30 = vmax.f32 %v2054_v16, 0.0 }
 0x3a3   :  { %v2328_v42 = vpack.c.bf16 %v2216_v30, %v2215_v56 }
 0x3a4   :  { %v2058_v14 = vpop.f32.mrb[64].mxu0  ;;  %v1464_v0 = vpop.permute.xlu0 %1463 }
 0x3a5   :  { %v2059_v50 = vadd.f32 %v2058_v14, %v1419_v11  ;;  %v2060_v24 = vpop.f32.mrb[65].mxu0  ;;  %3644 = vmatprep.subr.bf16.mxu1 %v2328_v42  ;;  %v4035_v14 = vld [vmem:[%s6290_s5 + $0x80] ss:$16 sps:$4 sm:$0xff]  }
 0x3a6   :  { %v2061_v41 = vpop.f32.mrb[66].mxu0  ;;  %3645 = vmatpush3.bf16.msra.mxu1 %v5803_v47  ;;  %v4026_v47 = vld [vmem:[%s6290_s5 + $0x20] ss:$16 sps:$4 sm:$0xff]  }
 0x3a7   :  { %v2062_v40 = vadd.f32 %v2061_v41, %v1424_v26  ;;  %v2063_v48 = vpop.f32.mrb[67].mxu0  ;;  %v2217_v32 = vmax.f32 %v2059_v50, 0.0  ;;  %v5859_v26 = vpop.permute.xlu1 %1538 }
 0x3a8   :  { %v5881_v9 = vpop.permute.xlu0 %1553 }
 0x3a9   :  { %v2218_v6 = vmax.f32 %v2062_v40, 0.0  ;;  %2890 = vmatmul.mubr.bf16.vlgmr.msra.gmra.mrb[0].mxu1 %v4021_v5  ;;  %v4036_v5 = vld [vmem:[%s6290_s5 + $0xa4] ss:$16 sps:$4 sm:$0xff]  }
 0x3aa   :  { %2897 = vmatprep.mubr.bf16.mxu1 %v4024_v17 }
 0x3ab   :  { %v5851_v23 = vpack.c.bf16 %v2218_v6, %v2217_v32 }
 0x3ac   :  { %v2066_v13 = vpop.f32.mrb[68].mxu0  ;;  %v1474_v50 = vpop.permute.xlu0 %1473 }
 0x3ad   :  { %v2067_v25 = vadd.f32 %v2066_v13, %v1429_v49  ;;  %v2068_v59 = vpop.f32.mrb[69].mxu0  ;;  %v1459_v49 = vpop.permute.xlu1 %1458 }
 0x3ae   :  { %v2069_v62 = vpop.f32.mrb[70].mxu0 }
 0x3af   :  { %v2070_v4 = vadd.f32 %v2069_v62, %v1434_v28  ;;  %v2071_v11 = vpop.f32.mrb[71].mxu0  ;;  %v2219_v63 = vmax.f32 %v2067_v25, 0.0  ;;  %v4039_v62 = vld [vmem:[%s6290_s5 + $0xc4] ss:$16 sps:$4 sm:$0xff]  }
 0x3b1   :  { %v2220_v44 = vmax.f32 %v2070_v4, 0.0  ;;  %2898 = vmatmul.mubr.bf16.gmra.mrb[4].mxu1 %v4026_v47  ;;  %v5876_v61 = vpop.permute.xlu1 %1548  ;;  %v4038_v47 = vld [vmem:[%s6290_s5 + $0xa0] ss:$16 sps:$4 sm:$0xff]  }
 0x3b2   :  { %2905 = vmatprep.mubr.bf16.mxu1 %v4027_v54 }
 0x3b3   :  { %v5861_v51 = vpack.c.bf16 %v2220_v44, %v2219_v63 }
 0x3b4   :  { %v2074_v55 = vpop.f32.mrb[72].mxu0 }
 0x3b5   :  { %v2075_v27 = vadd.f32 %v2074_v55, %v1439_v45  ;;  %v2076_v22 = vpop.f32.mrb[73].mxu0  ;;  %v1469_v56 = vpop.permute.xlu1 %1468 }
 0x3b6   :  { %v2077_v43 = vpop.f32.mrb[74].mxu0 }
 0x3b7   :  { %v2078_v15 = vadd.f32 %v2077_v43, %v1444_v60  ;;  %v2079_v7 = vpop.f32.mrb[75].mxu0  ;;  %v2221_v34 = vmax.f32 %v2075_v27, 0.0 }
 0x3b9   :  { %v2222_v21 = vmax.f32 %v2078_v15, 0.0  ;;  %2906 = vmatmul.mubr.bf16.gmra.mrb[8].mxu1 %v4029_v46  ;;  %v5891_v32 = vpop.permute.xlu1 %1558 }
 0x3ba   :  { %2913 = vmatprep.mubr.bf16.mxu1 %v4030_v52  ;;  %v4041_v52 = vld [vmem:[%s6290_s5 + $0xc0] ss:$16 sps:$4 sm:$0xff]  }
 0x3bb   :  { %v5871_v28 = vpack.c.bf16 %v2222_v21, %v2221_v34 }
 0x3bc   :  { %v2082_v20 = vpop.f32.mrb[76].mxu0 }
 0x3bd   :  { %v2083_v8 = vadd.f32 %v2082_v20, %v1449_v37  ;;  %v2084_v10 = vpop.f32.mrb[77].mxu0  ;;  %v5895_v37 = vpop.permute.xlu0 %1563 }
 0x3be   :  { %v2085_v39 = vpop.f32.mrb[78].mxu0  ;;  %v1479_v11 = vpop.permute.xlu1 %1478 }
 0x3bf   :  { %v2086_v58 = vadd.f32 %v2085_v39, %v1454_v53  ;;  %v2087_v31 = vpop.f32.mrb[79].mxu0  ;;  %v2223_v16 = vmax.f32 %v2083_v8, 0.0 }
 0x3c0   :  { %v4044_v31 = vld [vmem:[%s6290_s5 + $0xe0] ss:$16 sps:$4 sm:$0xff]  }
 0x3c1   :  { %v2224_v29 = vmax.f32 %v2086_v58, 0.0  ;;  %2914 = vmatmul.mubr.bf16.gmra.mrb[12].mxu1 %v4032_v3  ;;  %v1484_v55 = vpop.permute.xlu0 %1483 }
 0x3c2   :  { %2921 = vmatprep.mubr.bf16.mxu1 %v4033_v1  ;;  %v5908_v15 = vpop.permute.xlu1 %1568 }
 0x3c3   :  { %v5883_v45 = vpack.c.bf16 %v2224_v29, %v2223_v16 }
 0x3c4   :  { %v2090_v30 = vpop.f32.mrb[80].mxu0 }
 0x3c5   :  { %v2091_v60 = vadd.f32 %v2090_v30, %v1459_v49  ;;  %v2092_v42 = vpop.f32.mrb[81].mxu0  ;;  %v4042_v49 = vld [vmem:[%s6290_s5 + $0xe4] ss:$16 sps:$4 sm:$0xff]  }
 0x3c6   :  { %v2093_v24 = vpop.f32.mrb[82].mxu0  ;;  %v1489_v3 = vpop.permute.xlu1 %1488 }
 0x3c7   :  { %v2094_v41 = vadd.f32 %v2093_v24, %v1464_v0  ;;  %v2095_v17 = vpop.f32.mrb[83].mxu0  ;;  %v2225_v40 = vmax.f32 %v2091_v60, 0.0  ;;  %v5913_v0 = vpop.permute.xlu0 %1573 }
 0x3c8   :  { %v4047_v17 = vld [vmem:[%s6290_s5 + $0x100] ss:$16 sps:$4 sm:$0xff]  }
 0x3c9   :  { %v2226_v48 = vmax.f32 %v2094_v41, 0.0  ;;  %2922 = vmatmul.mubr.bf16.gmra.mrb[16].mxu1 %v4035_v14 }
 0x3ca   :  { %2929 = vmatprep.mubr.bf16.mxu1 %v4036_v5 }
 0x3cb   :  { %v5893_v6 = vpack.c.bf16 %v2226_v48, %v2225_v40  ;;  %v1494_v16 = vpop.permute.xlu0 %1493  ;;  %v4048_v48 = vld [vmem:[%s6290_s5 + $0x124] ss:$16 sps:$4 sm:$0xff]  }
 0x3cc   :  { %v2098_v13 = vpop.f32.mrb[84].mxu0 }
 0x3cd   :  { %v2099_v25 = vadd.f32 %v2098_v13, %v1469_v56  ;;  %v2100_v59 = vpop.f32.mrb[85].mxu0  ;;  %v4045_v56 = vld [vmem:[%s6290_s5 + $0x104] ss:$16 sps:$4 sm:$0xff]  }
 0x3ce   :  { %v2101_v53 = vpop.f32.mrb[86].mxu0 }
 0x3cf   :  { %v2102_v54 = vadd.f32 %v2101_v53, %v1474_v50  ;;  %v2103_v4 = vpop.f32.mrb[87].mxu0  ;;  %v2227_v63 = vmax.f32 %v2099_v25, 0.0 }
 0x3d0   :  { %v4050_v4 = vld [vmem:[%s6290_s5 + $0x120] ss:$16 sps:$4 sm:$0xff]  }
 0x3d1   :  { %v2228_v44 = vmax.f32 %v2102_v54, 0.0  ;;  %2930 = vmatmul.mubr.bf16.gmra.mrb[20].mxu1 %v4038_v47 }
 0x3d2   :  { %2937 = vmatprep.mubr.bf16.mxu1 %v4039_v62 }
 0x3d3   :  { %v5903_v27 = vpack.c.bf16 %v2228_v44, %v2227_v63 }
 0x3d4   :  { %v2106_v22 = vpop.f32.mrb[88].mxu0 }
 0x3d5   :  { %v2107_v46 = vadd.f32 %v2106_v22, %v1479_v11  ;;  %v2108_v43 = vpop.f32.mrb[89].mxu0 }
 0x3d6   :  { %v2109_v7 = vpop.f32.mrb[90].mxu0 }
 0x3d7   :  { %v2110_v34 = vadd.f32 %v2109_v7, %v1484_v55  ;;  %v2111_v21 = vpop.f32.mrb[91].mxu0  ;;  %v2229_v20 = vmax.f32 %v2107_v46, 0.0 }
 0x3d9   :  { %v2230_v8 = vmax.f32 %v2110_v34, 0.0  ;;  %2938 = vmatmul.mubr.bf16.gmra.mrb[24].mxu1 %v4041_v52 }
 0x3da   :  { %2945 = vmatprep.mubr.bf16.mxu1 %v4042_v49 }
 0x3db   :  { %v5915_v10 = vpack.c.bf16 %v2230_v8, %v2229_v20 }
 0x3dc   :  { %v2114_v39 = vpop.f32.mrb[92].mxu0 }
 0x3dd   :  { %v2115_v1 = vadd.f32 %v2114_v39, %v1489_v3  ;;  %v2116_v58 = vpop.f32.mrb[93].mxu0 }
 0x3de   :  { %v2117_v29 = vpop.f32.mrb[94].mxu0 }
 0x3df   :  { %v2118_v30 = vadd.f32 %v2117_v29, %v1494_v16  ;;  %v2119_v60 = vpop.f32.mrb[95].mxu0  ;;  %v2231_v42 = vmax.f32 %v2115_v1, 0.0 }
 0x3e1   :  { %v2232_v14 = vmax.f32 %v2118_v30, 0.0  ;;  %2946 = vmatmul.mubr.bf16.gmra.mrb[28].mxu1 %v4044_v31 }
 0x3e2   :  { %2953 = vmatprep.mubr.bf16.mxu1 %v4045_v56 }
 0x3e3   :  { %v5923_v50 = vpack.c.bf16 %v2232_v14, %v2231_v42 }
 0x3e4   :  { %v2122_v24 = vpop.f32.mrb[96].mxu0 }
 0x3e5   :  { %v2123_v5 = vadd.f32 %v2122_v24, %v5816_v36  ;;  %v2124_v41 = vpop.f32.mrb[97].mxu0 }
 0x3e6   :  { %v2125_v40 = vpop.f32.mrb[98].mxu0 }
 0x3e7   :  { %v2126_v13 = vadd.f32 %v2125_v40, %v5818_v12  ;;  %v2127_v25 = vpop.f32.mrb[99].mxu0  ;;  %v2233_v59 = vmax.f32 %v2123_v5, 0.0  ;;  %v4051_v12 = vld [vmem:[%s6290_s5 + $0x144] ss:$16 sps:$4 sm:$0xff]  }
 0x3e9   :  { %v2234_v47 = vmax.f32 %v2126_v13, 0.0  ;;  %2954 = vmatmul.mubr.bf16.gmra.mrb[32].mxu1 %v4047_v17 }
 0x3ea   :  { %2961 = vmatprep.mubr.bf16.mxu1 %v4048_v48 }
 0x3eb   :  { %v2337_v53 = vpack.c.bf16 %v2234_v47, %v2233_v59 }
 0x3ec   :  { %v2130_v62 = vpop.f32.mrb[100].mxu0 }
 0x3ed   :  { %v2131_v36 = vadd.f32 %v2130_v62, %v5824_v33  ;;  %v2132_v54 = vpop.f32.mrb[101].mxu0  ;;  %3742 = vmatprep.subr.bf16.mxu1 %v2337_v53 }
 0x3ee   :  { %v2133_v11 = vpop.f32.mrb[102].mxu0  ;;  %3743 = vmatpush3.bf16.msra.mxu1 %v5851_v23  ;;  %v4053_v23 = vld [vmem:[%s6290_s5 + $0x140] ss:$16 sps:$4 sm:$0xff]  }
 0x3ef   :  { %v2134_v63 = vadd.f32 %v2133_v11, %v5828_v18  ;;  %v2135_v44 = vpop.f32.mrb[103].mxu0  ;;  %v2235_v55 = vmax.f32 %v2131_v36, 0.0  ;;  %v4054_v18 = vld [vmem:[%s6290_s5 + $0x164] ss:$16 sps:$4 sm:$0xff]  }
 0x3f1   :  { %v2236_v22 = vmax.f32 %v2134_v63, 0.0  ;;  %2962 = vmatmul.mubr.bf16.gmra.mrb[36].mxu1 %v4050_v4 }
 0x3f2   :  { %2969 = vmatprep.mubr.bf16.mxu1 %v4051_v12 }
 0x3f3   :  { %v2338_v33 = vpack.c.bf16 %v2236_v22, %v2235_v55 }
 0x3f4   :  { %v2138_v46 = vpop.f32.mrb[104].mxu0 }
 0x3f5   :  { %v2139_v43 = vadd.f32 %v2138_v46, %v5833_v2  ;;  %v2140_v52 = vpop.f32.mrb[105].mxu0  ;;  %3744 = vmatprep.subr.bf16.mxu1 %v2338_v33 }
 0x3f6   :  { %v2141_v7 = vpop.f32.mrb[106].mxu0  ;;  %3745 = vmatpush3.bf16.msra.mxu1 %v5861_v51  ;;  %v4056_v51 = vld [vmem:[%s6290_s5 + $0x160] ss:$16 sps:$4 sm:$0xff]  }
 0x3f7   :  { %v2142_v49 = vadd.f32 %v2141_v7, %v5835_v19  ;;  %v2143_v34 = vpop.f32.mrb[107].mxu0  ;;  %v2237_v21 = vmax.f32 %v2139_v43, 0.0  ;;  %v4057_v19 = vld [vmem:[%s6290_s5 + $0x184] ss:$16 sps:$4 sm:$0xff]  }
 0x3f8   :  { %v4078_v34 = vld [vmem:[%s6290_s5 + $0x6c] ss:$16 sps:$4 sm:$0xff]  }
 0x3f9   :  { %v2238_v20 = vmax.f32 %v2142_v49, 0.0  ;;  %2970 = vmatmul.mubr.bf16.gmra.mrb[40].mxu1 %v4053_v23  ;;  %v4075_v49 = vld [vmem:[%s6290_s5 + $0x4c] ss:$16 sps:$4 sm:$0xff]  }
 0x3fa   :  { %2977 = vmatprep.mubr.bf16.mxu1 %v4054_v18  ;;  %v4069_v18 = vld [vmem:[%s6290_s5 + $0x8] ss:$16 sps:$4 sm:$0xff]  }
 0x3fb   :  { %v2339_v2 = vpack.c.bf16 %v2238_v20, %v2237_v21  ;;  %v4080_v21 = vld [vmem:[%s6290_s5 + $0x68] ss:$16 sps:$4 sm:$0xff]   ;;  %v4081_v20 = vld [vmem:[%s6290_s5 + $0x8c] ss:$16 sps:$4 sm:$0xff]  }
 0x3fc   :  { %v2146_v8 = vpop.f32.mrb[108].mxu0 }
 0x3fd   :  { %v2147_v3 = vadd.f32 %v2146_v8, %v5843_v38  ;;  %v2148_v39 = vpop.f32.mrb[109].mxu0  ;;  %3746 = vmatprep.subr.bf16.mxu1 %v2339_v2  ;;  %v4083_v2 = vld [vmem:[%s6290_s5 + $0x88] ss:$16 sps:$4 sm:$0xff]   ;;  %v4084_v8 = vld [vmem:[%s6290_s5 + $0xac] ss:$16 sps:$4 sm:$0xff]  }
 0x3fe   :  { %v2149_v1 = vpop.f32.mrb[110].mxu0  ;;  %3747 = vmatpush3.bf16.msra.mxu1 %v5871_v28  ;;  %v4059_v28 = vld [vmem:[%s6290_s5 + $0x180] ss:$16 sps:$4 sm:$0xff]   ;;  %v4087_v39 = vld [vmem:[%s6290_s5 + $0xcc] ss:$16 sps:$4 sm:$0xff]  }
 0x3ff   :  { %v2150_v58 = vadd.f32 %v2149_v1, %v5849_v35  ;;  %v2151_v31 = vpop.f32.mrb[111].mxu0  ;;  %v2239_v16 = vmax.f32 %v2147_v3, 0.0  ;;  %v4060_v35 = vld [vmem:[%s6290_s5 + $0x1a4] ss:$16 sps:$4 sm:$0xff]   ;;  %v4086_v3 = vld [vmem:[%s6290_s5 + $0xa8] ss:$16 sps:$4 sm:$0xff]  }
 0x400   :  { %v4090_v1 = vld [vmem:[%s6290_s5 + $0xec] ss:$16 sps:$4 sm:$0xff]   ;;  %v4095_v31 = vld [vmem:[%s6290_s5 + $0x108] ss:$16 sps:$4 sm:$0xff]  }
 0x401   :  { %v2240_v29 = vmax.f32 %v2150_v58, 0.0  ;;  %2978 = vmatmul.mubr.bf16.gmra.mrb[44].mxu1 %v4056_v51  ;;  %v4089_v51 = vld [vmem:[%s6290_s5 + $0xc8] ss:$16 sps:$4 sm:$0xff]   ;;  %v4093_v58 = vld [vmem:[%s6290_s5 + $0x10c] ss:$16 sps:$4 sm:$0xff]  }
 0x402   :  { %2985 = vmatprep.mubr.bf16.mxu1 %v4057_v19  ;;  %v4092_v19 = vld [vmem:[%s6290_s5 + $0xe8] ss:$16 sps:$4 sm:$0xff]  }
 0x403   :  { %v2340_v38 = vpack.c.bf16 %v2240_v29, %v2239_v16  ;;  %v4096_v16 = vld [vmem:[%s6290_s5 + $0x12c] ss:$16 sps:$4 sm:$0xff]   ;;  %v4098_v29 = vld [vmem:[%s6290_s5 + $0x128] ss:$16 sps:$4 sm:$0xff]  }
 0x404   :  { %v2154_v56 = vpop.f32.mrb[112].mxu0 }
 0x405   :  { %v2155_v30 = vadd.f32 %v2154_v56, %v5859_v26  ;;  %v2156_v60 = vpop.f32.mrb[113].mxu0  ;;  %3748 = vmatprep.subr.bf16.mxu1 %v2340_v38  ;;  %v4099_v38 = vld [vmem:[%s6290_s5 + $0x14c] ss:$16 sps:$4 sm:$0xff]   ;;  %v4101_v56 = vld [vmem:[%s6290_s5 + $0x148] ss:$16 sps:$4 sm:$0xff]  }
 0x406   :  { %v2157_v42 = vpop.f32.mrb[114].mxu0  ;;  %3749 = vmatpush3.bf16.msra.mxu1 %v5883_v45  ;;  %v4062_v45 = vld [vmem:[%s6290_s5 + $0x1a0] ss:$16 sps:$4 sm:$0xff]  }
 0x407   :  { %v2158_v14 = vadd.f32 %v2157_v42, %v5863_v57  ;;  %v2159_v24 = vpop.f32.mrb[115].mxu0  ;;  %v2241_v5 = vmax.f32 %v2155_v30, 0.0  ;;  %v4063_v57 = vld [vmem:[%s6290_s5 + $0x1c4] ss:$16 sps:$4 sm:$0xff]   ;;  %v4102_v30 = vld [vmem:[%s6290_s5 + $0x16c] ss:$16 sps:$4 sm:$0xff]  }
 0x408   :  { %v4104_v42 = vld [vmem:[%s6290_s5 + $0x168] ss:$16 sps:$4 sm:$0xff]   ;;  %v4105_v24 = vld [vmem:[%s6290_s5 + $0x18c] ss:$16 sps:$4 sm:$0xff]  }
 0x409   :  { %v2242_v41 = vmax.f32 %v2158_v14, 0.0  ;;  %2986 = vmatmul.mubr.bf16.gmra.mrb[48].mxu1 %v4059_v28 }
 0x40a   :  { %2993 = vmatprep.mubr.bf16.mxu1 %v4060_v35 }
 0x40b   :  { %v2341_v26 = vpack.c.bf16 %v2242_v41, %v2241_v5 }
 0x40c   :  { %v2162_v17 = vpop.f32.mrb[116].mxu0 }
 0x40d   :  { %v2163_v40 = vadd.f32 %v2162_v17, %v5876_v61  ;;  %v2164_v48 = vpop.f32.mrb[117].mxu0  ;;  %3750 = vmatprep.subr.bf16.mxu1 %v2341_v26 }
 0x40e   :  { %v2165_v13 = vpop.f32.mrb[118].mxu0  ;;  %3751 = vmatpush3.bf16.msra.mxu1 %v5893_v6  ;;  %v4065_v6 = vld [vmem:[%s6290_s5 + $0x1c0] ss:$16 sps:$4 sm:$0xff]  }
 0x40f   :  { %v2166_v25 = vadd.f32 %v2165_v13, %v5881_v9  ;;  %v2167_v59 = vpop.f32.mrb[119].mxu0  ;;  %v2243_v47 = vmax.f32 %v2163_v40, 0.0  ;;  %v4066_v9 = vld [vmem:[%s6290_s5 + $0x1e4] ss:$16 sps:$4 sm:$0xff]   ;;  %v4107_v40 = vld [vmem:[%s6290_s5 + $0x188] ss:$16 sps:$4 sm:$0xff]  }
 0x410   :  { %v4108_v13 = vld [vmem:[%s6290_s5 + $0x1ac] ss:$16 sps:$4 sm:$0xff]  }
 0x411   :  { %v2244_v53 = vmax.f32 %v2166_v25, 0.0  ;;  %2994 = vmatmul.mubr.bf16.gmra.mrb[52].mxu1 %v4062_v45 }
 0x412   :  { %3001 = vmatprep.mubr.bf16.mxu1 %v4063_v57 }
 0x413   :  { %v2342_v61 = vpack.c.bf16 %v2244_v53, %v2243_v47  ;;  %v4110_v53 = vld [vmem:[%s6290_s5 + $0x1a8] ss:$16 sps:$4 sm:$0xff]  }
 0x414   :  { %v2170_v62 = vpop.f32.mrb[120].mxu0 }
 0x415   :  { %v2171_v36 = vadd.f32 %v2170_v62, %v5891_v32  ;;  %v2172_v54 = vpop.f32.mrb[121].mxu0  ;;  %3752 = vmatprep.subr.bf16.mxu1 %v2342_v61 }
 0x416   :  { %v2173_v4 = vpop.f32.mrb[122].mxu0  ;;  %3753 = vmatpush3.bf16.msra.mxu1 %v5903_v27  ;;  %v4068_v27 = vld [vmem:[%s6290_s5 + $0x1e0] ss:$16 sps:$4 sm:$0xff]  }
 0x417   :  { %v2174_v11 = vadd.f32 %v2173_v4, %v5895_v37  ;;  %v2175_v12 = vpop.f32.mrb[123].mxu0  ;;  %v2245_v63 = vmax.f32 %v2171_v36, 0.0  ;;  %v4071_v37 = vld [vmem:[%s6290_s5 + $0xc] ss:$16 sps:$4 sm:$0xff]  }
 0x418   :  { %v4111_v36 = vld [vmem:[%s6290_s5 + $0x1cc] ss:$16 sps:$4 sm:$0xff]  }
 0x419   :  { %v2246_v44 = vmax.f32 %v2174_v11, 0.0  ;;  %3002 = vmatmul.mubr.bf16.gmra.mrb[56].mxu1 %v4065_v6  ;;  %v4113_v11 = vld [vmem:[%s6290_s5 + $0x1c8] ss:$16 sps:$4 sm:$0xff]  }
 0x41a   :  { %3009 = vmatprep.mubr.bf16.mxu1 %v4066_v9 }
 0x41b   :  { %v2343_v32 = vpack.c.bf16 %v2246_v44, %v2245_v63  ;;  %v4114_v44 = vld [vmem:[%s6290_s5 + $0x1ec] ss:$16 sps:$4 sm:$0xff]  }
 0x41c   :  { %v2178_v55 = vpop.f32.mrb[124].mxu0 }
 0x41d   :  { %v2179_v22 = vadd.f32 %v2178_v55, %v5908_v15  ;;  %v2180_v33 = vpop.f32.mrb[125].mxu0  ;;  %3754 = vmatprep.subr.bf16.mxu1 %v2343_v32 }
 0x41e   :  { %v2181_v46 = vpop.f32.mrb[126].mxu0  ;;  %3755 = vmatpush3.bf16.msra.mxu1 %v5915_v10  ;;  %v4072_v10 = vld [vmem:[%s6290_s5 + $0x2c] ss:$16 sps:$4 sm:$0xff]  }
 0x41f   :  { %v2182_v43 = vadd.f32 %v2181_v46, %v5913_v0  ;;  %v2183_v52 = vpop.f32.mrb[127].mxu0  ;;  %v2247_v23 = vmax.f32 %v2179_v22, 0.0  ;;  %v4074_v0 = vld [vmem:[%s6290_s5 + $0x28] ss:$16 sps:$4 sm:$0xff]  }
 0x421   :  { %v2248_v7 = vmax.f32 %v2182_v43, 0.0  ;;  %3010 = vmatmul.mubr.bf16.gmra.mrb[60].mxu1 %v4068_v27  ;;  %v4116_v27 = vld [vmem:[%s6290_s5 + $0x1e8] ss:$16 sps:$4 sm:$0xff]  }
 0x422   :  { %3050 = vmatprep.mubr.bf16.mxu1 %v4071_v37 }
 0x423   :  { %v2344_v15 = vpack.c.bf16 %v2248_v7, %v2247_v23 }
 0x425   :  { %3756 = vmatprep.subr.bf16.mxu1 %v2344_v15 }
 0x426   :  { %3757 = vmatpush3.bf16.msra.mxu1 %v5923_v50  ;;  %v4077_v50 = vld [vmem:[%s6290_s5 + $0x48] ss:$16 sps:$4 sm:$0xff]   ;;  %s4154_s5 = smov [#allocation3]  }
 0x427   :  { %s3490_s20 = sshll.u32 %s4154_s5, 4  ;;  %s3491_s20 = int_to_ptr.vmem [resolvable:$true] %s3490_s20 }
 0x428   :  { %s4126_s21 = scalar_lea.vmem %s3491_s20, 16  ;;  %s4130_s6 = scalar_lea.vmem %s3491_s20, 32 }
 0x429   :  { %3051 = vmatmul.mubr.bf16.vlgmr.msra.gmra.mrb[64].mxu1 %v4069_v18  ;;  %p4127_p0 = scmp.ne.s32.totalorder %s3491_s20, %s4126_s21  ;;  %p4131_p1 = scmp.lt.s32.totalorder %s3491_s20, %s3491_s20 }
 0x42a   :  { %3058 = vmatprep.mubr.bf16.mxu1 %v4072_v10  ;;  %p4132_p2 = scmp.lt.s32.totalorder %s4130_s6, %s4126_s21 }
 0x42c   :  { %p4133_p3 = por %p4132_p2, %p4131_p1 }
 0x42e   :  { %p4134_p4 = pnand %p4133_p3, %p4127_p0 }
 0x431   :  { %3059 = vmatmul.mubr.bf16.gmra.mrb[68].mxu1 %v4074_v0 }
 0x432   :  { %3066 = vmatprep.mubr.bf16.mxu1 %v4075_v49  ;;  %v6114_v49 = vpop.permute.xlu1 %2379 }
 0x439   :  { %3067 = vmatmul.mubr.bf16.gmra.mrb[72].mxu1 %v4077_v50 }
 0x43a   :  { %3074 = vmatprep.mubr.bf16.mxu1 %v4078_v34 }
 0x441   :  { %3075 = vmatmul.mubr.bf16.gmra.mrb[76].mxu1 %v4080_v21 }
 0x442   :  { %3082 = vmatprep.mubr.bf16.mxu1 %v4081_v20 }
 0x449   :  { %3083 = vmatmul.mubr.bf16.gmra.mrb[80].mxu1 %v4083_v2 }
 0x44a   :  { %3090 = vmatprep.mubr.bf16.mxu1 %v4084_v8  ;;  %v6118_v8 = vpop.permute.xlu0 %2384 }
 0x451   :  { %3091 = vmatmul.mubr.bf16.gmra.mrb[84].mxu1 %v4086_v3 }
 0x452   :  { %3098 = vmatprep.mubr.bf16.mxu1 %v4087_v39  ;;  %v6122_v39 = vpop.permute.xlu1 %2389 }
 0x459   :  { %3099 = vmatmul.mubr.bf16.gmra.mrb[88].mxu1 %v4089_v51 }
 0x45a   :  { %3106 = vmatprep.mubr.bf16.mxu1 %v4090_v1 }
 0x461   :  { %3107 = vmatmul.mubr.bf16.gmra.mrb[92].mxu1 %v4092_v19  ;;  %v6124_v19 = vpop.permute.xlu0 %2394 }
 0x462   :  { %3114 = vmatprep.mubr.bf16.mxu1 %v4093_v58 }
 0x469   :  { %3115 = vmatmul.mubr.bf16.gmra.mrb[96].mxu1 %v4095_v31 }
 0x46a   :  { %3122 = vmatprep.mubr.bf16.mxu1 %v4096_v16  ;;  %v6128_v16 = vpop.permute.xlu1 %2399 }
 0x471   :  { %3123 = vmatmul.mubr.bf16.gmra.mrb[100].mxu1 %v4098_v29 }
 0x472   :  { %3130 = vmatprep.mubr.bf16.mxu1 %v4099_v38 }
 0x479   :  { %3131 = vmatmul.mubr.bf16.gmra.mrb[104].mxu1 %v4101_v56  ;;  %v6132_v56 = vpop.permute.xlu0 %2404 }
 0x47a   :  { %3138 = vmatprep.mubr.bf16.mxu1 %v4102_v30 }
 0x47c   :  { %v3646_v60 = vpop.f32.mrb[0].mxu1 }
 0x47d   :  { %v3647_v28 = vpop.f32.mrb[1].mxu1 }
 0x47e   :  { %v6066_v35 = vadd.f32 %v3647_v28, %v3646_v60  ;;  %v3649_v14 = vpop.f32.mrb[2].mxu1  ;;  %v6134_v60 = vpop.permute.xlu1 %2409 }
 0x47f   :  { %v3650_v5 = vpop.f32.mrb[3].mxu1 }
 0x480   :  { %v6071_v41 = vadd.f32 %v3650_v5, %v3649_v14 }
 0x481   :  { %3139 = vmatmul.mubr.bf16.gmra.mrb[108].mxu1 %v4104_v42 }
 0x482   :  { %3146 = vmatprep.mubr.bf16.mxu1 %v4105_v24 }
 0x484   :  { %v3652_v26 = vpop.f32.mrb[4].mxu1 }
 0x485   :  { %v3653_v17 = vpop.f32.mrb[5].mxu1 }
 0x486   :  { %v6076_v48 = vadd.f32 %v3653_v17, %v3652_v26  ;;  %v3655_v45 = vpop.f32.mrb[6].mxu1  ;;  %v6140_v26 = vpop.permute.xlu0 %2414 }
 0x487   :  { %v3656_v57 = vpop.f32.mrb[7].mxu1  ;;  %v6142_v17 = vpop.permute.xlu1 %2419 }
 0x488   :  { %v6081_v25 = vadd.f32 %v3656_v57, %v3655_v45 }
 0x489   :  { %3147 = vmatmul.mubr.bf16.gmra.mrb[112].mxu1 %v4107_v40 }
 0x48a   :  { %3154 = vmatprep.mubr.bf16.mxu1 %v4108_v13 }
 0x48c   :  { %v3658_v59 = vpop.f32.mrb[8].mxu1 }
 0x48d   :  { %v3659_v47 = vpop.f32.mrb[9].mxu1 }
 0x48e   :  { %v6086_v61 = vadd.f32 %v3659_v47, %v3658_v59  ;;  %v3661_v62 = vpop.f32.mrb[10].mxu1  ;;  %v6146_v47 = vpop.permute.xlu0 %2424 }
 0x48f   :  { %v3662_v54 = vpop.f32.mrb[11].mxu1 }
 0x490   :  { %v6091_v6 = vadd.f32 %v3662_v54, %v3661_v62  ;;  %v6150_v62 = vpop.permute.xlu1 %2429 }
 0x491   :  { %3155 = vmatmul.mubr.bf16.gmra.mrb[116].mxu1 %v4110_v53 }
 0x492   :  { %3162 = vmatprep.mubr.bf16.mxu1 %v4111_v36 }
 0x494   :  { %v3664_v4 = vpop.f32.mrb[12].mxu1 }
 0x495   :  { %v3665_v9 = vpop.f32.mrb[13].mxu1 }
 0x496   :  { %v6096_v12 = vadd.f32 %v3665_v9, %v3664_v4  ;;  %v3667_v63 = vpop.f32.mrb[14].mxu1  ;;  %v6152_v4 = vpop.permute.xlu0 %2434 }
 0x497   :  { %v3668_v32 = vpop.f32.mrb[15].mxu1 }
 0x498   :  { %v6101_v55 = vadd.f32 %v3668_v32, %v3667_v63  ;;  %v6156_v63 = vpop.permute.xlu1 %2439 }
 0x499   :  { %3163 = vmatmul.mubr.bf16.gmra.mrb[120].mxu1 %v4113_v11 }
 0x49a   :  { %3170 = vmatprep.mubr.bf16.mxu1 %v4114_v44 }
 0x49c   :  { %v3670_v22 = vpop.f32.mrb[16].mxu1 }
 0x49d   :  { %v3671_v33 = vpop.f32.mrb[17].mxu1 }
 0x49e   :  { %v6106_v46 = vadd.f32 %v3671_v33, %v3670_v22  ;;  %v3673_v37 = vpop.f32.mrb[18].mxu1  ;;  %v6160_v22 = vpop.permute.xlu0 %2444 }
 0x49f   :  { %v3674_v43 = vpop.f32.mrb[19].mxu1 }
 0x4a0   :  { %v6108_v52 = vadd.f32 %v3674_v43, %v3673_v37 }
 0x4a1   :  { %3171 = vmatmul.mubr.bf16.gmra.mrb[124].mxu1 %v4116_v27  ;;  %v6162_v27 = vpop.permute.xlu1 %2449 }
 0x4a4   :  { %v3676_v23 = vpop.f32.mrb[20].mxu1 }
 0x4a5   :  { %v3677_v7 = vpop.f32.mrb[21].mxu1 }
 0x4a6   :  { %v6110_v15 = vadd.f32 %v3677_v7, %v3676_v23  ;;  %v3679_v18 = vpop.f32.mrb[22].mxu1 }
 0x4a7   :  { %v3680_v10 = vpop.f32.mrb[23].mxu1 }
 0x4a8   :  { %v6112_v0 = vadd.f32 %v3680_v10, %v3679_v18  ;;  %v6168_v10 = vpop.permute.xlu0 %2454 }
 0x4ac   :  { %v3682_v50 = vpop.f32.mrb[24].mxu1 }
 0x4ad   :  { %v3683_v34 = vpop.f32.mrb[25].mxu1 }
 0x4ae   :  { %v6116_v21 = vadd.f32 %v3683_v34, %v3682_v50  ;;  %v3685_v20 = vpop.f32.mrb[26].mxu1  ;;  %v6170_v50 = vpop.permute.xlu1 %2459 }
 0x4af   :  { %v3686_v2 = vpop.f32.mrb[27].mxu1 }
 0x4b0   :  { %v6120_v3 = vadd.f32 %v3686_v2, %v3685_v20 }
 0x4b4   :  { %v3688_v51 = vpop.f32.mrb[28].mxu1 }
 0x4b5   :  { %v3689_v1 = vpop.f32.mrb[29].mxu1 }
 0x4b6   :  { %v6126_v58 = vadd.f32 %v3689_v1, %v3688_v51  ;;  %v3691_v31 = vpop.f32.mrb[30].mxu1 }
 0x4b7   :  { %v3692_v29 = vpop.f32.mrb[31].mxu1 }
 0x4b8   :  { %v6130_v38 = vadd.f32 %v3692_v29, %v3691_v31  ;;  %v6174_v31 = vpop.permute.xlu0 %2464 }
 0x4bc   :  { %v3694_v30 = vpop.f32.mrb[32].mxu1 }
 0x4bd   :  { %v3695_v28 = vpop.f32.mrb[33].mxu1 }
 0x4be   :  { %v6136_v42 = vadd.f32 %v3695_v28, %v3694_v30  ;;  %v3697_v14 = vpop.f32.mrb[34].mxu1  ;;  %v6178_v30 = vpop.permute.xlu1 %2469 }
 0x4bf   :  { %v3698_v24 = vpop.f32.mrb[35].mxu1 }
 0x4c0   :  { %v6138_v5 = vadd.f32 %v3698_v24, %v3697_v14  ;;  %v6180_v24 = vpop.permute.xlu0 %2474 }
 0x4c4   :  { %v3700_v40 = vpop.f32.mrb[36].mxu1 }
 0x4c5   :  { %v3701_v45 = vpop.f32.mrb[37].mxu1 }
 0x4c6   :  { %v6144_v13 = vadd.f32 %v3701_v45, %v3700_v40  ;;  %v3703_v57 = vpop.f32.mrb[38].mxu1 }
 0x4c7   :  { %v3704_v59 = vpop.f32.mrb[39].mxu1 }
 0x4c8   :  { %v6148_v53 = vadd.f32 %v3704_v59, %v3703_v57  ;;  %v6184_v57 = vpop.permute.xlu1 %2479 }
 0x4cc   :  { %v3706_v36 = vpop.f32.mrb[40].mxu1 }
 0x4cd   :  { %v3707_v54 = vpop.f32.mrb[41].mxu1 }
 0x4ce   :  { %v6154_v9 = vadd.f32 %v3707_v54, %v3706_v36  ;;  %v3709_v11 = vpop.f32.mrb[42].mxu1  ;;  %v6188_v54 = vpop.permute.xlu0 %2484 }
 0x4cf   :  { %v3710_v44 = vpop.f32.mrb[43].mxu1 }
 0x4d0   :  { %v6158_v32 = vadd.f32 %v3710_v44, %v3709_v11  ;;  %v6190_v44 = vpop.permute.xlu1 %2489 }
 0x4d1   :  { %6405 = vst [vmem:[#allocation38_spill] sm:$0xff] %v6190_v44 }
 0x4d4   :  { %v3712_v33 = vpop.f32.mrb[44].mxu1 }
 0x4d5   :  { %v3713_v37 = vpop.f32.mrb[45].mxu1 }
 0x4d6   :  { %v6164_v43 = vadd.f32 %v3713_v37, %v3712_v33  ;;  %v3715_v23 = vpop.f32.mrb[46].mxu1 }
 0x4d7   :  { %v3716_v7 = vpop.f32.mrb[47].mxu1 }
 0x4d8   :  { %6399 = vst [vmem:[#allocation32_spill] sm:$0xff] %v6164_v43  ;;  %v6166_v18 = vadd.f32 %v3716_v7, %v3715_v23 }
 0x4da   :  { %6400 = vst [vmem:[#allocation9_spill] sm:$0xff] %v6166_v18 }
 0x4dc   :  { %v3718_v34 = vpop.f32.mrb[48].mxu1 }
 0x4dd   :  { %v3719_v20 = vpop.f32.mrb[49].mxu1 }
 0x4de   :  { %v6172_v2 = vadd.f32 %v3719_v20, %v3718_v34  ;;  %v3721_v51 = vpop.f32.mrb[50].mxu1  ;;  %v6196_v20 = vpop.permute.xlu0 %2494 }
 0x4df   :  { %v3722_v1 = vpop.f32.mrb[51].mxu1  ;;  %6408 = vst [vmem:[#allocation7_spill] sm:$0xff] %v6196_v20 }
 0x4e0   :  { %6401 = vst [vmem:[#allocation21_spill] sm:$0xff] %v6172_v2  ;;  %v6176_v29 = vadd.f32 %v3722_v1, %v3721_v51  ;;  %v6198_v51 = vpop.permute.xlu1 %2499 }
 0x4e1   :  { %6409 = vst [vmem:[#allocation12_spill] sm:$0xff] %v6198_v51 }
 0x4e2   :  { %6402 = vst [vmem:[#allocation6_spill] sm:$0xff] %v6176_v29 }
 0x4e4   :  { %v3724_v28 = vpop.f32.mrb[52].mxu1 }
 0x4e5   :  { %v3725_v14 = vpop.f32.mrb[53].mxu1 }
 0x4e6   :  { %v6182_v40 = vadd.f32 %v3725_v14, %v3724_v28  ;;  %v3727_v45 = vpop.f32.mrb[54].mxu1 }
 0x4e7   :  { %v3728_v59 = vpop.f32.mrb[55].mxu1 }
 0x4e8   :  { %6403 = vst [vmem:[#allocation11_spill] sm:$0xff] %v6182_v40  ;;  %v6186_v36 = vadd.f32 %v3728_v59, %v3727_v45 }
 0x4ea   :  { %6404 = vst [vmem:[#allocation34_spill] sm:$0xff] %v6186_v36  ;;  %v6202_v36 = vpop.permute.xlu0 %2504 }
 0x4eb   :  { %6411 = vst [vmem:[#allocation30_spill] sm:$0xff] %v6202_v36 }
 0x4ec   :  { %v3730_v11 = vpop.f32.mrb[56].mxu1 }
 0x4ed   :  { %v3731_v33 = vpop.f32.mrb[57].mxu1 }
 0x4ee   :  { %v6192_v37 = vadd.f32 %v3731_v33, %v3730_v11  ;;  %v3733_v23 = vpop.f32.mrb[58].mxu1  ;;  %v6206_v11 = vpop.permute.xlu1 %2509 }
 0x4ef   :  { %v3734_v7 = vpop.f32.mrb[59].mxu1  ;;  %6413 = vst [vmem:[#allocation8_spill] sm:$0xff] %v6206_v11 }
 0x4f0   :  { %6406 = vst [vmem:[#allocation10_spill] sm:$0xff] %v6192_v37  ;;  %v6194_v34 = vadd.f32 %v3734_v7, %v3733_v23  ;;  %v6208_v23 = vpop.permute.xlu0 %2514  ;;  %v2892_v7 = vadd.f32 %v6066_v35, %v6114_v49  ;;  %v2900_v35 = vadd.f32 %v6076_v48, %v6122_v39  ;;  %v2908_v48 = vadd.f32 %v6086_v61, %v6128_v16 }
 0x4f1   :  { %6414 = vst [vmem:[#allocation40_spill] sm:$0xff] %v6208_v23  ;;  %v2916_v61 = vadd.f32 %v6096_v12, %v6134_v60  ;;  %v2924_v12 = vadd.f32 %v6106_v46, %v6142_v17  ;;  %v2932_v46 = vadd.f32 %v6110_v15, %v6150_v62  ;;  %v2940_v15 = vadd.f32 %v6116_v21, %v6156_v63 }
 0x4f2   :  { %6407 = vst [vmem:[#allocation23_spill] sm:$0xff] %v6194_v34  ;;  %v6212_v2 = vpop.permute.xlu1 %2519  ;;  %v2948_v21 = vadd.f32 %v6126_v58, %v6162_v27  ;;  %v2956_v58 = vadd.f32 %v6136_v42, %v6170_v50  ;;  %v2964_v42 = vadd.f32 %v6144_v13, %v6178_v30  ;;  %v2972_v13 = vadd.f32 %v6154_v9, %v6184_v57  ;;  %v6416_v9 = vld [vmem:[#allocation38_spill] sm:$0xff]  ;;  %v6417_v57 = vld [vmem:[#allocation32_spill] sm:$0xff] }
 0x4f3   :  { %6415 = vst [vmem:[#allocation14_spill] sm:$0xff] %v6212_v2 }
 0x4f4   :  { %v3736_v1 = vpop.f32.mrb[60].mxu1  ;;  %v3246_v11 = vpop.permute.xlu0 %3245 }
 0x4f5   :  { %v3737_v28 = vpop.f32.mrb[61].mxu1 }
 0x4f6   :  { %v6200_v14 = vadd.f32 %v3737_v28, %v3736_v1  ;;  %v3739_v45 = vpop.f32.mrb[62].mxu1  ;;  %v2895_v28 = vadd.f32 %v6071_v41, %v6118_v8  ;;  %v3251_v18 = vpop.permute.xlu1 %3250  ;;  %v2903_v41 = vadd.f32 %v6081_v25, %v6124_v19  ;;  %v2911_v25 = vadd.f32 %v6091_v6, %v6132_v56 }
 0x4f7   :  { %v3740_v59 = vpop.f32.mrb[63].mxu1  ;;  %v2919_v6 = vadd.f32 %v6101_v55, %v6140_v26  ;;  %v2927_v55 = vadd.f32 %v6108_v52, %v6146_v47  ;;  %v2935_v52 = vadd.f32 %v6112_v0, %v6152_v4  ;;  %v2943_v0 = vadd.f32 %v6120_v3, %v6160_v22 }
 0x4f8   :  { %6410 = vst [vmem:[#allocation39_spill] sm:$0xff] %v6200_v14  ;;  %v6204_v40 = vadd.f32 %v3740_v59, %v3739_v45  ;;  %v2951_v3 = vadd.f32 %v6130_v38, %v6168_v10  ;;  %v2959_v38 = vadd.f32 %v6138_v5, %v6174_v31  ;;  %v2967_v5 = vadd.f32 %v6148_v53, %v6180_v24 }
 0x4f9   :  { %v2975_v53 = vadd.f32 %v6158_v32, %v6188_v54  ;;  %v6418_v54 = vld [vmem:[#allocation7_spill] sm:$0xff] }
 0x4fa   :  { %6412 = vst [vmem:[#allocation13_spill] sm:$0xff] %v6204_v40  ;;  %v3261_v43 = vpop.permute.xlu1 %3260 }
 0x4fc   :  { %v3758_v33 = vpop.f32.mrb[64].mxu1 }
 0x4fd   :  { %v3759_v37 = vpop.f32.mrb[65].mxu1 }
 0x4fe   :  { %v3760_v34 = vadd.f32 %v3759_v37, %v3758_v33  ;;  %v3761_v29 = vpop.f32.mrb[66].mxu1 }
 0x4ff   :  { %v3762_v1 = vpop.f32.mrb[67].mxu1 }
 0x500   :  { %v3053_v14 = vadd.f32 %v3760_v34, %v2892_v7  ;;  %v3763_v45 = vadd.f32 %v3762_v1, %v3761_v29 }
 0x502   :  { %v3179_v59 = vmax.f32 %v3053_v14, 0.0  ;;  %v3056_v40 = vadd.f32 %v3763_v45, %v2895_v28 }
 0x504   :  { %v3180_v36 = vmax.f32 %v3056_v40, 0.0  ;;  %v3764_v51 = vpop.f32.mrb[68].mxu1  ;;  %v3403_v49 = vmul.f32 %v3246_v11, %v3179_v59  ;;  %v3256_v40 = vpop.permute.xlu0 %3255 }
 0x505   :  { %v3765_v23 = vpop.f32.mrb[69].mxu1 }
 0x506   :  { %v3404_v37 = vmul.f32 %v3251_v18, %v3180_v36  ;;  %v3766_v33 = vadd.f32 %v3765_v23, %v3764_v51  ;;  %v3767_v2 = vpop.f32.mrb[70].mxu1 }
 0x507   :  { %v3768_v20 = vpop.f32.mrb[71].mxu1 }
 0x508   :  { %v3435_v8 = vadd.f32 %v3404_v37, %v3403_v49  ;;  %v3061_v29 = vadd.f32 %v3766_v33, %v2900_v35  ;;  %v3769_v34 = vadd.f32 %v3768_v20, %v3767_v2  ;;  %v3266_v35 = vpop.permute.xlu0 %3265 }
 0x50a   :  { %v3181_v14 = vmax.f32 %v3061_v29, 0.0  ;;  %v3064_v7 = vadd.f32 %v3769_v34, %v2903_v41  ;;  %v3271_v41 = vpop.permute.xlu1 %3270 }
 0x50c   :  { %v3405_v1 = vmul.f32 %v3256_v40, %v3181_v14  ;;  %v3182_v28 = vmax.f32 %v3064_v7, 0.0  ;;  %v3770_v45 = vpop.f32.mrb[72].mxu1 }
 0x50d   :  { %v3771_v44 = vpop.f32.mrb[73].mxu1 }
 0x50e   :  { %v3436_v39 = vadd.f32 %v3435_v8, %v3405_v1  ;;  %v3406_v18 = vmul.f32 %v3261_v43, %v3182_v28  ;;  %v3772_v36 = vadd.f32 %v3771_v44, %v3770_v45  ;;  %v3773_v51 = vpop.f32.mrb[74].mxu1  ;;  %v3276_v28 = vpop.permute.xlu0 %3275 }
 0x50f   :  { %v3774_v11 = vpop.f32.mrb[75].mxu1 }
 0x510   :  { %v3437_v19 = vadd.f32 %v3436_v39, %v3406_v18  ;;  %v3069_v2 = vadd.f32 %v3772_v36, %v2908_v48  ;;  %v3775_v20 = vadd.f32 %v3774_v11, %v3773_v51  ;;  %v3281_v18 = vpop.permute.xlu1 %3280 }
 0x512   :  { %v3183_v23 = vmax.f32 %v3069_v2, 0.0  ;;  %v3072_v59 = vadd.f32 %v3775_v20, %v2911_v25 }
 0x514   :  { %v3407_v49 = vmul.f32 %v3266_v35, %v3183_v23  ;;  %v3184_v37 = vmax.f32 %v3072_v59, 0.0  ;;  %v3776_v33 = vpop.f32.mrb[76].mxu1  ;;  %v3286_v35 = vpop.permute.xlu0 %3285 }
 0x515   :  { %v3777_v29 = vpop.f32.mrb[77].mxu1 }
 0x516   :  { %v3438_v16 = vadd.f32 %v3437_v19, %v3407_v49  ;;  %v3408_v43 = vmul.f32 %v3271_v41, %v3184_v37  ;;  %v3778_v44 = vadd.f32 %v3777_v29, %v3776_v33  ;;  %v3779_v8 = vpop.f32.mrb[78].mxu1  ;;  %v3291_v41 = vpop.permute.xlu1 %3290 }
 0x517   :  { %v3780_v34 = vpop.f32.mrb[79].mxu1 }
 0x518   :  { %v3439_v56 = vadd.f32 %v3438_v16, %v3408_v43  ;;  %v3077_v14 = vadd.f32 %v3778_v44, %v2916_v61  ;;  %v3781_v7 = vadd.f32 %v3780_v34, %v3779_v8 }
 0x51a   :  { %v3185_v40 = vmax.f32 %v3077_v14, 0.0  ;;  %v3080_v1 = vadd.f32 %v3781_v7, %v2919_v6  ;;  %v3296_v14 = vpop.permute.xlu0 %3295 }
 0x51c   :  { %v3409_v45 = vmul.f32 %v3276_v28, %v3185_v40  ;;  %v3186_v48 = vmax.f32 %v3080_v1, 0.0  ;;  %v3782_v39 = vpop.f32.mrb[80].mxu1  ;;  %v3301_v28 = vpop.permute.xlu1 %3300 }
 0x51d   :  { %v3783_v36 = vpop.f32.mrb[81].mxu1 }
 0x51e   :  { %v3440_v60 = vadd.f32 %v3439_v56, %v3409_v45  ;;  %v3410_v51 = vmul.f32 %v3281_v18, %v3186_v48  ;;  %v3784_v11 = vadd.f32 %v3783_v36, %v3782_v39  ;;  %v3785_v25 = vpop.f32.mrb[82].mxu1 }
 0x51f   :  { %v3786_v19 = vpop.f32.mrb[83].mxu1 }
 0x520   :  { %v3441_v26 = vadd.f32 %v3440_v60, %v3410_v51  ;;  %v3085_v2 = vadd.f32 %v3784_v11, %v2924_v12  ;;  %v3787_v20 = vadd.f32 %v3786_v19, %v3785_v25  ;;  %v3306_v25 = vpop.permute.xlu0 %3305 }
 0x522   :  { %v3187_v23 = vmax.f32 %v3085_v2, 0.0  ;;  %v3088_v59 = vadd.f32 %v3787_v20, %v2927_v55  ;;  %v3311_v2 = vpop.permute.xlu1 %3310 }
 0x524   :  { %v3411_v49 = vmul.f32 %v3286_v35, %v3187_v23  ;;  %v3188_v37 = vmax.f32 %v3088_v59, 0.0  ;;  %v3788_v33 = vpop.f32.mrb[84].mxu1 }
 0x525   :  { %v3789_v29 = vpop.f32.mrb[85].mxu1 }
 0x526   :  { %v3442_v17 = vadd.f32 %v3441_v26, %v3411_v49  ;;  %v3412_v61 = vmul.f32 %v3291_v41, %v3188_v37  ;;  %v3790_v16 = vadd.f32 %v3789_v29, %v3788_v33  ;;  %v3791_v43 = vpop.f32.mrb[86].mxu1 }
 0x527   :  { %v3792_v44 = vpop.f32.mrb[87].mxu1 }
 0x528   :  { %v3443_v47 = vadd.f32 %v3442_v17, %v3412_v61  ;;  %v3093_v8 = vadd.f32 %v3790_v16, %v2932_v46  ;;  %v3793_v34 = vadd.f32 %v3792_v44, %v3791_v43  ;;  %v3316_v46 = vpop.permute.xlu0 %3315  ;;  %v3321_v43 = vpop.permute.xlu1 %3320 }
 0x52a   :  { %v3189_v6 = vmax.f32 %v3093_v8, 0.0  ;;  %v3096_v56 = vadd.f32 %v3793_v34, %v2935_v52 }
 0x52c   :  { %v3413_v7 = vmul.f32 %v3296_v14, %v3189_v6  ;;  %v3190_v40 = vmax.f32 %v3096_v56, 0.0  ;;  %v3794_v1 = vpop.f32.mrb[88].mxu1 }
 0x52d   :  { %v3795_v45 = vpop.f32.mrb[89].mxu1 }
 0x52e   :  { %v3444_v62 = vadd.f32 %v3443_v47, %v3413_v7  ;;  %v3414_v48 = vmul.f32 %v3301_v28, %v3190_v40  ;;  %v3796_v39 = vadd.f32 %v3795_v45, %v3794_v1  ;;  %v3797_v18 = vpop.f32.mrb[90].mxu1  ;;  %v3326_v40 = vpop.permute.xlu0 %3325 }
 0x52f   :  { %v3798_v36 = vpop.f32.mrb[91].mxu1 }
 0x530   :  { %v3445_v4 = vadd.f32 %v3444_v62, %v3414_v48  ;;  %v3101_v12 = vadd.f32 %v3796_v39, %v2940_v15  ;;  %v3799_v60 = vadd.f32 %v3798_v36, %v3797_v18  ;;  %v3331_v15 = vpop.permute.xlu1 %3330 }
 0x532   :  { %v3191_v51 = vmax.f32 %v3101_v12, 0.0  ;;  %v3104_v11 = vadd.f32 %v3799_v60, %v2943_v0 }
 0x534   :  { %v3415_v19 = vmul.f32 %v3306_v25, %v3191_v51  ;;  %v3192_v55 = vmax.f32 %v3104_v11, 0.0  ;;  %v3800_v26 = vpop.f32.mrb[92].mxu1  ;;  %v3336_v51 = vpop.permute.xlu0 %3335 }
 0x535   :  { %v3801_v20 = vpop.f32.mrb[93].mxu1 }
 0x536   :  { %v3446_v63 = vadd.f32 %v3445_v4, %v3415_v19  ;;  %v3416_v23 = vmul.f32 %v3311_v2, %v3192_v55  ;;  %v3802_v59 = vadd.f32 %v3801_v20, %v3800_v26  ;;  %v3803_v35 = vpop.f32.mrb[94].mxu1  ;;  %v3341_v55 = vpop.permute.xlu1 %3340 }
 0x537   :  { %v3804_v49 = vpop.f32.mrb[95].mxu1 }
 0x538   :  { %v3447_v22 = vadd.f32 %v3446_v63, %v3416_v23  ;;  %v3109_v37 = vadd.f32 %v3802_v59, %v2948_v21  ;;  %v3805_v33 = vadd.f32 %v3804_v49, %v3803_v35  ;;  %v3346_v35 = vpop.permute.xlu0 %3345 }
 0x53a   :  { %v3193_v41 = vmax.f32 %v3109_v37, 0.0  ;;  %v3112_v29 = vadd.f32 %v3805_v33, %v2951_v3 }
 0x53c   :  { %v3417_v17 = vmul.f32 %v3316_v46, %v3193_v41  ;;  %v3194_v61 = vmax.f32 %v3112_v29, 0.0  ;;  %v3806_v16 = vpop.f32.mrb[96].mxu1  ;;  %v3351_v41 = vpop.permute.xlu1 %3350  ;;  %v2980_v46 = vadd.f32 %v6417_v57, %v6416_v9 }
 0x53d   :  { %v3807_v44 = vpop.f32.mrb[97].mxu1 }
 0x53e   :  { %v3448_v27 = vadd.f32 %v3447_v22, %v3417_v17  ;;  %v3418_v52 = vmul.f32 %v3321_v43, %v3194_v61  ;;  %v3808_v47 = vadd.f32 %v3807_v44, %v3806_v16  ;;  %v3809_v8 = vpop.f32.mrb[98].mxu1  ;;  %v3356_v44 = vpop.permute.xlu0 %3355 }
 0x53f   :  { %v3810_v34 = vpop.f32.mrb[99].mxu1 }
 0x540   :  { %v3449_v10 = vadd.f32 %v3448_v27, %v3418_v52  ;;  %v3117_v6 = vadd.f32 %v3808_v47, %v2956_v58  ;;  %v3811_v56 = vadd.f32 %v3810_v34, %v3809_v8  ;;  %v6419_v58 = vld [vmem:[#allocation9_spill] sm:$0xff] }
 0x541   :  { %v2983_v27 = vadd.f32 %v6419_v58, %v6418_v54 }
 0x542   :  { %v3195_v14 = vmax.f32 %v3117_v6, 0.0  ;;  %v3120_v7 = vadd.f32 %v3811_v56, %v2959_v38 }
 0x544   :  { %v3419_v1 = vmul.f32 %v3326_v40, %v3195_v14  ;;  %v3196_v28 = vmax.f32 %v3120_v7, 0.0  ;;  %v3812_v45 = vpop.f32.mrb[100].mxu1  ;;  %v3366_v7 = vpop.permute.xlu0 %3365 }
 0x545   :  { %v3813_v62 = vpop.f32.mrb[101].mxu1 }
 0x546   :  { %v3450_v50 = vadd.f32 %v3449_v10, %v3419_v1  ;;  %v3420_v48 = vmul.f32 %v3331_v15, %v3196_v28  ;;  %v3814_v39 = vadd.f32 %v3813_v62, %v3812_v45  ;;  %v3815_v18 = vpop.f32.mrb[102].mxu1  ;;  %v3361_v10 = vpop.permute.xlu1 %3360  ;;  %v6420_v1 = vld [vmem:[#allocation12_spill] sm:$0xff]  ;;  %v6421_v28 = vld [vmem:[#allocation21_spill] sm:$0xff] }
 0x547   :  { %v3816_v36 = vpop.f32.mrb[103].mxu1  ;;  %v2988_v45 = vadd.f32 %v6421_v28, %v6420_v1 }
 0x548   :  { %v3451_v31 = vadd.f32 %v3450_v50, %v3420_v48  ;;  %v3125_v0 = vadd.f32 %v3814_v39, %v2964_v42  ;;  %v3817_v4 = vadd.f32 %v3816_v36, %v3815_v18  ;;  %v6422_v39 = vld [vmem:[#allocation30_spill] sm:$0xff] }
 0x549   :  { %v6423_v18 = vld [vmem:[#allocation6_spill] sm:$0xff] }
 0x54a   :  { %v3197_v12 = vmax.f32 %v3125_v0, 0.0  ;;  %v3128_v60 = vadd.f32 %v3817_v4, %v2967_v5  ;;  %v2991_v36 = vadd.f32 %v6423_v18, %v6422_v39  ;;  %v3371_v4 = vpop.permute.xlu1 %3370 }
 0x54c   :  { %v3421_v11 = vmul.f32 %v3336_v51, %v3197_v12  ;;  %v3198_v25 = vmax.f32 %v3128_v60, 0.0  ;;  %v3818_v19 = vpop.f32.mrb[104].mxu1  ;;  %v2525_v51 = vpop.permute.xlu0 %2524 }
 0x54d   :  { %v3819_v26 = vpop.f32.mrb[105].mxu1 }
 0x54e   :  { %v3452_v30 = vadd.f32 %v3451_v31, %v3421_v11  ;;  %v3422_v2 = vmul.f32 %v3341_v55, %v3198_v25  ;;  %v3820_v20 = vadd.f32 %v3819_v26, %v3818_v19  ;;  %v3821_v21 = vpop.f32.mrb[106].mxu1  ;;  %v6424_v26 = vld [vmem:[#allocation8_spill] sm:$0xff] }
 0x54f   :  { %v3822_v63 = vpop.f32.mrb[107].mxu1 }
 0x550   :  { %v3453_v24 = vadd.f32 %v3452_v30, %v3422_v2  ;;  %v3133_v23 = vadd.f32 %v3820_v20, %v2972_v13  ;;  %v3823_v59 = vadd.f32 %v3822_v63, %v3821_v21  ;;  %v6425_v13 = vld [vmem:[#allocation11_spill] sm:$0xff] }
 0x551   :  { %v2996_v30 = vadd.f32 %v6425_v13, %v6424_v26  ;;  %v3478_v13 = vlaneseq }
 0x552   :  { %v3199_v49 = vmax.f32 %v3133_v23, 0.0  ;;  %v3136_v3 = vadd.f32 %v3823_v59, %v2975_v53  ;;  %v3376_v53 = vpop.permute.xlu1 %3375  ;;  %v6426_v23 = vld [vmem:[#allocation40_spill] sm:$0xff]  ;;  %v6427_v59 = vld [vmem:[#allocation34_spill] sm:$0xff] }
 0x554   :  { %v3423_v22 = vmul.f32 %v3346_v35, %v3199_v49  ;;  %v3200_v37 = vmax.f32 %v3136_v3, 0.0  ;;  %v3824_v33 = vpop.f32.mrb[108].mxu1  ;;  %v2999_v35 = vadd.f32 %v6427_v59, %v6426_v23 }
 0x555   :  { %v3825_v29 = vpop.f32.mrb[109].mxu1 }
 0x556   :  { %v3454_v17 = vadd.f32 %v3453_v24, %v3423_v22  ;;  %v3424_v61 = vmul.f32 %v3351_v41, %v3200_v37  ;;  %v3826_v16 = vadd.f32 %v3825_v29, %v3824_v33  ;;  %v3827_v43 = vpop.f32.mrb[110].mxu1  ;;  %v2530_v37 = vpop.permute.xlu0 %2529 }
 0x557   :  { %v3828_v32 = vpop.f32.mrb[111].mxu1 }
 0x558   :  { %v3455_v52 = vadd.f32 %v3454_v17, %v3424_v61  ;;  %v3141_v47 = vadd.f32 %v3826_v16, %v2980_v46  ;;  %v3829_v8 = vadd.f32 %v3828_v32, %v3827_v43  ;;  %v3381_v46 = vpop.permute.xlu1 %3380  ;;  %v6428_v61 = vld [vmem:[#allocation14_spill] sm:$0xff] }
 0x559   :  { %v6429_v16 = vld [vmem:[#allocation10_spill] sm:$0xff] }
 0x55a   :  { %v3201_v34 = vmax.f32 %v3141_v47, 0.0  ;;  %v3144_v38 = vadd.f32 %v3829_v8, %v2983_v27  ;;  %v3004_v43 = vadd.f32 %v6429_v16, %v6428_v61  ;;  %v2535_v27 = vpop.permute.xlu0 %2534  ;;  %v6430_v47 = vld [vmem:[#allocation23_spill] sm:$0xff] }
 0x55b   :  { %v3007_v8 = vadd.f32 %v6430_v47, %v2525_v51 }
 0x55c   :  { %v3425_v6 = vmul.f32 %v3356_v44, %v3201_v34  ;;  %v3202_v56 = vmax.f32 %v3144_v38, 0.0  ;;  %v3830_v14 = vpop.f32.mrb[112].mxu1 }
 0x55d   :  { %v3831_v40 = vpop.f32.mrb[113].mxu1 }
 0x55e   :  { %v3456_v15 = vadd.f32 %v3455_v52, %v3425_v6  ;;  %v3426_v62 = vmul.f32 %v3361_v10, %v3202_v56  ;;  %v3832_v42 = vadd.f32 %v3831_v40, %v3830_v14  ;;  %v3833_v50 = vpop.f32.mrb[114].mxu1  ;;  %v3386_v14 = vpop.permute.xlu1 %3385 }
 0x55f   :  { %v3834_v48 = vpop.f32.mrb[115].mxu1  ;;  %v3391_v28 = vpop.permute.xlu0 %3390 }
 0x560   :  { %v3457_v5 = vadd.f32 %v3456_v15, %v3426_v62  ;;  %v3149_v31 = vadd.f32 %v3832_v42, %v2988_v45  ;;  %v3835_v0 = vadd.f32 %v3834_v48, %v3833_v50  ;;  %v6431_v15 = vld [vmem:[#allocation39_spill] sm:$0xff] }
 0x561   :  { %v3012_v62 = vadd.f32 %v6431_v15, %v2530_v37 }
 0x562   :  { %v3203_v12 = vmax.f32 %v3149_v31, 0.0  ;;  %v3152_v60 = vadd.f32 %v3835_v0, %v2991_v36  ;;  %v6432_v36 = vld [vmem:[#allocation13_spill] sm:$0xff]  ;;  %v3396_v51 = vpop.permute.xlu1 %3395 }
 0x564   :  { %v3427_v11 = vmul.f32 %v3366_v7, %v3203_v12  ;;  %v3204_v25 = vmax.f32 %v3152_v60, 0.0  ;;  %v3836_v19 = vpop.f32.mrb[116].mxu1 }
 0x565   :  { %v3837_v55 = vpop.f32.mrb[117].mxu1 }
 0x566   :  { %v3458_v2 = vadd.f32 %v3457_v5, %v3427_v11  ;;  %v3428_v20 = vmul.f32 %v3371_v4, %v3204_v25  ;;  %v3838_v21 = vadd.f32 %v3837_v55, %v3836_v19  ;;  %v3839_v63 = vpop.f32.mrb[118].mxu1  ;;  %v3015_v5 = vadd.f32 %v6432_v36, %v2535_v27  ;;  %v3401_v19 = vpop.permute.xlu0 %3400 }
 0x567   :  { %v3840_v24 = vpop.f32.mrb[119].mxu1  ;;  %v3476_v23 = vpop.permute.xlu1 %3475 }
 0x568   :  { %v3459_v49 = vadd.f32 %v3458_v2, %v3428_v20  ;;  %v3157_v3 = vadd.f32 %v3838_v21, %v2996_v30  ;;  %v3841_v22 = vadd.f32 %v3840_v24, %v3839_v63  ;;  %v3479_v20 = vshrl.u32 %v3478_v13, 7 }
 0x56a   :  { %v3205_v33 = vmax.f32 %v3157_v3, 0.0  ;;  %v3160_v41 = vadd.f32 %v3841_v22, %v2999_v35 }
 0x56c   :  { %v3429_v29 = vmul.f32 %v3376_v53, %v3205_v33  ;;  %v3206_v9 = vmax.f32 %v3160_v41, 0.0  ;;  %v3842_v57 = vpop.f32.mrb[120].mxu1  ;;  %v3480_v53 = vsub.s32 0, %v3479_v20 }
 0x56d   :  { %v3843_v17 = vpop.f32.mrb[121].mxu1 }
 0x56e   :  { %v3460_v44 = vadd.f32 %v3459_v49, %v3429_v29  ;;  %v3430_v32 = vmul.f32 %v3381_v46, %v3206_v9  ;;  %v3844_v54 = vadd.f32 %v3843_v17, %v3842_v57  ;;  %v3845_v58 = vpop.f32.mrb[122].mxu1  ;;  %v3481_v35 = vrot.slane %v3476_v23, %v3480_v53 }
 0x56f   :  { %v3846_v52 = vpop.f32.mrb[123].mxu1 }
 0x570   :  { %v3461_v34 = vadd.f32 %v3460_v44, %v3430_v32  ;;  %v3165_v38 = vadd.f32 %v3844_v54, %v3004_v43  ;;  %v3847_v10 = vadd.f32 %v3846_v52, %v3845_v58 }
 0x572   :  { %v3207_v6 = vmax.f32 %v3165_v38, 0.0  ;;  %v3168_v56 = vadd.f32 %v3847_v10, %v3007_v8 }
 0x574   :  { %v3431_v7 = vmul.f32 %v3386_v14, %v3207_v6  ;;  %v3208_v40 = vmax.f32 %v3168_v56, 0.0  ;;  %v3848_v1 = vpop.f32.mrb[124].mxu1 }
 0x575   :  { %v3849_v45 = vpop.f32.mrb[125].mxu1 }
 0x576   :  { %v3462_v42 = vadd.f32 %v3461_v34, %v3431_v7  ;;  %v3432_v50 = vmul.f32 %v3391_v28, %v3208_v40  ;;  %v3850_v48 = vadd.f32 %v3849_v45, %v3848_v1  ;;  %v3851_v39 = vpop.f32.mrb[126].mxu1 }
 0x577   :  { %v3852_v18 = vpop.f32.mrb[127].mxu1 }
 0x578   :  { %v3463_v31 = vadd.f32 %v3462_v42, %v3432_v50  ;;  %v3173_v0 = vadd.f32 %v3850_v48, %v3012_v62  ;;  %v3853_v4 = vadd.f32 %v3852_v18, %v3851_v39 }
 0x57a   :  { %v3209_v12 = vmax.f32 %v3173_v0, 0.0  ;;  %v3176_v60 = vadd.f32 %v3853_v4, %v3015_v5 }
 0x57c   :  { %v3433_v11 = vmul.f32 %v3396_v51, %v3209_v12  ;;  %v3210_v25 = vmax.f32 %v3176_v60, 0.0 }
 0x57e   :  { %v3464_v55 = vadd.f32 %v3463_v31, %v3433_v11  ;;  %v3434_v26 = vmul.f32 %v3401_v19, %v3210_v25 }
 0x580   :  { %v3465_v30 = vadd.f32 %v3464_v55, %v3434_v26 }
 0x582   :  { %v3466_v2 = vrot.slane %v3465_v30, 4 }
 0x584   :  { %v3467_v21 = vadd.f32 %v3466_v2, %v3465_v30 }
 0x586   :  { %v3468_v63 = vrot.slane %v3467_v21, 2 }
 0x588   :  { %v3469_v24 = vadd.f32 %v3468_v63, %v3467_v21 }
 0x58a   :  { %v3470_v59 = vrot.slane %v3469_v24, 1 }
 0x58c   :  { %v3471_v49 = vadd.f32 %v3470_v59, %v3469_v24 }
 0x58e   :  { %v3482_v3 = vadd.f32 %v3481_v35, %v3471_v49 }
 0x590   :  { %3483 = vst [vmem:[#allocation3] sm:$0x1] %v3482_v3 }
 0x591   :  { %4137 = shalt.err (!%p4134_p4)
}
 0x592   :  { %s4138_s23 = scalar_lea.hbm %s6294_s9, 16 }
 0x593   :  { %p4139_p5 = scmp.ne.s32.totalorder %s6294_s9, %s4138_s23  ;;  %p4142_p6 = scmp.lt.u32.totalorder %s4138_s23, %s6294_s9 }
 0x595   :  { %p4144_p7 = pnand %p4142_p6, %p4139_p5 }
 0x597   :  { %4147 = shalt.err (!%p4144_p7)
}
 0x598   :  { %3493 = dma.vmem_to_hbm [thread:$0]  %s3491_s20, 16, %s6294_s9, [#allocation4]  }
 0x599   :  { %4148 = dma.done.wait [#allocation4], 16  }
 0x59a   :  { %4149 = vsyncadd [#allocation4], 4294967280 }
 0x59b   :  { %3497 = vsyncpa [#allocation4], 1 }

</bundles_post_ra>
